<compile_context>
chip_gen: v7x
topology: tpu7x:2x2x1
jax: 0.10.0
libtpu: 0.0.40
codegen_flags: <defaults>
</compile_context>

<pallas_src>
import math
from functools import partial

import jax
import jax.numpy as jnp
from jax import lax
from jax.experimental import pallas as pl
from jax.experimental.pallas import tpu as pltpu

_INV_SQRT2 = 1.0 / math.sqrt(2.0)
_VMEM_LIMIT = 48 * 1024 * 1024


# ----------------------------- tiling helpers -------------------------------

def _pick_tile(dim, target, align):
    """Largest aligned divisor of `dim` that is <= target (or `dim` itself)."""
    if dim <= target:
        return dim
    t = (target // align) * align
    while t >= align:
        if dim % t == 0:
            return t
        t -= align
    return dim


def _largest_divisor_leq(n, target):
    for t in range(min(n, target), 0, -1):
        if n % t == 0:
            return t
    return 1


# ----------------------------- fused linear ---------------------------------

def _make_fused_linear_kernel(nk, fuse_ln, fuse_res, activation, eps):
    def kernel(*refs):
        x_ref, w_ref, b_ref = refs[0], refs[1], refs[2]
        idx = 3
        if fuse_ln:
            g_ref, beta_ref = refs[idx], refs[idx + 1]
            idx += 2
        if fuse_res:
            r_ref = refs[idx]
            idx += 1
        o_ref, acc_ref = refs[idx], refs[idx + 1]

        k = pl.program_id(2)

        @pl.when(k == 0)
        def _():
            acc_ref[...] = jnp.zeros_like(acc_ref)

        x = x_ref[...]
        if fuse_ln:
            # LayerNorm over the (full) K axis, computed in f32, fed to MXU as bf16.
            xf = x.astype(jnp.float32)
            mean = jnp.mean(xf, axis=-1, keepdims=True)
            var = jnp.mean(jnp.square(xf - mean), axis=-1, keepdims=True)
            xf = (xf - mean) * lax.rsqrt(var + eps)
            xf = xf * g_ref[...].astype(jnp.float32) + beta_ref[...].astype(jnp.float32)
            x = xf.astype(w_ref.dtype)

        acc_ref[...] += jnp.dot(x, w_ref[...], preferred_element_type=jnp.float32)

        @pl.when(k == nk - 1)
        def _():
            out = acc_ref[...] + b_ref[...].astype(jnp.float32)
            if activation == "gelu":
                # exact (erf) GELU to match torch.nn.GELU default
                out = 0.5 * out * (1.0 + lax.erf(out * _INV_SQRT2))
            if fuse_res:
                out = out + r_ref[...].astype(jnp.float32)
            o_ref[...] = out.astype(o_ref.dtype)

    return kernel


def fused_linear(x, w, b, *, ln_g=None, ln_b=None, residual=None,
                 activation=None, out_dtype=jnp.bfloat16, eps=1e-6,
                 tm=256, tn=512, tk=512):
    """out = [residual +] act(LN?(x) @ w + b).  x:(M,K) bf16, w:(K,N) bf16."""
    M, K = x.shape
    Kw, N = w.shape
    assert Kw == K
    fuse_ln = ln_g is not None
    fuse_res = residual is not None

    tm = _pick_tile(M, tm, 8)
    tn = _pick_tile(N, tn, 128)
    tk = K if fuse_ln else _pick_tile(K, tk, 128)   # LN needs the full feature row
    nm, nn, nk = M // tm, N // tn, K // tk

    in_specs = [
        pl.BlockSpec((tm, tk), lambda i, j, k: (i, k)),
        pl.BlockSpec((tk, tn), lambda i, j, k: (k, j)),
        pl.BlockSpec((1, tn), lambda i, j, k: (0, j)),
    ]
    inputs = [x, w, b.reshape(1, N)]
    if fuse_ln:
        in_specs.append(pl.BlockSpec((1, tk), lambda i, j, k: (0, 0)))
        in_specs.append(pl.BlockSpec((1, tk), lambda i, j, k: (0, 0)))
        inputs.append(ln_g.reshape(1, K).astype(jnp.float32))
        inputs.append(ln_b.reshape(1, K).astype(jnp.float32))
    if fuse_res:
        in_specs.append(pl.BlockSpec((tm, tn), lambda i, j, k: (i, j)))
        inputs.append(residual)

    kernel = _make_fused_linear_kernel(nk, fuse_ln, fuse_res, activation, eps)
    return pl.pallas_call(
        kernel,
        out_shape=jax.ShapeDtypeStruct((M, N), out_dtype),
        grid=(nm, nn, nk),
        in_specs=in_specs,
        out_specs=pl.BlockSpec((tm, tn), lambda i, j, k: (i, j)),
        scratch_shapes=[pltpu.VMEM((tm, tn), jnp.float32)],
        compiler_params=pltpu.CompilerParams(
            dimension_semantics=("parallel", "parallel", "arbitrary"),
            vmem_limit_bytes=_VMEM_LIMIT,
        ),
    )(*inputs)


# ----------------------------- attention ------------------------------------

def _attn_kernel(q_ref, k_ref, v_ref, o_ref, *, scale):
    q = q_ref[...]                                   # (Hb, S, Dh) bf16
    k = k_ref[...]
    v = v_ref[...]
    # scores: contract last dims (no materialized k.T), f32 accumulation on MXU
    s = jnp.einsum("hqd,hkd->hqk", q, k, preferred_element_type=jnp.float32) * scale
    m = jnp.max(s, axis=-1, keepdims=True)
    p = jnp.exp(s - m)
    l = jnp.sum(p, axis=-1, keepdims=True)
    # normalize AFTER the p@v matmul: S*Dh multiplies + one EUP reciprocal
    o = jnp.einsum("hqk,hkd->hqd", p.astype(v.dtype), v,
                   preferred_element_type=jnp.float32)
    o_ref[...] = (o * pl.reciprocal(l, approx=True)).astype(o_ref.dtype)


def attention(q, k, v, scale, heads_per_step=8):
    """q/k/v: (B*H, S, Dh) bf16 -> (B*H, S, Dh) bf16."""
    BH, S, Dh = q.shape
    hb = _largest_divisor_leq(BH, heads_per_step)
    spec = pl.BlockSpec((hb, S, Dh), lambda i: (i, 0, 0))
    return pl.pallas_call(
        partial(_attn_kernel, scale=scale),
        out_shape=jax.ShapeDtypeStruct((BH, S, Dh), jnp.bfloat16),
        grid=(BH // hb,),
        in_specs=[spec, spec, spec],
        out_specs=spec,
        compiler_params=pltpu.CompilerParams(
            dimension_semantics=("parallel",),
            vmem_limit_bytes=_VMEM_LIMIT,
        ),
    )(q, k, v)


# ----------------------------- model forward --------------------------------

def block_forward(p, x, num_heads):
    """Pre-norm ViT block (init_values=None, drop_path=0, postnorm=False)."""
    B, S, D = x.shape
    Dh = D // num_heads
    x2d = x.reshape(B * S, D)

    # ---- attention branch: LN1 fused into the qkv matmul ----
    qkv = fused_linear(x2d, p["qkv_w"], p["qkv_b"],
                       ln_g=p["ln1_g"], ln_b=p["ln1_b"])          # (B*S, 3D) bf16
    qkv = qkv.reshape(B, S, 3, num_heads, Dh).transpose(2, 0, 3, 1, 4)
    q = qkv[0].reshape(B * num_heads, S, Dh)
    k = qkv[1].reshape(B * num_heads, S, Dh)
    v = qkv[2].reshape(B * num_heads, S, Dh)
    o = attention(q, k, v, scale=Dh ** -0.5)                      # (B*H, S, Dh)
    o = o.reshape(B, num_heads, S, Dh).transpose(0, 2, 1, 3).reshape(B * S, D)
    # proj with the residual add fused into the epilogue
    x2d = fused_linear(o, p["proj_w"], p["proj_b"], residual=x2d)

    # ---- MLP branch: LN2 fused into fc1(+GELU), residual fused into fc2 ----
    h = fused_linear(x2d, p["fc1_w"], p["fc1_b"],
                     ln_g=p["ln2_g"], ln_b=p["ln2_b"], activation="gelu")
    x2d = fused_linear(h, p["fc2_w"], p["fc2_b"], residual=x2d)
    return x2d.reshape(B, S, D)


@partial(jax.jit, static_argnames=("patch_size", "num_heads"))
def _vit_trunk(params, image, bool_masked_pos, *, patch_size, num_heads):
    """Everything with a static shape: patch embed -> blocks -> norm+lm_head."""
    B, C, H, W = image.shape
    ps = patch_size
    D = params["pe_w"].shape[1]
    Hp, Wp = H // ps, W // ps
    N = Hp * Wp

    # PatchEmbed: conv(k=ps, stride=ps) == patchify + matmul (bf16 into the MXU)
    patches = image.reshape(B, C, Hp, ps, Wp, ps)
    patches = patches.transpose(0, 2, 4, 1, 3, 5).reshape(B * N, C * ps * ps)
    patches = patches.astype(jnp.bfloat16)
    x = fused_linear(patches, params["pe_w"], params["pe_b"]).reshape(B, N, D)

    # mask-token mixing
    w = bool_masked_pos[..., None].astype(x.dtype)                # (B, N, 1)
    x = x * (1.0 - w) + params["mask_token"].astype(x.dtype) * w

    # cls token + abs pos embed
    cls = jnp.broadcast_to(params["cls_token"].astype(x.dtype), (B, 1, D))
    x = jnp.concatenate([cls, x], axis=1)                         # (B, N+1, D)
    x = x + params["pos_embed"].astype(x.dtype)

    for blk in params["blocks"]:
        x = block_forward(blk, x, num_heads)

    # Final LayerNorm fused into lm_head; LN and lm_head are per-token, so
    # running them on all patch tokens (cls dropped) matches the reference on
    # the masked positions; the masked gather happens outside jit.
    feats = x[:, 1:].reshape(B * N, D)
    logits = fused_linear(feats, params["lm_w"], params["lm_b"],
                          ln_g=params["norm_g"], ln_b=params["norm_b"],
                          out_dtype=jnp.float32)
    return logits.reshape(B, N, -1)                               # (B, N, pred_dim) f32


def vit_mim_forward(params, image, bool_masked_pos, *, patch_size, num_heads):
    logits = _vit_trunk(params, image, bool_masked_pos,
                        patch_size=patch_size, num_heads=num_heads)
    # data-dependent boolean gather (output shape depends on mask count) -> eager
    return logits[bool_masked_pos]                                # (num_masked, pred_dim)


# ----------------------------- parameter init -------------------------------

def trunc_normal(key, shape, std):
    # matches trunc_normal_(t, std=std, a=-std, b=std): truncation at +-1 sigma
    return jax.random.truncated_normal(key, -1.0, 1.0, shape, jnp.float32) * std


def init_params(key, *, img_size, patch_size, in_chans, embed_dim, depth,
                num_heads, mlp_ratio, predict_feature_dim, init_std=0.02):
    num_patches = (img_size // patch_size) ** 2
    hidden = int(embed_dim * mlp_ratio)
    keys = iter(jax.random.split(key, 8 + depth * 4))
    bf16 = jnp.bfloat16

    params = {
        # PatchEmbed conv weight stored as (C*p*p, D), bf16 for the MXU
        "pe_w": trunc_normal(next(keys), (in_chans * patch_size * patch_size, embed_dim),
                             init_std).astype(bf16),
        "pe_b": jnp.zeros((embed_dim,), jnp.float32),
        "cls_token": trunc_normal(next(keys), (1, 1, embed_dim), init_std),
        "mask_token": trunc_normal(next(keys), (1, 1, embed_dim), init_std),
        "pos_embed": trunc_normal(next(keys), (1, num_patches + 1, embed_dim), init_std),
        "norm_g": jnp.ones((embed_dim,), jnp.float32),
        "norm_b": jnp.zeros((embed_dim,), jnp.float32),
        "lm_w": trunc_normal(next(keys), (embed_dim, predict_feature_dim),
                             init_std).astype(bf16),
        "lm_b": jnp.zeros((predict_feature_dim,), jnp.float32),
        "blocks": [],
    }

    for layer_id in range(depth):
        rescale = 1.0 / math.sqrt(2.0 * (layer_id + 1))   # fix_init_weight()
        blk = {
            "ln1_g": jnp.ones((embed_dim,), jnp.float32),
            "ln1_b": jnp.zeros((embed_dim,), jnp.float32),
            "qkv_w": trunc_normal(next(keys), (embed_dim, 3 * embed_dim),
                                  init_std).astype(bf16),
            # q_bias / v_bias params; EVA keeps the k-bias fixed at zero.  All
            # zeros at init; if real checkpoints are loaded the k slice must
            # stay zero.
            "qkv_b": jnp.zeros((3 * embed_dim,), jnp.float32),
            "proj_w": (trunc_normal(next(keys), (embed_dim, embed_dim), init_std)
                       * rescale).astype(bf16),
            "proj_b": jnp.zeros((embed_dim,), jnp.float32),
            "ln2_g": jnp.ones((embed_dim,), jnp.float32),
            "ln2_b": jnp.zeros((embed_dim,), jnp.float32),
            "fc1_w": trunc_normal(next(keys), (embed_dim, hidden), init_std).astype(bf16),
            "fc1_b": jnp.zeros((hidden,), jnp.float32),
            "fc2_w": (trunc_normal(next(keys), (hidden, embed_dim), init_std)
                      * rescale).astype(bf16),
            "fc2_b": jnp.zeros((embed_dim,), jnp.float32),
        }
        params["blocks"].append(blk)
    return params


# ----------------------------- main ------------------------------------------

if __name__ == "__main__":
    # Small config consistent with the module: 16x16 image, 4x4 patches -> 16 patches
    B, C, IMG, PS = 2, 3, 16, 4
    EMBED, DEPTH, HEADS, MLP_RATIO = 32, 2, 4, 4.0
    PRED_DIM = 16
    NUM_PATCHES = (IMG // PS) ** 2

    root = jax.random.PRNGKey(0)
    k_params, k_img, k_mask = jax.random.split(root, 3)

    params = init_params(k_params, img_size=IMG, patch_size=PS, in_chans=C,
                         embed_dim=EMBED, depth=DEPTH, num_heads=HEADS,
                         mlp_ratio=MLP_RATIO, predict_feature_dim=PRED_DIM)

    image = jax.random.normal(k_img, (B, C, IMG, IMG), jnp.float32)   # NCHW like PyTorch
    bool_masked_pos = jax.random.bernoulli(k_mask, 0.5, (B, NUM_PATCHES))
    # guarantee at least one masked patch
    bool_masked_pos = bool_masked_pos.at[0, 0].set(True)

    out = vit_mim_forward(params, image, bool_masked_pos,
                          patch_size=PS, num_heads=HEADS)
    jax.block_until_ready(out)

    num_masked = int(jnp.sum(bool_masked_pos))
    assert out.shape == (num_masked, PRED_DIM), (out.shape, num_masked)
    assert bool(jnp.all(jnp.isfinite(out)))
    print("KERNEL_OK")
</pallas_src>

<mosaic_0001>
module attributes {stable_mosaic.version = 11 : i64} {
  func.func @kernel(%arg0: i32, %arg1: i32, %arg2: i32, %arg3: memref<32x48xbf16, #tpu.memory_space<vmem>>, %arg4: memref<48x32xbf16, #tpu.memory_space<vmem>>, %arg5: memref<1x32xf32, #tpu.memory_space<vmem>>, %arg6: memref<32x32xbf16, #tpu.memory_space<vmem>>, %arg7: memref<32x32xf32, #tpu.memory_space<vmem>>) attributes {dimension_semantics = [#tpu.dimension_semantics<parallel>, #tpu.dimension_semantics<parallel>, #tpu.dimension_semantics<arbitrary>], iteration_bounds = array<i64: 1, 1, 1>, scalar_prefetch = 0 : i64, scratch_operands = 1 : i64, tpu.core_type = #tpu.core_type<tc>, window_params = [{transform_indices = @transform_0, window_bounds = array<i64: 32, 48>}, {transform_indices = @transform_1, window_bounds = array<i64: 48, 32>}, {transform_indices = @transform_2, window_bounds = array<i64: 1, 32>}, {transform_indices = @transform_3, window_bounds = array<i64: 32, 32>}]} {
    %c0_i32 = arith.constant 0 : i32
    %0 = arith.cmpi eq, %arg2, %c0_i32 : i32
    %1 = arith.extui %0 : i1 to i32
    %c0_i32_0 = arith.constant 0 : i32
    %2 = arith.cmpi ne, %1, %c0_i32_0 : i32
    scf.if %2 {
      %cst_10 = arith.constant 0.000000e+00 : f32
      %12 = vector.broadcast %cst_10 : f32 to vector<32x32xf32>
      %c0_11 = arith.constant 0 : index
      %c0_12 = arith.constant 0 : index
      %13 = vector.load %arg7[%c0_11, %c0_12] : memref<32x32xf32, #tpu.memory_space<vmem>>, vector<32x32xf32>
      tpu.vector_store %arg7[%c0_11, %c0_12], %12 {strides = array<i32>} : memref<32x32xf32, #tpu.memory_space<vmem>>, vector<32x32xf32>,
    } else {
    }
    %c0 = arith.constant 0 : index
    %c0_1 = arith.constant 0 : index
    %3 = vector.load %arg3[%c0, %c0_1] : memref<32x48xbf16, #tpu.memory_space<vmem>>, vector<32x48xbf16>
    %c0_2 = arith.constant 0 : index
    %c0_3 = arith.constant 0 : index
    %4 = vector.load %arg7[%c0_2, %c0_3] : memref<32x32xf32, #tpu.memory_space<vmem>>, vector<32x32xf32>
    %c0_4 = arith.constant 0 : index
    %c0_5 = arith.constant 0 : index
    %5 = vector.load %arg4[%c0_4, %c0_5] : memref<48x32xbf16, #tpu.memory_space<vmem>>, vector<48x32xbf16>
    %cst = arith.constant dense<0.000000e+00> : vector<32x32xf32>
    %6 = tpu.matmul %3, %5, %cst {dimension_numbers = #tpu.dot_dimension_numbers<[1], [0], [0], [1], [0, 0, 1, 1], [], []>} : vector<32x48xbf16>, vector<48x32xbf16>, vector<32x32xf32> -> vector<32x32xf32>
    %7 = arith.addf %4, %6 : vector<32x32xf32>
    %c0_6 = arith.constant 0 : index
    %c0_7 = arith.constant 0 : index
    %8 = vector.load %arg7[%c0_6, %c0_7] : memref<32x32xf32, #tpu.memory_space<vmem>>, vector<32x32xf32>
    tpu.vector_store %arg7[%c0_6, %c0_7], %7 {strides = array<i32>} : memref<32x32xf32, #tpu.memory_space<vmem>>, vector<32x32xf32>,
    %c0_i32_8 = arith.constant 0 : i32
    %9 = arith.cmpi eq, %arg2, %c0_i32_8 : i32
    %10 = arith.extui %9 : i1 to i32
    %c0_i32_9 = arith.constant 0 : i32
    %11 = arith.cmpi ne, %10, %c0_i32_9 : i32
    scf.if %11 {
      %c0_10 = arith.constant 0 : index
      %c0_11 = arith.constant 0 : index
      %12 = vector.load %arg7[%c0_10, %c0_11] : memref<32x32xf32, #tpu.memory_space<vmem>>, vector<32x32xf32>
      %c0_12 = arith.constant 0 : index
      %c0_13 = arith.constant 0 : index
      %13 = vector.load %arg5[%c0_12, %c0_13] : memref<1x32xf32, #tpu.memory_space<vmem>>, vector<1x32xf32>
      %14 = vector.broadcast %13 : vector<1x32xf32> to vector<32x32xf32>
      %15 = arith.addf %12, %14 : vector<32x32xf32>
      %16 = arith.truncf %15 : vector<32x32xf32> to vector<32x32xbf16>
      %c0_14 = arith.constant 0 : index
      %c0_15 = arith.constant 0 : index
      %17 = vector.load %arg6[%c0_14, %c0_15] : memref<32x32xbf16, #tpu.memory_space<vmem>>, vector<32x32xbf16>
      tpu.vector_store %arg6[%c0_14, %c0_15], %16 {strides = array<i32>} : memref<32x32xbf16, #tpu.memory_space<vmem>>, vector<32x32xbf16>,
    } else {
    }
    return
  }
  func.func @transform_0(%arg0: i32, %arg1: i32, %arg2: i32) -> (i32, i32) {
    %c0_i32 = arith.constant 0 : i32
    return %arg0, %arg2 : i32, i32
  }
  func.func @transform_1(%arg0: i32, %arg1: i32, %arg2: i32) -> (i32, i32) {
    %c0_i32 = arith.constant 0 : i32
    return %arg2, %arg1 : i32, i32
  }
  func.func @transform_2(%arg0: i32, %arg1: i32, %arg2: i32) -> (i32, i32) {
    %c0_i32 = arith.constant 0 : i32
    %c0_i32_0 = arith.constant 0 : i32
    return %c0_i32, %arg1 : i32, i32
  }
  func.func @transform_3(%arg0: i32, %arg1: i32, %arg2: i32) -> (i32, i32) {
    %c0_i32 = arith.constant 0 : i32
    return %arg0, %arg1 : i32, i32
  }
}

module attributes {stable_mosaic.version = 11 : i64} {
  func.func @kernel(%arg0: i32, %arg1: i32, %arg2: i32, %arg3: memref<34x32xbf16, #tpu.memory_space<vmem>>, %arg4: memref<32x96xbf16, #tpu.memory_space<vmem>>, %arg5: memref<1x96xf32, #tpu.memory_space<vmem>>, %arg6: memref<1x32xf32, #tpu.memory_space<vmem>>, %arg7: memref<1x32xf32, #tpu.memory_space<vmem>>, %arg8: memref<34x96xbf16, #tpu.memory_space<vmem>>, %arg9: memref<34x96xf32, #tpu.memory_space<vmem>>) attributes {dimension_semantics = [#tpu.dimension_semantics<parallel>, #tpu.dimension_semantics<parallel>, #tpu.dimension_semantics<arbitrary>], iteration_bounds = array<i64: 1, 1, 1>, scalar_prefetch = 0 : i64, scratch_operands = 1 : i64, tpu.core_type = #tpu.core_type<tc>, window_params = [{transform_indices = @transform_0, window_bounds = array<i64: 34, 32>}, {transform_indices = @transform_1, window_bounds = array<i64: 32, 96>}, {transform_indices = @transform_2, window_bounds = array<i64: 1, 96>}, {pipeline_mode = #tpu.pipeline_mode<synchronous>, transform_indices = @transform_3, window_bounds = array<i64: 1, 32>}, {pipeline_mode = #tpu.pipeline_mode<synchronous>, transform_indices = @transform_4, window_bounds = array<i64: 1, 32>}, {transform_indices = @transform_5, window_bounds = array<i64: 34, 96>}]} {
    %c0_i32 = arith.constant 0 : i32
    %0 = arith.cmpi eq, %arg2, %c0_i32 : i32
    %1 = arith.extui %0 : i1 to i32
    %c0_i32_0 = arith.constant 0 : i32
    %2 = arith.cmpi ne, %1, %c0_i32_0 : i32
    scf.if %2 {
      %cst_19 = arith.constant 0.000000e+00 : f32
      %38 = vector.broadcast %cst_19 : f32 to vector<34x96xf32>
      %c0_20 = arith.constant 0 : index
      %c0_21 = arith.constant 0 : index
      %39 = vector.load %arg9[%c0_20, %c0_21] : memref<34x96xf32, #tpu.memory_space<vmem>>, vector<34x96xf32>
      tpu.vector_store %arg9[%c0_20, %c0_21], %38 {strides = array<i32>} : memref<34x96xf32, #tpu.memory_space<vmem>>, vector<34x96xf32>,
    } else {
    }
    %c0 = arith.constant 0 : index
    %c0_1 = arith.constant 0 : index
    %3 = vector.load %arg3[%c0, %c0_1] : memref<34x32xbf16, #tpu.memory_space<vmem>>, vector<34x32xbf16>
    %4 = arith.extf %3 : vector<34x32xbf16> to vector<34x32xf32>
    %cst = arith.constant dense<0.000000e+00> : vector<34xf32>
    %5 = vector.multi_reduction <add>, %4, %cst [1] : vector<34x32xf32> to vector<34xf32>
    %6 = vector.shape_cast %5 : vector<34xf32> to vector<34x1xf32>
    %cst_2 = arith.constant 3.200000e+01 : f32
    %7 = vector.broadcast %cst_2 : f32 to vector<34x1xf32>
    %8 = arith.divf %6, %7 : vector<34x1xf32>
    %9 = vector.broadcast %8 : vector<34x1xf32> to vector<34x32xf32>
    %10 = arith.subf %4, %9 : vector<34x32xf32>
    %11 = arith.mulf %10, %10 : vector<34x32xf32>
    %cst_3 = arith.constant dense<0.000000e+00> : vector<34xf32>
    %12 = vector.multi_reduction <add>, %11, %cst_3 [1] : vector<34x32xf32> to vector<34xf32>
    %13 = vector.shape_cast %12 : vector<34xf32> to vector<34x1xf32>
    %cst_4 = arith.constant 3.200000e+01 : f32
    %14 = vector.broadcast %cst_4 : f32 to vector<34x1xf32>
    %15 = arith.divf %13, %14 : vector<34x1xf32>
    %16 = vector.broadcast %8 : vector<34x1xf32> to vector<34x32xf32>
    %17 = arith.subf %4, %16 : vector<34x32xf32>
    %cst_5 = arith.constant 9.99999997E-7 : f32
    %18 = vector.broadcast %cst_5 : f32 to vector<34x1xf32>
    %19 = arith.addf %15, %18 : vector<34x1xf32>
    %20 = math.rsqrt %19 : vector<34x1xf32>
    %21 = vector.broadcast %20 : vector<34x1xf32> to vector<34x32xf32>
    %22 = arith.mulf %17, %21 : vector<34x32xf32>
    %c0_6 = arith.constant 0 : index
    %c0_7 = arith.constant 0 : index
    %23 = vector.load %arg6[%c0_6, %c0_7] : memref<1x32xf32, #tpu.memory_space<vmem>>, vector<1x32xf32>
    %24 = vector.broadcast %23 : vector<1x32xf32> to vector<34x32xf32>
    %25 = arith.mulf %22, %24 : vector<34x32xf32>
    %c0_8 = arith.constant 0 : index
    %c0_9 = arith.constant 0 : index
    %26 = vector.load %arg7[%c0_8, %c0_9] : memref<1x32xf32, #tpu.memory_space<vmem>>, vector<1x32xf32>
    %27 = vector.broadcast %26 : vector<1x32xf32> to vector<34x32xf32>
    %28 = arith.addf %25, %27 : vector<34x32xf32>
    %29 = arith.truncf %28 : vector<34x32xf32> to vector<34x32xbf16>
    %c0_10 = arith.constant 0 : index
    %c0_11 = arith.constant 0 : index
    %30 = vector.load %arg9[%c0_10, %c0_11] : memref<34x96xf32, #tpu.memory_space<vmem>>, vector<34x96xf32>
    %c0_12 = arith.constant 0 : index
    %c0_13 = arith.constant 0 : index
    %31 = vector.load %arg4[%c0_12, %c0_13] : memref<32x96xbf16, #tpu.memory_space<vmem>>, vector<32x96xbf16>
    %cst_14 = arith.constant dense<0.000000e+00> : vector<34x96xf32>
    %32 = tpu.matmul %29, %31, %cst_14 {dimension_numbers = #tpu.dot_dimension_numbers<[1], [0], [0], [1], [0, 0, 1, 1], [], []>} : vector<34x32xbf16>, vector<32x96xbf16>, vector<34x96xf32> -> vector<34x96xf32>
    %33 = arith.addf %30, %32 : vector<34x96xf32>
    %c0_15 = arith.constant 0 : index
    %c0_16 = arith.constant 0 : index
    %34 = vector.load %arg9[%c0_15, %c0_16] : memref<34x96xf32, #tpu.memory_space<vmem>>, vector<34x96xf32>
    tpu.vector_store %arg9[%c0_15, %c0_16], %33 {strides = array<i32>} : memref<34x96xf32, #tpu.memory_space<vmem>>, vector<34x96xf32>,
    %c0_i32_17 = arith.constant 0 : i32
    %35 = arith.cmpi eq, %arg2, %c0_i32_17 : i32
    %36 = arith.extui %35 : i1 to i32
    %c0_i32_18 = arith.constant 0 : i32
    %37 = arith.cmpi ne, %36, %c0_i32_18 : i32
    scf.if %37 {
      %c0_19 = arith.constant 0 : index
      %c0_20 = arith.constant 0 : index
      %38 = vector.load %arg9[%c0_19, %c0_20] : memref<34x96xf32, #tpu.memory_space<vmem>>, vector<34x96xf32>
      %c0_21 = arith.constant 0 : index
      %c0_22 = arith.constant 0 : index
      %39 = vector.load %arg5[%c0_21, %c0_22] : memref<1x96xf32, #tpu.memory_space<vmem>>, vector<1x96xf32>
      %40 = vector.broadcast %39 : vector<1x96xf32> to vector<34x96xf32>
      %41 = arith.addf %38, %40 : vector<34x96xf32>
      %42 = arith.truncf %41 : vector<34x96xf32> to vector<34x96xbf16>
      %c0_23 = arith.constant 0 : index
      %c0_24 = arith.constant 0 : index
      %43 = vector.load %arg8[%c0_23, %c0_24] : memref<34x96xbf16, #tpu.memory_space<vmem>>, vector<34x96xbf16>
      tpu.vector_store %arg8[%c0_23, %c0_24], %42 {strides = array<i32>} : memref<34x96xbf16, #tpu.memory_space<vmem>>, vector<34x96xbf16>,
    } else {
    }
    return
  }
  func.func @transform_0(%arg0: i32, %arg1: i32, %arg2: i32) -> (i32, i32) {
    %c0_i32 = arith.constant 0 : i32
    return %arg0, %arg2 : i32, i32
  }
  func.func @transform_1(%arg0: i32, %arg1: i32, %arg2: i32) -> (i32, i32) {
    %c0_i32 = arith.constant 0 : i32
    return %arg2, %arg1 : i32, i32
  }
  func.func @transform_2(%arg0: i32, %arg1: i32, %arg2: i32) -> (i32, i32) {
    %c0_i32 = arith.constant 0 : i32
    %c0_i32_0 = arith.constant 0 : i32
    return %c0_i32, %arg1 : i32, i32
  }
  func.func @transform_3(%arg0: i32, %arg1: i32, %arg2: i32) -> (i32, i32) {
    %c0_i32 = arith.constant 0 : i32
    %c0_i32_0 = arith.constant 0 : i32
    %c0_i32_1 = arith.constant 0 : i32
    return %c0_i32, %c0_i32_0 : i32, i32
  }
  func.func @transform_4(%arg0: i32, %arg1: i32, %arg2: i32) -> (i32, i32) {
    %c0_i32 = arith.constant 0 : i32
    %c0_i32_0 = arith.constant 0 : i32
    %c0_i32_1 = arith.constant 0 : i32
    return %c0_i32, %c0_i32_0 : i32, i32
  }
  func.func @transform_5(%arg0: i32, %arg1: i32, %arg2: i32) -> (i32, i32) {
    %c0_i32 = arith.constant 0 : i32
    return %arg0, %arg1 : i32, i32
  }
}

module attributes {stable_mosaic.version = 11 : i64} {
  func.func @_attn_kernel(%arg0: i32, %arg1: memref<8x17x8xbf16, #tpu.memory_space<vmem>>, %arg2: memref<8x17x8xbf16, #tpu.memory_space<vmem>>, %arg3: memref<8x17x8xbf16, #tpu.memory_space<vmem>>, %arg4: memref<8x17x8xbf16, #tpu.memory_space<vmem>>) attributes {dimension_semantics = [#tpu.dimension_semantics<parallel>], iteration_bounds = array<i64: 1>, scalar_prefetch = 0 : i64, scratch_operands = 0 : i64, tpu.core_type = #tpu.core_type<tc>, window_params = [{transform_indices = @transform_0, window_bounds = array<i64: 8, 17, 8>}, {transform_indices = @transform_1, window_bounds = array<i64: 8, 17, 8>}, {transform_indices = @transform_2, window_bounds = array<i64: 8, 17, 8>}, {transform_indices = @transform_3, window_bounds = array<i64: 8, 17, 8>}]} {
    %c0 = arith.constant 0 : index
    %c0_0 = arith.constant 0 : index
    %c0_1 = arith.constant 0 : index
    %0 = vector.load %arg1[%c0, %c0_0, %c0_1] : memref<8x17x8xbf16, #tpu.memory_space<vmem>>, vector<8x17x8xbf16>
    %c0_2 = arith.constant 0 : index
    %c0_3 = arith.constant 0 : index
    %c0_4 = arith.constant 0 : index
    %1 = vector.load %arg2[%c0_2, %c0_3, %c0_4] : memref<8x17x8xbf16, #tpu.memory_space<vmem>>, vector<8x17x8xbf16>
    %c0_5 = arith.constant 0 : index
    %c0_6 = arith.constant 0 : index
    %c0_7 = arith.constant 0 : index
    %2 = vector.load %arg3[%c0_5, %c0_6, %c0_7] : memref<8x17x8xbf16, #tpu.memory_space<vmem>>, vector<8x17x8xbf16>
    "tpu.trace_start"() <{level = 10 : i32, message = "hqd,hkd->hqk"}> : () -> ()
    %cst = arith.constant dense<0.000000e+00> : vector<8x17x17xf32>
    %3 = tpu.matmul %0, %1, %cst {dimension_numbers = #tpu.dot_dimension_numbers<[2], [2], [1], [1], [0, 0, 0, 1, 1, 1], [0], [0]>} : vector<8x17x8xbf16>, vector<8x17x8xbf16>, vector<8x17x17xf32> -> vector<8x17x17xf32>
    "tpu.trace_stop"() : () -> ()
    %cst_8 = arith.constant 0.353553385 : f32
    %4 = vector.broadcast %cst_8 : f32 to vector<8x17x17xf32>
    %5 = arith.mulf %3, %4 : vector<8x17x17xf32>
    %cst_9 = arith.constant dense<0xFF800000> : vector<8x17xf32>
    %6 = vector.multi_reduction <maximumf>, %5, %cst_9 [2] : vector<8x17x17xf32> to vector<8x17xf32>
    %7 = vector.shape_cast %6 : vector<8x17xf32> to vector<8x17x1xf32>
    %8 = vector.broadcast %7 : vector<8x17x1xf32> to vector<8x17x17xf32>
    %9 = arith.subf %5, %8 : vector<8x17x17xf32>
    %10 = math.exp %9 : vector<8x17x17xf32>
    %cst_10 = arith.constant dense<0.000000e+00> : vector<8x17xf32>
    %11 = vector.multi_reduction <add>, %10, %cst_10 [2] : vector<8x17x17xf32> to vector<8x17xf32>
    %12 = vector.shape_cast %11 : vector<8x17xf32> to vector<8x17x1xf32>
    %13 = arith.truncf %10 : vector<8x17x17xf32> to vector<8x17x17xbf16>
    "tpu.trace_start"() <{level = 10 : i32, message = "hqk,hkd->hqd"}> : () -> ()
    %cst_11 = arith.constant dense<0.000000e+00> : vector<8x17x8xf32>
    %14 = tpu.matmul %13, %2, %cst_11 {dimension_numbers = #tpu.dot_dimension_numbers<[2], [1], [1], [2], [0, 0, 0, 1, 1, 2], [0], [0]>} : vector<8x17x17xbf16>, vector<8x17x8xbf16>, vector<8x17x8xf32> -> vector<8x17x8xf32>
    "tpu.trace_stop"() : () -> ()
    %15 = tpu.reciprocal %12 {approx = true} : vector<8x17x1xf32> -> vector<8x17x1xf32>
    %16 = vector.broadcast %15 : vector<8x17x1xf32> to vector<8x17x8xf32>
    %17 = arith.mulf %14, %16 : vector<8x17x8xf32>
    %18 = arith.truncf %17 : vector<8x17x8xf32> to vector<8x17x8xbf16>
    %c0_12 = arith.constant 0 : index
    %c0_13 = arith.constant 0 : index
    %c0_14 = arith.constant 0 : index
    %19 = vector.load %arg4[%c0_12, %c0_13, %c0_14] : memref<8x17x8xbf16, #tpu.memory_space<vmem>>, vector<8x17x8xbf16>
    tpu.vector_store %arg4[%c0_12, %c0_13, %c0_14], %18 {strides = array<i32>} : memref<8x17x8xbf16, #tpu.memory_space<vmem>>, vector<8x17x8xbf16>,
    return
  }
  func.func @transform_0(%arg0: i32) -> (i32, i32, i32) {
    %c0_i32 = arith.constant 0 : i32
    %c0_i32_0 = arith.constant 0 : i32
    %c0_i32_1 = arith.constant 0 : i32
    return %arg0, %c0_i32, %c0_i32_0 : i32, i32, i32
  }
  func.func @transform_1(%arg0: i32) -> (i32, i32, i32) {
    %c0_i32 = arith.constant 0 : i32
    %c0_i32_0 = arith.constant 0 : i32
    %c0_i32_1 = arith.constant 0 : i32
    return %arg0, %c0_i32, %c0_i32_0 : i32, i32, i32
  }
  func.func @transform_2(%arg0: i32) -> (i32, i32, i32) {
    %c0_i32 = arith.constant 0 : i32
    %c0_i32_0 = arith.constant 0 : i32
    %c0_i32_1 = arith.constant 0 : i32
    return %arg0, %c0_i32, %c0_i32_0 : i32, i32, i32
  }
  func.func @transform_3(%arg0: i32) -> (i32, i32, i32) {
    %c0_i32 = arith.constant 0 : i32
    %c0_i32_0 = arith.constant 0 : i32
    %c0_i32_1 = arith.constant 0 : i32
    return %arg0, %c0_i32, %c0_i32_0 : i32, i32, i32
  }
}

module attributes {stable_mosaic.version = 11 : i64} {
  func.func @kernel(%arg0: i32, %arg1: i32, %arg2: i32, %arg3: memref<34x32xbf16, #tpu.memory_space<vmem>>, %arg4: memref<32x32xbf16, #tpu.memory_space<vmem>>, %arg5: memref<1x32xf32, #tpu.memory_space<vmem>>, %arg6: memref<34x32xbf16, #tpu.memory_space<vmem>>, %arg7: memref<34x32xbf16, #tpu.memory_space<vmem>>, %arg8: memref<34x32xf32, #tpu.memory_space<vmem>>) attributes {dimension_semantics = [#tpu.dimension_semantics<parallel>, #tpu.dimension_semantics<parallel>, #tpu.dimension_semantics<arbitrary>], iteration_bounds = array<i64: 1, 1, 1>, scalar_prefetch = 0 : i64, scratch_operands = 1 : i64, tpu.core_type = #tpu.core_type<tc>, window_params = [{transform_indices = @transform_0, window_bounds = array<i64: 34, 32>}, {transform_indices = @transform_1, window_bounds = array<i64: 32, 32>}, {transform_indices = @transform_2, window_bounds = array<i64: 1, 32>}, {transform_indices = @transform_3, window_bounds = array<i64: 34, 32>}, {transform_indices = @transform_4, window_bounds = array<i64: 34, 32>}]} {
    %c0_i32 = arith.constant 0 : i32
    %0 = arith.cmpi eq, %arg2, %c0_i32 : i32
    %1 = arith.extui %0 : i1 to i32
    %c0_i32_0 = arith.constant 0 : i32
    %2 = arith.cmpi ne, %1, %c0_i32_0 : i32
    scf.if %2 {
      %cst_10 = arith.constant 0.000000e+00 : f32
      %12 = vector.broadcast %cst_10 : f32 to vector<34x32xf32>
      %c0_11 = arith.constant 0 : index
      %c0_12 = arith.constant 0 : index
      %13 = vector.load %arg8[%c0_11, %c0_12] : memref<34x32xf32, #tpu.memory_space<vmem>>, vector<34x32xf32>
      tpu.vector_store %arg8[%c0_11, %c0_12], %12 {strides = array<i32>} : memref<34x32xf32, #tpu.memory_space<vmem>>, vector<34x32xf32>,
    } else {
    }
    %c0 = arith.constant 0 : index
    %c0_1 = arith.constant 0 : index
    %3 = vector.load %arg3[%c0, %c0_1] : memref<34x32xbf16, #tpu.memory_space<vmem>>, vector<34x32xbf16>
    %c0_2 = arith.constant 0 : index
    %c0_3 = arith.constant 0 : index
    %4 = vector.load %arg8[%c0_2, %c0_3] : memref<34x32xf32, #tpu.memory_space<vmem>>, vector<34x32xf32>
    %c0_4 = arith.constant 0 : index
    %c0_5 = arith.constant 0 : index
    %5 = vector.load %arg4[%c0_4, %c0_5] : memref<32x32xbf16, #tpu.memory_space<vmem>>, vector<32x32xbf16>
    %cst = arith.constant dense<0.000000e+00> : vector<34x32xf32>
    %6 = tpu.matmul %3, %5, %cst {dimension_numbers = #tpu.dot_dimension_numbers<[1], [0], [0], [1], [0, 0, 1, 1], [], []>} : vector<34x32xbf16>, vector<32x32xbf16>, vector<34x32xf32> -> vector<34x32xf32>
    %7 = arith.addf %4, %6 : vector<34x32xf32>
    %c0_6 = arith.constant 0 : index
    %c0_7 = arith.constant 0 : index
    %8 = vector.load %arg8[%c0_6, %c0_7] : memref<34x32xf32, #tpu.memory_space<vmem>>, vector<34x32xf32>
    tpu.vector_store %arg8[%c0_6, %c0_7], %7 {strides = array<i32>} : memref<34x32xf32, #tpu.memory_space<vmem>>, vector<34x32xf32>,
    %c0_i32_8 = arith.constant 0 : i32
    %9 = arith.cmpi eq, %arg2, %c0_i32_8 : i32
    %10 = arith.extui %9 : i1 to i32
    %c0_i32_9 = arith.constant 0 : i32
    %11 = arith.cmpi ne, %10, %c0_i32_9 : i32
    scf.if %11 {
      %c0_10 = arith.constant 0 : index
      %c0_11 = arith.constant 0 : index
      %12 = vector.load %arg8[%c0_10, %c0_11] : memref<34x32xf32, #tpu.memory_space<vmem>>, vector<34x32xf32>
      %c0_12 = arith.constant 0 : index
      %c0_13 = arith.constant 0 : index
      %13 = vector.load %arg5[%c0_12, %c0_13] : memref<1x32xf32, #tpu.memory_space<vmem>>, vector<1x32xf32>
      %14 = vector.broadcast %13 : vector<1x32xf32> to vector<34x32xf32>
      %15 = arith.addf %12, %14 : vector<34x32xf32>
      %c0_14 = arith.constant 0 : index
      %c0_15 = arith.constant 0 : index
      %16 = vector.load %arg6[%c0_14, %c0_15] : memref<34x32xbf16, #tpu.memory_space<vmem>>, vector<34x32xbf16>
      %17 = arith.extf %16 : vector<34x32xbf16> to vector<34x32xf32>
      %18 = arith.addf %15, %17 : vector<34x32xf32>
      %19 = arith.truncf %18 : vector<34x32xf32> to vector<34x32xbf16>
      %c0_16 = arith.constant 0 : index
      %c0_17 = arith.constant 0 : index
      %20 = vector.load %arg7[%c0_16, %c0_17] : memref<34x32xbf16, #tpu.memory_space<vmem>>, vector<34x32xbf16>
      tpu.vector_store %arg7[%c0_16, %c0_17], %19 {strides = array<i32>} : memref<34x32xbf16, #tpu.memory_space<vmem>>, vector<34x32xbf16>,
    } else {
    }
    return
  }
  func.func @transform_0(%arg0: i32, %arg1: i32, %arg2: i32) -> (i32, i32) {
    %c0_i32 = arith.constant 0 : i32
    return %arg0, %arg2 : i32, i32
  }
  func.func @transform_1(%arg0: i32, %arg1: i32, %arg2: i32) -> (i32, i32) {
    %c0_i32 = arith.constant 0 : i32
    return %arg2, %arg1 : i32, i32
  }
  func.func @transform_2(%arg0: i32, %arg1: i32, %arg2: i32) -> (i32, i32) {
    %c0_i32 = arith.constant 0 : i32
    %c0_i32_0 = arith.constant 0 : i32
    return %c0_i32, %arg1 : i32, i32
  }
  func.func @transform_3(%arg0: i32, %arg1: i32, %arg2: i32) -> (i32, i32) {
    %c0_i32 = arith.constant 0 : i32
    return %arg0, %arg1 : i32, i32
  }
  func.func @transform_4(%arg0: i32, %arg1: i32, %arg2: i32) -> (i32, i32) {
    %c0_i32 = arith.constant 0 : i32
    return %arg0, %arg1 : i32, i32
  }
}

module attributes {stable_mosaic.version = 11 : i64} {
  func.func @kernel(%arg0: i32, %arg1: i32, %arg2: i32, %arg3: memref<34x32xbf16, #tpu.memory_space<vmem>>, %arg4: memref<32x128xbf16, #tpu.memory_space<vmem>>, %arg5: memref<1x128xf32, #tpu.memory_space<vmem>>, %arg6: memref<1x32xf32, #tpu.memory_space<vmem>>, %arg7: memref<1x32xf32, #tpu.memory_space<vmem>>, %arg8: memref<34x128xbf16, #tpu.memory_space<vmem>>, %arg9: memref<34x128xf32, #tpu.memory_space<vmem>>) attributes {dimension_semantics = [#tpu.dimension_semantics<parallel>, #tpu.dimension_semantics<parallel>, #tpu.dimension_semantics<arbitrary>], iteration_bounds = array<i64: 1, 1, 1>, scalar_prefetch = 0 : i64, scratch_operands = 1 : i64, tpu.core_type = #tpu.core_type<tc>, window_params = [{transform_indices = @transform_0, window_bounds = array<i64: 34, 32>}, {transform_indices = @transform_1, window_bounds = array<i64: 32, 128>}, {transform_indices = @transform_2, window_bounds = array<i64: 1, 128>}, {pipeline_mode = #tpu.pipeline_mode<synchronous>, transform_indices = @transform_3, window_bounds = array<i64: 1, 32>}, {pipeline_mode = #tpu.pipeline_mode<synchronous>, transform_indices = @transform_4, window_bounds = array<i64: 1, 32>}, {transform_indices = @transform_5, window_bounds = array<i64: 34, 128>}]} {
    %c0_i32 = arith.constant 0 : i32
    %0 = arith.cmpi eq, %arg2, %c0_i32 : i32
    %1 = arith.extui %0 : i1 to i32
    %c0_i32_0 = arith.constant 0 : i32
    %2 = arith.cmpi ne, %1, %c0_i32_0 : i32
    scf.if %2 {
      %cst_19 = arith.constant 0.000000e+00 : f32
      %38 = vector.broadcast %cst_19 : f32 to vector<34x128xf32>
      %c0_20 = arith.constant 0 : index
      %c0_21 = arith.constant 0 : index
      %39 = vector.load %arg9[%c0_20, %c0_21] : memref<34x128xf32, #tpu.memory_space<vmem>>, vector<34x128xf32>
      tpu.vector_store %arg9[%c0_20, %c0_21], %38 {strides = array<i32>} : memref<34x128xf32, #tpu.memory_space<vmem>>, vector<34x128xf32>,
    } else {
    }
    %c0 = arith.constant 0 : index
    %c0_1 = arith.constant 0 : index
    %3 = vector.load %arg3[%c0, %c0_1] : memref<34x32xbf16, #tpu.memory_space<vmem>>, vector<34x32xbf16>
    %4 = arith.extf %3 : vector<34x32xbf16> to vector<34x32xf32>
    %cst = arith.constant dense<0.000000e+00> : vector<34xf32>
    %5 = vector.multi_reduction <add>, %4, %cst [1] : vector<34x32xf32> to vector<34xf32>
    %6 = vector.shape_cast %5 : vector<34xf32> to vector<34x1xf32>
    %cst_2 = arith.constant 3.200000e+01 : f32
    %7 = vector.broadcast %cst_2 : f32 to vector<34x1xf32>
    %8 = arith.divf %6, %7 : vector<34x1xf32>
    %9 = vector.broadcast %8 : vector<34x1xf32> to vector<34x32xf32>
    %10 = arith.subf %4, %9 : vector<34x32xf32>
    %11 = arith.mulf %10, %10 : vector<34x32xf32>
    %cst_3 = arith.constant dense<0.000000e+00> : vector<34xf32>
    %12 = vector.multi_reduction <add>, %11, %cst_3 [1] : vector<34x32xf32> to vector<34xf32>
    %13 = vector.shape_cast %12 : vector<34xf32> to vector<34x1xf32>
    %cst_4 = arith.constant 3.200000e+01 : f32
    %14 = vector.broadcast %cst_4 : f32 to vector<34x1xf32>
    %15 = arith.divf %13, %14 : vector<34x1xf32>
    %16 = vector.broadcast %8 : vector<34x1xf32> to vector<34x32xf32>
    %17 = arith.subf %4, %16 : vector<34x32xf32>
    %cst_5 = arith.constant 9.99999997E-7 : f32
    %18 = vector.broadcast %cst_5 : f32 to vector<34x1xf32>
    %19 = arith.addf %15, %18 : vector<34x1xf32>
    %20 = math.rsqrt %19 : vector<34x1xf32>
    %21 = vector.broadcast %20 : vector<34x1xf32> to vector<34x32xf32>
    %22 = arith.mulf %17, %21 : vector<34x32xf32>
    %c0_6 = arith.constant 0 : index
    %c0_7 = arith.constant 0 : index
    %23 = vector.load %arg6[%c0_6, %c0_7] : memref<1x32xf32, #tpu.memory_space<vmem>>, vector<1x32xf32>
    %24 = vector.broadcast %23 : vector<1x32xf32> to vector<34x32xf32>
    %25 = arith.mulf %22, %24 : vector<34x32xf32>
    %c0_8 = arith.constant 0 : index
    %c0_9 = arith.constant 0 : index
    %26 = vector.load %arg7[%c0_8, %c0_9] : memref<1x32xf32, #tpu.memory_space<vmem>>, vector<1x32xf32>
    %27 = vector.broadcast %26 : vector<1x32xf32> to vector<34x32xf32>
    %28 = arith.addf %25, %27 : vector<34x32xf32>
    %29 = arith.truncf %28 : vector<34x32xf32> to vector<34x32xbf16>
    %c0_10 = arith.constant 0 : index
    %c0_11 = arith.constant 0 : index
    %30 = vector.load %arg9[%c0_10, %c0_11] : memref<34x128xf32, #tpu.memory_space<vmem>>, vector<34x128xf32>
    %c0_12 = arith.constant 0 : index
    %c0_13 = arith.constant 0 : index
    %31 = vector.load %arg4[%c0_12, %c0_13] : memref<32x128xbf16, #tpu.memory_space<vmem>>, vector<32x128xbf16>
    %cst_14 = arith.constant dense<0.000000e+00> : vector<34x128xf32>
    %32 = tpu.matmul %29, %31, %cst_14 {dimension_numbers = #tpu.dot_dimension_numbers<[1], [0], [0], [1], [0, 0, 1, 1], [], []>} : vector<34x32xbf16>, vector<32x128xbf16>, vector<34x128xf32> -> vector<34x128xf32>
    %33 = arith.addf %30, %32 : vector<34x128xf32>
    %c0_15 = arith.constant 0 : index
    %c0_16 = arith.constant 0 : index
    %34 = vector.load %arg9[%c0_15, %c0_16] : memref<34x128xf32, #tpu.memory_space<vmem>>, vector<34x128xf32>
    tpu.vector_store %arg9[%c0_15, %c0_16], %33 {strides = array<i32>} : memref<34x128xf32, #tpu.memory_space<vmem>>, vector<34x128xf32>,
    %c0_i32_17 = arith.constant 0 : i32
    %35 = arith.cmpi eq, %arg2, %c0_i32_17 : i32
    %36 = arith.extui %35 : i1 to i32
    %c0_i32_18 = arith.constant 0 : i32
    %37 = arith.cmpi ne, %36, %c0_i32_18 : i32
    scf.if %37 {
      %c0_19 = arith.constant 0 : index
      %c0_20 = arith.constant 0 : index
      %38 = vector.load %arg9[%c0_19, %c0_20] : memref<34x128xf32, #tpu.memory_space<vmem>>, vector<34x128xf32>
      %c0_21 = arith.constant 0 : index
      %c0_22 = arith.constant 0 : index
      %39 = vector.load %arg5[%c0_21, %c0_22] : memref<1x128xf32, #tpu.memory_space<vmem>>, vector<1x128xf32>
      %40 = vector.broadcast %39 : vector<1x128xf32> to vector<34x128xf32>
      %41 = arith.addf %38, %40 : vector<34x128xf32>
      %cst_23 = arith.constant 5.000000e-01 : f32
      %42 = vector.broadcast %cst_23 : f32 to vector<34x128xf32>
      %43 = arith.mulf %42, %41 : vector<34x128xf32>
      %cst_24 = arith.constant 0.707106769 : f32
      %44 = vector.broadcast %cst_24 : f32 to vector<34x128xf32>
      %45 = arith.mulf %41, %44 : vector<34x128xf32>
      %46 = math.erf %45 : vector<34x128xf32>
      %cst_25 = arith.constant 1.000000e+00 : f32
      %47 = vector.broadcast %cst_25 : f32 to vector<34x128xf32>
      %48 = arith.addf %47, %46 : vector<34x128xf32>
      %49 = arith.mulf %43, %48 : vector<34x128xf32>
      %50 = arith.truncf %49 : vector<34x128xf32> to vector<34x128xbf16>
      %c0_26 = arith.constant 0 : index
      %c0_27 = arith.constant 0 : index
      %51 = vector.load %arg8[%c0_26, %c0_27] : memref<34x128xbf16, #tpu.memory_space<vmem>>, vector<34x128xbf16>
      tpu.vector_store %arg8[%c0_26, %c0_27], %50 {strides = array<i32>} : memref<34x128xbf16, #tpu.memory_space<vmem>>, vector<34x128xbf16>,
    } else {
    }
    return
  }
  func.func @transform_0(%arg0: i32, %arg1: i32, %arg2: i32) -> (i32, i32) {
    %c0_i32 = arith.constant 0 : i32
    return %arg0, %arg2 : i32, i32
  }
  func.func @transform_1(%arg0: i32, %arg1: i32, %arg2: i32) -> (i32, i32) {
    %c0_i32 = arith.constant 0 : i32
    return %arg2, %arg1 : i32, i32
  }
  func.func @transform_2(%arg0: i32, %arg1: i32, %arg2: i32) -> (i32, i32) {
    %c0_i32 = arith.constant 0 : i32
    %c0_i32_0 = arith.constant 0 : i32
    return %c0_i32, %arg1 : i32, i32
  }
  func.func @transform_3(%arg0: i32, %arg1: i32, %arg2: i32) -> (i32, i32) {
    %c0_i32 = arith.constant 0 : i32
    %c0_i32_0 = arith.constant 0 : i32
    %c0_i32_1 = arith.constant 0 : i32
    return %c0_i32, %c0_i32_0 : i32, i32
  }
  func.func @transform_4(%arg0: i32, %arg1: i32, %arg2: i32) -> (i32, i32) {
    %c0_i32 = arith.constant 0 : i32
    %c0_i32_0 = arith.constant 0 : i32
    %c0_i32_1 = arith.constant 0 : i32
    return %c0_i32, %c0_i32_0 : i32, i32
  }
  func.func @transform_5(%arg0: i32, %arg1: i32, %arg2: i32) -> (i32, i32) {
    %c0_i32 = arith.constant 0 : i32
    return %arg0, %arg1 : i32, i32
  }
}

module attributes {stable_mosaic.version = 11 : i64} {
  func.func @kernel(%arg0: i32, %arg1: i32, %arg2: i32, %arg3: memref<34x128xbf16, #tpu.memory_space<vmem>>, %arg4: memref<128x32xbf16, #tpu.memory_space<vmem>>, %arg5: memref<1x32xf32, #tpu.memory_space<vmem>>, %arg6: memref<34x32xbf16, #tpu.memory_space<vmem>>, %arg7: memref<34x32xbf16, #tpu.memory_space<vmem>>, %arg8: memref<34x32xf32, #tpu.memory_space<vmem>>) attributes {dimension_semantics = [#tpu.dimension_semantics<parallel>, #tpu.dimension_semantics<parallel>, #tpu.dimension_semantics<arbitrary>], iteration_bounds = array<i64: 1, 1, 1>, scalar_prefetch = 0 : i64, scratch_operands = 1 : i64, tpu.core_type = #tpu.core_type<tc>, window_params = [{transform_indices = @transform_0, window_bounds = array<i64: 34, 128>}, {transform_indices = @transform_1, window_bounds = array<i64: 128, 32>}, {transform_indices = @transform_2, window_bounds = array<i64: 1, 32>}, {transform_indices = @transform_3, window_bounds = array<i64: 34, 32>}, {transform_indices = @transform_4, window_bounds = array<i64: 34, 32>}]} {
    %c0_i32 = arith.constant 0 : i32
    %0 = arith.cmpi eq, %arg2, %c0_i32 : i32
    %1 = arith.extui %0 : i1 to i32
    %c0_i32_0 = arith.constant 0 : i32
    %2 = arith.cmpi ne, %1, %c0_i32_0 : i32
    scf.if %2 {
      %cst_10 = arith.constant 0.000000e+00 : f32
      %12 = vector.broadcast %cst_10 : f32 to vector<34x32xf32>
      %c0_11 = arith.constant 0 : index
      %c0_12 = arith.constant 0 : index
      %13 = vector.load %arg8[%c0_11, %c0_12] : memref<34x32xf32, #tpu.memory_space<vmem>>, vector<34x32xf32>
      tpu.vector_store %arg8[%c0_11, %c0_12], %12 {strides = array<i32>} : memref<34x32xf32, #tpu.memory_space<vmem>>, vector<34x32xf32>,
    } else {
    }
    %c0 = arith.constant 0 : index
    %c0_1 = arith.constant 0 : index
    %3 = vector.load %arg3[%c0, %c0_1] : memref<34x128xbf16, #tpu.memory_space<vmem>>, vector<34x128xbf16>
    %c0_2 = arith.constant 0 : index
    %c0_3 = arith.constant 0 : index
    %4 = vector.load %arg8[%c0_2, %c0_3] : memref<34x32xf32, #tpu.memory_space<vmem>>, vector<34x32xf32>
    %c0_4 = arith.constant 0 : index
    %c0_5 = arith.constant 0 : index
    %5 = vector.load %arg4[%c0_4, %c0_5] : memref<128x32xbf16, #tpu.memory_space<vmem>>, vector<128x32xbf16>
    %cst = arith.constant dense<0.000000e+00> : vector<34x32xf32>
    %6 = tpu.matmul %3, %5, %cst {dimension_numbers = #tpu.dot_dimension_numbers<[1], [0], [0], [1], [0, 0, 1, 1], [], []>} : vector<34x128xbf16>, vector<128x32xbf16>, vector<34x32xf32> -> vector<34x32xf32>
    %7 = arith.addf %4, %6 : vector<34x32xf32>
    %c0_6 = arith.constant 0 : index
    %c0_7 = arith.constant 0 : index
    %8 = vector.load %arg8[%c0_6, %c0_7] : memref<34x32xf32, #tpu.memory_space<vmem>>, vector<34x32xf32>
    tpu.vector_store %arg8[%c0_6, %c0_7], %7 {strides = array<i32>} : memref<34x32xf32, #tpu.memory_space<vmem>>, vector<34x32xf32>,
    %c0_i32_8 = arith.constant 0 : i32
    %9 = arith.cmpi eq, %arg2, %c0_i32_8 : i32
    %10 = arith.extui %9 : i1 to i32
    %c0_i32_9 = arith.constant 0 : i32
    %11 = arith.cmpi ne, %10, %c0_i32_9 : i32
    scf.if %11 {
      %c0_10 = arith.constant 0 : index
      %c0_11 = arith.constant 0 : index
      %12 = vector.load %arg8[%c0_10, %c0_11] : memref<34x32xf32, #tpu.memory_space<vmem>>, vector<34x32xf32>
      %c0_12 = arith.constant 0 : index
      %c0_13 = arith.constant 0 : index
      %13 = vector.load %arg5[%c0_12, %c0_13] : memref<1x32xf32, #tpu.memory_space<vmem>>, vector<1x32xf32>
      %14 = vector.broadcast %13 : vector<1x32xf32> to vector<34x32xf32>
      %15 = arith.addf %12, %14 : vector<34x32xf32>
      %c0_14 = arith.constant 0 : index
      %c0_15 = arith.constant 0 : index
      %16 = vector.load %arg6[%c0_14, %c0_15] : memref<34x32xbf16, #tpu.memory_space<vmem>>, vector<34x32xbf16>
      %17 = arith.extf %16 : vector<34x32xbf16> to vector<34x32xf32>
      %18 = arith.addf %15, %17 : vector<34x32xf32>
      %19 = arith.truncf %18 : vector<34x32xf32> to vector<34x32xbf16>
      %c0_16 = arith.constant 0 : index
      %c0_17 = arith.constant 0 : index
      %20 = vector.load %arg7[%c0_16, %c0_17] : memref<34x32xbf16, #tpu.memory_space<vmem>>, vector<34x32xbf16>
      tpu.vector_store %arg7[%c0_16, %c0_17], %19 {strides = array<i32>} : memref<34x32xbf16, #tpu.memory_space<vmem>>, vector<34x32xbf16>,
    } else {
    }
    return
  }
  func.func @transform_0(%arg0: i32, %arg1: i32, %arg2: i32) -> (i32, i32) {
    %c0_i32 = arith.constant 0 : i32
    return %arg0, %arg2 : i32, i32
  }
  func.func @transform_1(%arg0: i32, %arg1: i32, %arg2: i32) -> (i32, i32) {
    %c0_i32 = arith.constant 0 : i32
    return %arg2, %arg1 : i32, i32
  }
  func.func @transform_2(%arg0: i32, %arg1: i32, %arg2: i32) -> (i32, i32) {
    %c0_i32 = arith.constant 0 : i32
    %c0_i32_0 = arith.constant 0 : i32
    return %c0_i32, %arg1 : i32, i32
  }
  func.func @transform_3(%arg0: i32, %arg1: i32, %arg2: i32) -> (i32, i32) {
    %c0_i32 = arith.constant 0 : i32
    return %arg0, %arg1 : i32, i32
  }
  func.func @transform_4(%arg0: i32, %arg1: i32, %arg2: i32) -> (i32, i32) {
    %c0_i32 = arith.constant 0 : i32
    return %arg0, %arg1 : i32, i32
  }
}

module attributes {stable_mosaic.version = 11 : i64} {
  func.func @kernel(%arg0: i32, %arg1: i32, %arg2: i32, %arg3: memref<32x32xbf16, #tpu.memory_space<vmem>>, %arg4: memref<32x16xbf16, #tpu.memory_space<vmem>>, %arg5: memref<1x16xf32, #tpu.memory_space<vmem>>, %arg6: memref<1x32xf32, #tpu.memory_space<vmem>>, %arg7: memref<1x32xf32, #tpu.memory_space<vmem>>, %arg8: memref<32x16xf32, #tpu.memory_space<vmem>>, %arg9: memref<32x16xf32, #tpu.memory_space<vmem>>) attributes {dimension_semantics = [#tpu.dimension_semantics<parallel>, #tpu.dimension_semantics<parallel>, #tpu.dimension_semantics<arbitrary>], iteration_bounds = array<i64: 1, 1, 1>, scalar_prefetch = 0 : i64, scratch_operands = 1 : i64, tpu.core_type = #tpu.core_type<tc>, window_params = [{transform_indices = @transform_0, window_bounds = array<i64: 32, 32>}, {transform_indices = @transform_1, window_bounds = array<i64: 32, 16>}, {transform_indices = @transform_2, window_bounds = array<i64: 1, 16>}, {pipeline_mode = #tpu.pipeline_mode<synchronous>, transform_indices = @transform_3, window_bounds = array<i64: 1, 32>}, {pipeline_mode = #tpu.pipeline_mode<synchronous>, transform_indices = @transform_4, window_bounds = array<i64: 1, 32>}, {transform_indices = @transform_5, window_bounds = array<i64: 32, 16>}]} {
    %c0_i32 = arith.constant 0 : i32
    %0 = arith.cmpi eq, %arg2, %c0_i32 : i32
    %1 = arith.extui %0 : i1 to i32
    %c0_i32_0 = arith.constant 0 : i32
    %2 = arith.cmpi ne, %1, %c0_i32_0 : i32
    scf.if %2 {
      %cst_19 = arith.constant 0.000000e+00 : f32
      %38 = vector.broadcast %cst_19 : f32 to vector<32x16xf32>
      %c0_20 = arith.constant 0 : index
      %c0_21 = arith.constant 0 : index
      %39 = vector.load %arg9[%c0_20, %c0_21] : memref<32x16xf32, #tpu.memory_space<vmem>>, vector<32x16xf32>
      tpu.vector_store %arg9[%c0_20, %c0_21], %38 {strides = array<i32>} : memref<32x16xf32, #tpu.memory_space<vmem>>, vector<32x16xf32>,
    } else {
    }
    %c0 = arith.constant 0 : index
    %c0_1 = arith.constant 0 : index
    %3 = vector.load %arg3[%c0, %c0_1] : memref<32x32xbf16, #tpu.memory_space<vmem>>, vector<32x32xbf16>
    %4 = arith.extf %3 : vector<32x32xbf16> to vector<32x32xf32>
    %cst = arith.constant dense<0.000000e+00> : vector<32xf32>
    %5 = vector.multi_reduction <add>, %4, %cst [1] : vector<32x32xf32> to vector<32xf32>
    %6 = vector.shape_cast %5 : vector<32xf32> to vector<32x1xf32>
    %cst_2 = arith.constant 3.200000e+01 : f32
    %7 = vector.broadcast %cst_2 : f32 to vector<32x1xf32>
    %8 = arith.divf %6, %7 : vector<32x1xf32>
    %9 = vector.broadcast %8 : vector<32x1xf32> to vector<32x32xf32>
    %10 = arith.subf %4, %9 : vector<32x32xf32>
    %11 = arith.mulf %10, %10 : vector<32x32xf32>
    %cst_3 = arith.constant dense<0.000000e+00> : vector<32xf32>
    %12 = vector.multi_reduction <add>, %11, %cst_3 [1] : vector<32x32xf32> to vector<32xf32>
    %13 = vector.shape_cast %12 : vector<32xf32> to vector<32x1xf32>
    %cst_4 = arith.constant 3.200000e+01 : f32
    %14 = vector.broadcast %cst_4 : f32 to vector<32x1xf32>
    %15 = arith.divf %13, %14 : vector<32x1xf32>
    %16 = vector.broadcast %8 : vector<32x1xf32> to vector<32x32xf32>
    %17 = arith.subf %4, %16 : vector<32x32xf32>
    %cst_5 = arith.constant 9.99999997E-7 : f32
    %18 = vector.broadcast %cst_5 : f32 to vector<32x1xf32>
    %19 = arith.addf %15, %18 : vector<32x1xf32>
    %20 = math.rsqrt %19 : vector<32x1xf32>
    %21 = vector.broadcast %20 : vector<32x1xf32> to vector<32x32xf32>
    %22 = arith.mulf %17, %21 : vector<32x32xf32>
    %c0_6 = arith.constant 0 : index
    %c0_7 = arith.constant 0 : index
    %23 = vector.load %arg6[%c0_6, %c0_7] : memref<1x32xf32, #tpu.memory_space<vmem>>, vector<1x32xf32>
    %24 = vector.broadcast %23 : vector<1x32xf32> to vector<32x32xf32>
    %25 = arith.mulf %22, %24 : vector<32x32xf32>
    %c0_8 = arith.constant 0 : index
    %c0_9 = arith.constant 0 : index
    %26 = vector.load %arg7[%c0_8, %c0_9] : memref<1x32xf32, #tpu.memory_space<vmem>>, vector<1x32xf32>
    %27 = vector.broadcast %26 : vector<1x32xf32> to vector<32x32xf32>
    %28 = arith.addf %25, %27 : vector<32x32xf32>
    %29 = arith.truncf %28 : vector<32x32xf32> to vector<32x32xbf16>
    %c0_10 = arith.constant 0 : index
    %c0_11 = arith.constant 0 : index
    %30 = vector.load %arg9[%c0_10, %c0_11] : memref<32x16xf32, #tpu.memory_space<vmem>>, vector<32x16xf32>
    %c0_12 = arith.constant 0 : index
    %c0_13 = arith.constant 0 : index
    %31 = vector.load %arg4[%c0_12, %c0_13] : memref<32x16xbf16, #tpu.memory_space<vmem>>, vector<32x16xbf16>
    %cst_14 = arith.constant dense<0.000000e+00> : vector<32x16xf32>
    %32 = tpu.matmul %29, %31, %cst_14 {dimension_numbers = #tpu.dot_dimension_numbers<[1], [0], [0], [1], [0, 0, 1, 1], [], []>} : vector<32x32xbf16>, vector<32x16xbf16>, vector<32x16xf32> -> vector<32x16xf32>
    %33 = arith.addf %30, %32 : vector<32x16xf32>
    %c0_15 = arith.constant 0 : index
    %c0_16 = arith.constant 0 : index
    %34 = vector.load %arg9[%c0_15, %c0_16] : memref<32x16xf32, #tpu.memory_space<vmem>>, vector<32x16xf32>
    tpu.vector_store %arg9[%c0_15, %c0_16], %33 {strides = array<i32>} : memref<32x16xf32, #tpu.memory_space<vmem>>, vector<32x16xf32>,
    %c0_i32_17 = arith.constant 0 : i32
    %35 = arith.cmpi eq, %arg2, %c0_i32_17 : i32
    %36 = arith.extui %35 : i1 to i32
    %c0_i32_18 = arith.constant 0 : i32
    %37 = arith.cmpi ne, %36, %c0_i32_18 : i32
    scf.if %37 {
      %c0_19 = arith.constant 0 : index
      %c0_20 = arith.constant 0 : index
      %38 = vector.load %arg9[%c0_19, %c0_20] : memref<32x16xf32, #tpu.memory_space<vmem>>, vector<32x16xf32>
      %c0_21 = arith.constant 0 : index
      %c0_22 = arith.constant 0 : index
      %39 = vector.load %arg5[%c0_21, %c0_22] : memref<1x16xf32, #tpu.memory_space<vmem>>, vector<1x16xf32>
      %40 = vector.broadcast %39 : vector<1x16xf32> to vector<32x16xf32>
      %41 = arith.addf %38, %40 : vector<32x16xf32>
      %c0_23 = arith.constant 0 : index
      %c0_24 = arith.constant 0 : index
      %42 = vector.load %arg8[%c0_23, %c0_24] : memref<32x16xf32, #tpu.memory_space<vmem>>, vector<32x16xf32>
      tpu.vector_store %arg8[%c0_23, %c0_24], %41 {strides = array<i32>} : memref<32x16xf32, #tpu.memory_space<vmem>>, vector<32x16xf32>,
    } else {
    }
    return
  }
  func.func @transform_0(%arg0: i32, %arg1: i32, %arg2: i32) -> (i32, i32) {
    %c0_i32 = arith.constant 0 : i32
    return %arg0, %arg2 : i32, i32
  }
  func.func @transform_1(%arg0: i32, %arg1: i32, %arg2: i32) -> (i32, i32) {
    %c0_i32 = arith.constant 0 : i32
    return %arg2, %arg1 : i32, i32
  }
  func.func @transform_2(%arg0: i32, %arg1: i32, %arg2: i32) -> (i32, i32) {
    %c0_i32 = arith.constant 0 : i32
    %c0_i32_0 = arith.constant 0 : i32
    return %c0_i32, %arg1 : i32, i32
  }
  func.func @transform_3(%arg0: i32, %arg1: i32, %arg2: i32) -> (i32, i32) {
    %c0_i32 = arith.constant 0 : i32
    %c0_i32_0 = arith.constant 0 : i32
    %c0_i32_1 = arith.constant 0 : i32
    return %c0_i32, %c0_i32_0 : i32, i32
  }
  func.func @transform_4(%arg0: i32, %arg1: i32, %arg2: i32) -> (i32, i32) {
    %c0_i32 = arith.constant 0 : i32
    %c0_i32_0 = arith.constant 0 : i32
    %c0_i32_1 = arith.constant 0 : i32
    return %c0_i32, %c0_i32_0 : i32, i32
  }
  func.func @transform_5(%arg0: i32, %arg1: i32, %arg2: i32) -> (i32, i32) {
    %c0_i32 = arith.constant 0 : i32
    return %arg0, %arg1 : i32, i32
  }
}

</mosaic_0001>

<bundles_post_ra>
// kernel: _vit_trunk.13
= control target key start
LH: loop header
LB: loop body
LE: loop exit
PB: predicated region body
PF: predicated region fallthrough
CT: control target
= control target key end

     0   :  { %vm42_vm0 = vcmask 261120   ;;  %vm55_vm1 = vcmask 254976   ;;  %v353_v39 = vmov 0.0   ;;  %vm354_vm2 = vmmov 0   ;;  %s491_s0 = inlined_call_operand.vmem [shape: bf16[34,32], index: 0, kind: input, shape index: {}]   ;;  %s492_s1 = inlined_call_operand.vmem [shape: bf16[32,96], index: 1, kind: input, shape index: {}]   ;;  %s493_s3 = inlined_call_operand.vmem [shape: f32[1,32], index: 3, kind: input, shape index: {}]   ;;  %s494_s4 = inlined_call_operand.vmem [shape: f32[1,32], index: 4, kind: input, shape index: {}]   ;;  %s495_s2 = inlined_call_operand.vmem [shape: f32[1,96], index: 2, kind: input, shape index: {}]   ;;  %s496_s5 = inlined_call_operand.vmem [shape: bf16[34,96], index: 5, kind: output, shape index: {}]  }
   0x1   :  { %v313_v0 = vld [vmem:[%s491_s0 + $0x8] sm:$0xff]   ;;  %v306_v1 = vld [vmem:[%s491_s0] sm:$0xff]   ;;  %v36_v5 = vld [vmem:[%s491_s0 + $0x10] sm:$0x1]  ;;  %335 = vmatprep.subr.bf16.mxu1 %v353_v39  ;;  %319 = vmatprep.subr.bf16.mxu0 %v353_v39  ;;  %vm25_vm3 = vcmask 785408   ;;  %vm30_vm4 = vcmask 779264  }
   0x2   :  { %v311_v2 = vunpack.c.l.bf16 %v313_v0  ;;  %v312_v3 = vunpack.c.h.bf16 %v313_v0  ;;  %v307_v4 = vunpack.c.l.bf16 %v306_v1  ;;  %v308_v6 = vunpack.c.h.bf16 %v306_v1  ;;  %v341_v38 = vld [vmem:[%s492_s1] sm:$0xff]   ;;  %v342_v40 = vld [vmem:[%s492_s1 + $0x8] sm:$0xff]   ;;  %327 = vmatprep.mubr.msk.bf16.mxu1 %vm354_vm2, %v353_v39  ;;  %323 = vmatprep.mubr.msk.bf16.mxu0 %vm354_vm2, %v353_v39  ;;  %28 = vst.msk [vmem:[#allocation2 + $0x10] sm:$0xff] %vm25_vm3, %v353_v39  ;;  %26 = vst.msk [vmem:[#allocation2] sm:$0xff] %vm25_vm3, %v353_v39 }
   0x3   :  { %v41_v10 = vunpack.c.l.bf16 %v36_v5  ;;  %337 = vmatpush3.bf16.msra.mxu1 %v341_v38  ;;  %320 = vmatpush3.bf16.msra.mxu0 %v341_v38  ;;  %27 = vst.msk [vmem:[#allocation2 + $0x8] sm:$0xff] %vm25_vm3, %v353_v39  ;;  %29 = vst.msk [vmem:[#allocation2 + $0x18] sm:$0xff] %vm25_vm3, %v353_v39  ;;  %v287_v58 = vld [vmem:[%s493_s3] ss:$0 sm:$0xff]  ;;  %vm276_vm5 = vcmask 781312   ;;  %vm281_vm6 = vcmask 778240  }
   0x4   :  { %v49_v7 = vsel %vm42_vm0, %v311_v2, 0.0  ;;  %v43_v8 = vsel %vm42_vm0, %v307_v4, 0.0  ;;  %v52_v9 = vsel %vm42_vm0, %v312_v3, 0.0  ;;  %v46_v11 = vsel %vm42_vm0, %v308_v6, 0.0  ;;  %336 = vmatprep.subr.bf16.mxu1 %v353_v39  ;;  %321 = vmatprep.subr.bf16.mxu0 %v353_v39  ;;  %v288_v0 = vld [vmem:[%s494_s4] ss:$0 sm:$0xff] }
   0x5   :  { %50 = vadd.xlane.f32.xlu0 %v49_v7  ;;  %44 = vadd.xlane.f32.xlu1 %v43_v8  ;;  %v56_v12 = vsel %vm55_vm1, %v41_v10, 0.0  ;;  %31 = vst.msk [vmem:[#allocation2 + $0x20] sm:$0x3] %vm30_vm4, %v353_v39 }
   0x7   :  { %338 = vmatpush3.bf16.msra.mxu1 %v342_v40  ;;  %322 = vmatpush3.bf16.msra.mxu0 %v342_v40 }
   0x9   :  { %53 = vadd.xlane.f32.xlu0 %v52_v9  ;;  %47 = vadd.xlane.f32.xlu1 %v46_v11 }
   0xd   :  { %57 = vadd.xlane.f32.xlu0 %v56_v12 }
  0x92   :  { %v51_v13 = vpop.xlane.xlu0 %50  ;;  %v45_v14 = vpop.xlane.xlu1 %44 }
  0x93   :  { %v62_v15 = vmul.f32 0.03125, %v51_v13  ;;  %v60_v16 = vmul.f32 0.03125, %v45_v14 }
  0x95   :  { %v399_v17 = vsub.f32 %v311_v2, %v62_v15  ;;  %v401_v18 = vsub.f32 %v307_v4, %v60_v16 }
  0x96   :  { %v54_v19 = vpop.xlane.xlu0 %53  ;;  %v48_v20 = vpop.xlane.xlu1 %47 }
  0x97   :  { %v63_v21 = vmul.f32 0.03125, %v54_v19  ;;  %v72_v22 = vmul.f32 %v399_v17, %v399_v17  ;;  %v61_v23 = vmul.f32 0.03125, %v48_v20  ;;  %v70_v24 = vmul.f32 %v401_v18, %v401_v18  ;;  %v140_v19 = vld [vmem:[#allocation2 + $0x18] sm:$0xff] }
  0x99   :  { %v407_v25 = vsub.f32 %v312_v3, %v63_v21  ;;  %v81_v26 = vsel %vm42_vm0, %v72_v22, 0.0  ;;  %v410_v27 = vsub.f32 %v308_v6, %v61_v23  ;;  %v75_v31 = vsel %vm42_vm0, %v70_v24, 0.0  ;;  %v137_v23 = vld [vmem:[#allocation2] sm:$0xff] }
  0x9a   :  { %v58_v28 = vpop.xlane.xlu0 %57  ;;  %82 = vadd.xlane.f32.xlu1 %v81_v26 }
  0x9b   :  { %v64_v29 = vmul.f32 0.03125, %v58_v28  ;;  %v73_v30 = vmul.f32 %v407_v25, %v407_v25  ;;  %v71_v32 = vmul.f32 %v410_v27, %v410_v27 }
  0x9d   :  { %v417_v33 = vsub.f32 %v41_v10, %v64_v29  ;;  %v84_v34 = vsel %vm42_vm0, %v73_v30, 0.0  ;;  %v78_v36 = vsel %vm42_vm0, %v71_v32, 0.0 }
  0x9e   :  { %85 = vadd.xlane.f32.xlu0 %v84_v34  ;;  %76 = vadd.xlane.f32.xlu1 %v75_v31  ;;  %v141_v31 = vld [vmem:[#allocation2 + $0x20] sm:$0x3] }
  0x9f   :  { %v74_v35 = vmul.f32 %v417_v33, %v417_v33  ;;  %v294_v34 = vld [vmem:[%s495_s2] ss:$0 sm:$0xff] }
  0xa1   :  { %v87_v37 = vsel %vm55_vm1, %v74_v35, 0.0 }
  0xa2   :  { %88 = vadd.xlane.f32.xlu1 %v87_v37  ;;  %79 = vadd.xlane.f32.xlu0 %v78_v36 }
 0x127   :  { %v83_v41 = vpop.xlane.xlu1 %82 }
 0x128   :  { %v92_v42 = vmul.f32 0.03125, %v83_v41 }
 0x12a   :  { %v97_v43 = vadd.f32 1e-06, %v92_v42 }
 0x12b   :  { %v86_v44 = vpop.xlane.xlu0 %85  ;;  %v77_v45 = vpop.xlane.xlu1 %76 }
 0x12c   :  { %343 = vrsqrt.f32 %v97_v43  ;;  %v93_v46 = vmul.f32 0.03125, %v86_v44  ;;  %v90_v47 = vmul.f32 0.03125, %v77_v45 }
 0x12e   :  { %v98_v48 = vadd.f32 1e-06, %v93_v46  ;;  %v95_v49 = vadd.f32 1e-06, %v90_v47 }
 0x12f   :  { %v80_v50 = vpop.xlane.xlu0 %79  ;;  %v89_v51 = vpop.xlane.xlu1 %88 }
 0x130   :  { %345 = vrsqrt.f32 %v98_v48  ;;  %v91_v52 = vmul.f32 0.03125, %v80_v50  ;;  %v94_v53 = vmul.f32 0.03125, %v89_v51 }
 0x131   :  { %347 = vrsqrt.f32 %v95_v49 }
 0x132   :  { %v96_v54 = vadd.f32 1e-06, %v91_v52  ;;  %v99_v55 = vadd.f32 1e-06, %v94_v53 }
 0x134   :  { %349 = vrsqrt.f32 %v96_v54 }
 0x135   :  { %351 = vrsqrt.f32 %v99_v55 }
 0x136   :  { %v344_v56 = vpop.eup %343 }
 0x137   :  { %v107_v57 = vmul.f32 %v344_v56, %v399_v17  ;;  %v139_v17 = vld [vmem:[#allocation2 + $0x10] sm:$0xff] }
 0x139   :  { %v119_v62 = vmul.f32 %v287_v58, %v107_v57 }
 0x13a   :  { %v346_v59 = vpop.eup %345 }
 0x13b   :  { %v348_v60 = vpop.eup %347  ;;  %v108_v61 = vmul.f32 %v346_v59, %v407_v25  ;;  %v131_v5 = vadd.f32 %v288_v0, %v119_v62 }
 0x13c   :  { %v105_v63 = vmul.f32 %v348_v60, %v401_v18 }
 0x13d   :  { %v120_v1 = vmul.f32 %v287_v58, %v108_v61 }
 0x13e   :  { %v350_v2 = vpop.eup %349  ;;  %v117_v7 = vmul.f32 %v287_v58, %v105_v63 }
 0x13f   :  { %v352_v3 = vpop.eup %351  ;;  %v106_v4 = vmul.f32 %v350_v2, %v410_v27  ;;  %v132_v6 = vadd.f32 %v288_v0, %v120_v1  ;;  %v138_v27 = vld [vmem:[#allocation2 + $0x8] sm:$0xff] }
 0x140   :  { %v109_v8 = vmul.f32 %v352_v3, %v417_v33  ;;  %v129_v12 = vadd.f32 %v288_v0, %v117_v7 }
 0x141   :  { %v135_v9 = vpack.c.bf16 %v132_v6, %v131_v5  ;;  %v118_v10 = vmul.f32 %v287_v58, %v106_v4 }
 0x142   :  { %v121_v11 = vmul.f32 %v287_v58, %v109_v8 }
 0x143   :  { %328 = vmatmul.mubr.msk.bf16.vlgmr.msra.gmra.mrb[0].mxu1 %vm42_vm0, %v135_v9  ;;  %v130_v13 = vadd.f32 %v288_v0, %v118_v10 }
 0x144   :  { %331 = vmatprep.mubr.msk.bf16.mxu1 %vm354_vm2, %v353_v39  ;;  %v133_v15 = vadd.f32 %v288_v0, %v121_v11 }
 0x145   :  { %v134_v14 = vpack.c.bf16 %v130_v13, %v129_v12 }
 0x146   :  { %v136_v16 = vpack.c.bf16 %v133_v15, %v133_v15 }
 0x147   :  { %324 = vmatmul.mubr.msk.bf16.vlgmr.msra.gmra.mrb[0].mxu0 %vm42_vm0, %v134_v14 }
 0x14b   :  { %332 = vmatmul.mubr.msk.bf16.gmra.mrb[4].mxu1 %vm42_vm0, %v136_v16 }
 0x216   :  { %v209_v18 = vpop.f32.mrb[0].mxu1 }
 0x217   :  { %v225_v20 = vadd.f32 %v209_v18, %v139_v17  ;;  %v329_v21 = vpop.f32.mrb[1].mxu1 }
 0x218   :  { %v212_v22 = vpop.f32.mrb[2].mxu1 }
 0x219   :  { %231 = vst.msk [vmem:[#allocation2 + $0x10] sm:$0xff] %vm25_vm3, %v225_v20  ;;  %v226_v24 = vadd.f32 %v212_v22, %v140_v19  ;;  %v330_v25 = vpop.f32.mrb[3].mxu1 }
 0x21a   :  { %v201_v26 = vpop.f32.mrb[0].mxu0 }
 0x21b   :  { %232 = vst.msk [vmem:[#allocation2 + $0x18] sm:$0xff] %vm25_vm3, %v226_v24  ;;  %v223_v28 = vadd.f32 %v201_v26, %v137_v23  ;;  %v325_v29 = vpop.f32.mrb[1].mxu0 }
 0x21c   :  { %v204_v30 = vpop.f32.mrb[2].mxu0 }
 0x21d   :  { %229 = vst.msk [vmem:[#allocation2] sm:$0xff] %vm25_vm3, %v223_v28  ;;  %v224_v32 = vadd.f32 %v204_v30, %v138_v27  ;;  %v326_v33 = vpop.f32.mrb[3].mxu0 }
 0x21e   :  { %v217_v35 = vpop.f32.mrb[4].mxu1 }
 0x21f   :  { %230 = vst.msk [vmem:[#allocation2 + $0x8] sm:$0xff] %vm25_vm3, %v224_v32  ;;  %v227_v36 = vadd.f32 %v217_v35, %v141_v31  ;;  %v333_v37 = vpop.f32.mrb[5].mxu1 }
 0x220   :  { %v240_v38 = vld [vmem:[#allocation2 + $0x10] sm:$0xff]  ;;  %v220_v39 = vpop.f32.mrb[6].mxu1 }
 0x221   :  { %v252_v40 = vadd.f32 %v294_v34, %v240_v38  ;;  %234 = vst.msk [vmem:[#allocation2 + $0x20] sm:$0x3] %vm30_vm4, %v227_v36  ;;  %v334_v41 = vpop.f32.mrb[7].mxu1 }
 0x222   :  { %v241_v42 = vld [vmem:[#allocation2 + $0x18] sm:$0xff] }
 0x223   :  { %v302_v43 = vpack.c.bf16 %v252_v40, %v252_v40  ;;  %v253_v44 = vadd.f32 %v294_v34, %v241_v42 }
 0x224   :  { %v238_v45 = vld [vmem:[#allocation2] sm:$0xff] }
 0x225   :  { %279 = vst.msk [vmem:[%s496_s5 + $0x8] sm:$0xf] %vm276_vm5, %v302_v43  ;;  %v303_v46 = vpack.c.bf16 %v253_v44, %v253_v44  ;;  %v250_v47 = vadd.f32 %v294_v34, %v238_v45 }
 0x226   :  { %v239_v48 = vld [vmem:[#allocation2 + $0x8] sm:$0xff] }
 0x227   :  { %280 = vst.msk [vmem:[%s496_s5 + $0xc] sm:$0xf] %vm276_vm5, %v303_v46  ;;  %v300_v49 = vpack.c.bf16 %v250_v47, %v250_v47  ;;  %v251_v50 = vadd.f32 %v294_v34, %v239_v48 }
 0x228   :  { %v242_v51 = vld [vmem:[#allocation2 + $0x20] sm:$0x3] }
 0x229   :  { %277 = vst.msk [vmem:[%s496_s5] sm:$0xf] %vm276_vm5, %v300_v49  ;;  %v301_v52 = vpack.c.bf16 %v251_v50, %v251_v50  ;;  %v254_v53 = vadd.f32 %v294_v34, %v242_v51 }
 0x22b   :  { %278 = vst.msk [vmem:[%s496_s5 + $0x4] sm:$0xf] %vm276_vm5, %v301_v52  ;;  %v304_v54 = vpack.c.bf16 %v254_v53, %v254_v53 }
 0x22d   :  { %282 = vst.msk [vmem:[%s496_s5 + $0x10] sm:$0x1] %vm281_vm6, %v304_v54 }

// kernel: _vit_trunk.12
= control target key start
LH: loop header
LB: loop body
LE: loop exit
PB: predicated region body
PF: predicated region fallthrough
CT: control target
= control target key end

     0   :  { %vm19_vm0 = vcmask 261120   ;;  %v211_v1 = vmov 0.0   ;;  %vm66_vm1 = vcmask 392192   ;;  %vm165_vm2 = vcmask 257024   ;;  %s270_s1 = inlined_call_operand.vmem [shape: bf16[48,32], index: 1, kind: input, shape index: {}]   ;;  %s271_s0 = inlined_call_operand.vmem [shape: bf16[32,48], index: 0, kind: input, shape index: {}]   ;;  %s272_s2 = inlined_call_operand.vmem [shape: f32[1,32], index: 2, kind: input, shape index: {}]   ;;  %s273_s3 = inlined_call_operand.vmem [shape: bf16[32,32], index: 3, kind: output, shape index: {}]  }
   0x1   :  { %v206_v0 = vld [vmem:[%s270_s1] sm:$0xff]   ;;  %22 = vst.msk [vmem:[#allocation2 + $0x10] sm:$0xff] %vm19_vm0, %v211_v1  ;;  %20 = vst.msk [vmem:[#allocation2] sm:$0xff] %vm19_vm0, %v211_v1  ;;  %v207_v2 = vld [vmem:[%s270_s1 + $0x8] sm:$0xff]  }
   0x2   :  { %21 = vst.msk [vmem:[#allocation2 + $0x8] sm:$0xff] %vm19_vm0, %v211_v1  ;;  %23 = vst.msk [vmem:[#allocation2 + $0x18] sm:$0xff] %vm19_vm0, %v211_v1  ;;  %195 = vmatprep.subr.bf16.mxu0 %v206_v0  ;;  %v209_v3 = vld [vmem:[%s271_s0] sm:$0xff]   ;;  %v208_v4 = vld [vmem:[%s270_s1 + $0x10] sm:$0xff]  }
   0x3   :  { %196 = vmatpush3.bf16.msra.mxu0 %v206_v0  ;;  %201 = vmatprep.mubr.msk.bf16.mxu0 %vm66_vm1, %v209_v3  ;;  %v210_v5 = vld [vmem:[%s271_s0 + $0x8] sm:$0xff]   ;;  %v181_v18 = vld [vmem:[%s272_s2] ss:$0 sm:$0xff] }
   0x4   :  { %197 = vmatprep.subr.bf16.mxu0 %v207_v2 }
   0x7   :  { %198 = vmatpush3.bf16.msra.mxu0 %v207_v2 }
   0x8   :  { %199 = vmatprep.subr.bf16.mxu0 %v208_v4  ;;  %v30_v6 = vld [vmem:[#allocation2 + $0x10] sm:$0xff]  ;;  %v28_v7 = vld [vmem:[#allocation2] sm:$0xff] }
   0x9   :  { %v31_v9 = vld [vmem:[#allocation2 + $0x18] sm:$0xff]  ;;  %v29_v12 = vld [vmem:[#allocation2 + $0x8] sm:$0xff] }
   0xb   :  { %200 = vmatpush3.bf16.msra.mxu0 %v208_v4 }
   0xe   :  { %202 = vmatmul.mubr.msk.bf16.vlgmr.msra.gmra.mrb[0].mxu0 %vm66_vm1, %v210_v5 }
  0xe1   :  { %v203_v8 = vpop.f32.mrb[0].mxu0 }
  0xe2   :  { %v124_v10 = vadd.f32 %v203_v8, %v30_v6  ;;  %v107_v11 = vpop.f32.mrb[1].mxu0 }
  0xe3   :  { %v122_v13 = vadd.f32 %v107_v11, %v28_v7  ;;  %v204_v14 = vpop.f32.mrb[2].mxu0 }
  0xe4   :  { %129 = vst.msk [vmem:[#allocation2 + $0x10] sm:$0xff] %vm19_vm0, %v124_v10  ;;  %v125_v15 = vadd.f32 %v204_v14, %v31_v9  ;;  %v110_v16 = vpop.f32.mrb[3].mxu0 }
  0xe5   :  { %127 = vst.msk [vmem:[#allocation2] sm:$0xff] %vm19_vm0, %v122_v13  ;;  %v123_v17 = vadd.f32 %v110_v16, %v29_v12 }
  0xe6   :  { %130 = vst.msk [vmem:[#allocation2 + $0x18] sm:$0xff] %vm19_vm0, %v125_v15 }
  0xe7   :  { %128 = vst.msk [vmem:[#allocation2 + $0x8] sm:$0xff] %vm19_vm0, %v123_v17 }
  0xeb   :  { %v136_v19 = vld [vmem:[#allocation2 + $0x10] sm:$0xff] }
  0xec   :  { %v147_v20 = vadd.f32 %v181_v18, %v136_v19  ;;  %v134_v21 = vld [vmem:[#allocation2] sm:$0xff] }
  0xed   :  { %v145_v22 = vadd.f32 %v181_v18, %v134_v21  ;;  %v137_v23 = vld [vmem:[#allocation2 + $0x18] sm:$0xff] }
  0xee   :  { %v188_v24 = vpack.c.bf16 %v147_v20, %v147_v20  ;;  %v148_v25 = vadd.f32 %v181_v18, %v137_v23  ;;  %v135_v26 = vld [vmem:[#allocation2 + $0x8] sm:$0xff] }
  0xef   :  { %v186_v27 = vpack.c.bf16 %v145_v22, %v145_v22  ;;  %v146_v28 = vadd.f32 %v181_v18, %v135_v26 }
  0xf0   :  { %168 = vst.msk [vmem:[%s273_s3 + $0x8] sm:$0xf] %vm165_vm2, %v188_v24  ;;  %v189_v29 = vpack.c.bf16 %v148_v25, %v148_v25 }
  0xf1   :  { %166 = vst.msk [vmem:[%s273_s3] sm:$0xf] %vm165_vm2, %v186_v27  ;;  %v187_v30 = vpack.c.bf16 %v146_v28, %v146_v28 }
  0xf2   :  { %169 = vst.msk [vmem:[%s273_s3 + $0xc] sm:$0xf] %vm165_vm2, %v189_v29 }
  0xf3   :  { %167 = vst.msk [vmem:[%s273_s3 + $0x4] sm:$0xf] %vm165_vm2, %v187_v30 }

// kernel: _vit_trunk.15
= control target key start
LH: loop header
LB: loop body
LE: loop exit
PB: predicated region body
PF: predicated region fallthrough
CT: control target
= control target key end

     0   :  { %vm22_vm0 = vcmask 261120   ;;  %v272_v0 = vmov 0.0   ;;  %vm273_vm1 = vmmov 0   ;;  %vm27_vm2 = vcmask 254976   ;;  %s354_s1 = inlined_call_operand.vmem [shape: bf16[32,32], index: 1, kind: input, shape index: {}]   ;;  %s355_s0 = inlined_call_operand.vmem [shape: bf16[34,32], index: 0, kind: input, shape index: {}]   ;;  %s356_s3 = inlined_call_operand.vmem [shape: bf16[34,32], index: 3, kind: input, shape index: {}]   ;;  %s357_s2 = inlined_call_operand.vmem [shape: f32[1,32], index: 2, kind: input, shape index: {}]   ;;  %s358_s4 = inlined_call_operand.vmem [shape: bf16[34,32], index: 4, kind: output, shape index: {}]  }
   0x1   :  { %261 = vmatprep.subr.bf16.mxu1 %v272_v0  ;;  %v267_v1 = vld [vmem:[%s354_s1] sm:$0xff]   ;;  %245 = vmatprep.subr.bf16.mxu0 %v272_v0  ;;  %23 = vst.msk [vmem:[#allocation2] sm:$0xff] %vm22_vm0, %v272_v0  ;;  %24 = vst.msk [vmem:[#allocation2 + $0x8] sm:$0xff] %vm22_vm0, %v272_v0  ;;  %v268_v2 = vld [vmem:[%s354_s1 + $0x8] sm:$0xff]   ;;  %vm201_vm3 = vcmask 257024   ;;  %vm206_vm4 = vcmask 253952  }
   0x2   :  { %25 = vst.msk [vmem:[#allocation2 + $0x10] sm:$0xff] %vm22_vm0, %v272_v0  ;;  %26 = vst.msk [vmem:[#allocation2 + $0x18] sm:$0xff] %vm22_vm0, %v272_v0  ;;  %253 = vmatprep.mubr.msk.bf16.mxu1 %vm273_vm1, %v272_v0  ;;  %249 = vmatprep.mubr.msk.bf16.mxu0 %vm273_vm1, %v272_v0  ;;  %v269_v3 = vld [vmem:[%s355_s0 + $0x8] sm:$0xff]   ;;  %v270_v4 = vld [vmem:[%s355_s0] sm:$0xff]  }
   0x3   :  { %263 = vmatpush3.bf16.msra.mxu1 %v267_v1  ;;  %246 = vmatpush3.bf16.msra.mxu0 %v267_v1  ;;  %v271_v5 = vld [vmem:[%s355_s0 + $0x10] ss:$0 sps:$4 sm:$0x11]   ;;  %28 = vst.msk [vmem:[#allocation2 + $0x20] sm:$0x3] %vm27_vm2, %v272_v0  ;;  %v239_v22 = vld [vmem:[%s356_s3 + $0x8] sm:$0xff]  }
   0x4   :  { %262 = vmatprep.subr.bf16.mxu1 %v272_v0  ;;  %247 = vmatprep.subr.bf16.mxu0 %v272_v0  ;;  %v232_v23 = vld [vmem:[%s356_s3] sm:$0xff]   ;;  %v237_v27 = vunpack.c.l.bf16 %v239_v22  ;;  %v238_v35 = vunpack.c.h.bf16 %v239_v22  ;;  %v169_v45 = vld [vmem:[%s356_s3 + $0x10] sm:$0x1] }
   0x5   :  { %v220_v25 = vld [vmem:[%s357_s2] ss:$0 sm:$0xff]  ;;  %v233_v28 = vunpack.c.l.bf16 %v232_v23  ;;  %v234_v37 = vunpack.c.h.bf16 %v232_v23  ;;  %v174_v52 = vunpack.c.l.bf16 %v169_v45 }
   0x7   :  { %264 = vmatpush3.bf16.msra.mxu1 %v268_v2  ;;  %248 = vmatpush3.bf16.msra.mxu0 %v268_v2 }
   0x8   :  { %v34_v7 = vld [vmem:[#allocation2] sm:$0xff]  ;;  %v35_v11 = vld [vmem:[#allocation2 + $0x8] sm:$0xff] }
   0x9   :  { %v36_v6 = vld [vmem:[#allocation2 + $0x10] sm:$0xff]  ;;  %v37_v9 = vld [vmem:[#allocation2 + $0x18] sm:$0xff] }
   0xa   :  { %254 = vmatmul.mubr.msk.bf16.vlgmr.msra.gmra.mrb[0].mxu1 %vm22_vm0, %v269_v3  ;;  %250 = vmatmul.mubr.msk.bf16.vlgmr.msra.gmra.mrb[0].mxu0 %vm22_vm0, %v270_v4  ;;  %v38_v24 = vld [vmem:[#allocation2 + $0x20] sm:$0x3] }
   0xb   :  { %257 = vmatprep.mubr.msk.bf16.mxu1 %vm273_vm1, %v272_v0 }
  0x12   :  { %258 = vmatmul.mubr.msk.bf16.gmra.mrb[4].mxu1 %vm22_vm0, %v271_v5 }
  0xdd   :  { %v120_v8 = vpop.f32.mrb[0].mxu1  ;;  %v112_v10 = vpop.f32.mrb[0].mxu0 }
  0xde   :  { %v136_v12 = vadd.f32 %v120_v8, %v36_v6  ;;  %v255_v13 = vpop.f32.mrb[1].mxu1  ;;  %v134_v14 = vadd.f32 %v112_v10, %v34_v7  ;;  %v251_v15 = vpop.f32.mrb[1].mxu0 }
  0xdf   :  { %v123_v16 = vpop.f32.mrb[2].mxu1  ;;  %v115_v17 = vpop.f32.mrb[2].mxu0 }
  0xe0   :  { %141 = vst.msk [vmem:[#allocation2 + $0x10] sm:$0xff] %vm22_vm0, %v136_v12  ;;  %v137_v18 = vadd.f32 %v123_v16, %v37_v9  ;;  %139 = vst.msk [vmem:[#allocation2] sm:$0xff] %vm22_vm0, %v134_v14  ;;  %v256_v19 = vpop.f32.mrb[3].mxu1  ;;  %v135_v20 = vadd.f32 %v115_v17, %v35_v11  ;;  %v252_v21 = vpop.f32.mrb[3].mxu0 }
  0xe2   :  { %142 = vst.msk [vmem:[#allocation2 + $0x18] sm:$0xff] %vm22_vm0, %v137_v18  ;;  %140 = vst.msk [vmem:[#allocation2 + $0x8] sm:$0xff] %vm22_vm0, %v135_v20 }
  0xe5   :  { %v128_v26 = vpop.f32.mrb[4].mxu1 }
  0xe6   :  { %v138_v29 = vadd.f32 %v128_v26, %v38_v24  ;;  %v259_v30 = vpop.f32.mrb[5].mxu1 }
  0xe7   :  { %v150_v31 = vld [vmem:[#allocation2 + $0x10] sm:$0xff]  ;;  %v148_v32 = vld [vmem:[#allocation2] sm:$0xff]  ;;  %v131_v33 = vpop.f32.mrb[6].mxu1 }
  0xe8   :  { %v162_v34 = vadd.f32 %v220_v25, %v150_v31  ;;  %v160_v36 = vadd.f32 %v220_v25, %v148_v32  ;;  %144 = vst.msk [vmem:[#allocation2 + $0x20] sm:$0x3] %vm27_vm2, %v138_v29  ;;  %v260_v38 = vpop.f32.mrb[7].mxu1 }
  0xe9   :  { %v151_v39 = vld [vmem:[#allocation2 + $0x18] sm:$0xff]  ;;  %v149_v40 = vld [vmem:[#allocation2 + $0x8] sm:$0xff] }
  0xea   :  { %v177_v41 = vadd.f32 %v237_v27, %v162_v34  ;;  %v163_v42 = vadd.f32 %v220_v25, %v151_v39  ;;  %v175_v43 = vadd.f32 %v233_v28, %v160_v36  ;;  %v161_v44 = vadd.f32 %v220_v25, %v149_v40 }
  0xec   :  { %v228_v46 = vpack.c.bf16 %v177_v41, %v177_v41  ;;  %v178_v47 = vadd.f32 %v238_v35, %v163_v42  ;;  %v226_v48 = vpack.c.bf16 %v175_v43, %v175_v43  ;;  %v176_v49 = vadd.f32 %v234_v37, %v161_v44 }
  0xee   :  { %204 = vst.msk [vmem:[%s358_s4 + $0x8] sm:$0xf] %vm201_vm3, %v228_v46  ;;  %v229_v50 = vpack.c.bf16 %v178_v47, %v178_v47  ;;  %202 = vst.msk [vmem:[%s358_s4] sm:$0xf] %vm201_vm3, %v226_v48  ;;  %v227_v51 = vpack.c.bf16 %v176_v49, %v176_v49 }
  0xef   :  { %v152_v53 = vld [vmem:[#allocation2 + $0x20] sm:$0x3] }
  0xf0   :  { %205 = vst.msk [vmem:[%s358_s4 + $0xc] sm:$0xf] %vm201_vm3, %v229_v50  ;;  %203 = vst.msk [vmem:[%s358_s4 + $0x4] sm:$0xf] %vm201_vm3, %v227_v51  ;;  %v164_v54 = vadd.f32 %v220_v25, %v152_v53 }
  0xf2   :  { %v179_v55 = vadd.f32 %v174_v52, %v164_v54 }
  0xf4   :  { %v230_v56 = vpack.c.bf16 %v179_v55, %v179_v55 }
  0xf6   :  { %207 = vst.msk [vmem:[%s358_s4 + $0x10] sm:$0x1] %vm206_vm4, %v230_v56 }

// kernel: _vit_trunk.14
= control target key start
LH: loop header
LB: loop body
LE: loop exit
PB: predicated region body
PF: predicated region fallthrough
CT: control target
= control target key end

     0   :  { %vm103_vm0 = vcmask 64512   ;;  %vm727_vm1 = vcmask 131072   ;;  %vm720_vm2 = vcmask 138240   ;;  %vm969_vm3 = vcmask 1040384   ;;  %s2703_s1 = inlined_call_operand.vmem [shape: bf16[8,17,8], index: 1, kind: input, shape index: {}]   ;;  %s2704_s0 = inlined_call_operand.vmem [shape: bf16[8,17,8], index: 0, kind: input, shape index: {}]   ;;  %s2705_s2 = inlined_call_operand.vmem [shape: bf16[8,17,8], index: 2, kind: input, shape index: {}]   ;;  %s2706_s3 = inlined_call_operand.vmem [shape: bf16[8,17,8], index: 3, kind: output, shape index: {}]  }
   0x1   :  { %v2022_v0 = vld [vmem:[%s2703_s1] sm:$0xff]   ;;  %v2023_v1 = vld [vmem:[%s2703_s1 + $0xc] sm:$0xff]   ;;  %v2024_v3 = vld [vmem:[%s2703_s1 + $0x8] ss:$0 sps:$4 sm:$0x11]   ;;  %vm1640_vm4 = vcmask 57344  }
   0x2   :  { %2005 = vmatprep.subr.msk.bf16.mxu0 %vm103_vm0, %v2022_v0  ;;  %v111_v2 = vsel %vm103_vm0, %v2022_v0, 0  ;;  %2007 = vmatprep.subr.msk.bf16.mxu1 %vm103_vm0, %v2023_v1  ;;  %v187_v4 = vsel %vm103_vm0, %v2023_v1, 0  ;;  %v2025_v5 = vld [vmem:[%s2703_s1 + $0x14] ss:$0 sps:$4 sm:$0x11]   ;;  %v2026_v6 = vld [vmem:[%s2704_s0] sm:$0xff]  }
   0x3   :  { %1878 = vmatpush3.bf16.xpose.msra.mxu0 %v111_v2  ;;  %1886 = vmatpush3.bf16.xpose.msra.mxu1 %v187_v4  ;;  %v2027_v7 = vld [vmem:[%s2704_s0 + $0xc] sm:$0xff]   ;;  %v114_v8 = vsel %vm103_vm0, %v2024_v3, 0  ;;  %v2030_v9 = vld [vmem:[%s2703_s1 + $0x18] sm:$0xff]   ;;  %v190_v10 = vsel %vm103_vm0, %v2025_v5, 0  ;;  %v2031_v11 = vld [vmem:[%s2703_s1 + $0x24] sm:$0xff]   ;;  %vm1637_vm7 = vcmask 60416  }
   0x4   :  { %2006 = vmatprep.subr.msk.bf16.mxu0 %vm103_vm0, %v2024_v3  ;;  %2008 = vmatprep.subr.msk.bf16.mxu1 %vm103_vm0, %v2025_v5  ;;  %v2028_v12 = vld [vmem:[%s2704_s0 + $0x8] ss:$0 sps:$4 sm:$0x11]   ;;  %v2029_v13 = vld [vmem:[%s2704_s0 + $0x14] ss:$0 sps:$4 sm:$0x11]  }
   0x5   :  { %1881 = vmatprep.mubr.msk.bf16.mxu0 %vm103_vm0, %v2026_v6  ;;  %1889 = vmatprep.mubr.msk.bf16.mxu1 %vm103_vm0, %v2027_v7  ;;  %v263_v14 = vsel %vm103_vm0, %v2030_v9, 0  ;;  %v339_v15 = vsel %vm103_vm0, %v2031_v11, 0  ;;  %v2032_v16 = vld [vmem:[%s2703_s1 + $0x20] ss:$0 sps:$4 sm:$0x11]   ;;  %v2034_v18 = vld [vmem:[%s2704_s0 + $0x18] sm:$0xff]  }
   0x6   :  { %v2033_v17 = vld [vmem:[%s2703_s1 + $0x2c] ss:$0 sps:$4 sm:$0x11]   ;;  %v2035_v19 = vld [vmem:[%s2704_s0 + $0x24] sm:$0xff]   ;;  %v266_v20 = vsel %vm103_vm0, %v2032_v16, 0  ;;  %v2038_v21 = vld [vmem:[%s2703_s1 + $0x30] sm:$0xff]  }
   0x7   :  { %v342_v22 = vsel %vm103_vm0, %v2033_v17, 0  ;;  %v2039_v23 = vld [vmem:[%s2703_s1 + $0x3c] sm:$0xff]   ;;  %v2037_v25 = vld [vmem:[%s2704_s0 + $0x2c] ss:$0 sps:$4 sm:$0x11]   ;;  %v415_v26 = vsel %vm103_vm0, %v2038_v21, 0 }
   0x8   :  { %v2036_v24 = vld [vmem:[%s2704_s0 + $0x20] ss:$0 sps:$4 sm:$0x11]   ;;  %v2040_v27 = vld [vmem:[%s2703_s1 + $0x38] ss:$0 sps:$4 sm:$0x11]  }
   0x9   :  { %v491_v28 = vsel %vm103_vm0, %v2039_v23, 0  ;;  %v2041_v29 = vld [vmem:[%s2703_s1 + $0x44] ss:$0 sps:$4 sm:$0x11]   ;;  %v2042_v30 = vld [vmem:[%s2704_s0 + $0x30] sm:$0xff]   ;;  %v2043_v31 = vld [vmem:[%s2704_s0 + $0x3c] sm:$0xff]  }
   0xa   :  { %v418_v32 = vsel %vm103_vm0, %v2040_v27, 0  ;;  %v2046_v33 = vld [vmem:[%s2703_s1 + $0x48] sm:$0xff]   ;;  %v494_v34 = vsel %vm103_vm0, %v2041_v29, 0  ;;  %v2047_v35 = vld [vmem:[%s2703_s1 + $0x54] sm:$0xff]   ;;  %vm1641_vm5 = vsmask.f32 256 }
   0xb   :  { %1880 = vmatpush3.bf16.xpose.msra.mxu0 %v114_v8  ;;  %1888 = vmatpush3.bf16.xpose.msra.mxu1 %v190_v10  ;;  %v2044_v36 = vld [vmem:[%s2704_s0 + $0x38] ss:$0 sps:$4 sm:$0x11]   ;;  %v2045_v37 = vld [vmem:[%s2704_s0 + $0x44] ss:$0 sps:$4 sm:$0x11]   ;;  %vm2571_vm6 = vmand %vm1640_vm4, %vm1641_vm5 }
   0xc   :  { %2009 = vmatprep.subr.msk.bf16.mxu0 %vm103_vm0, %v2030_v9  ;;  %2011 = vmatprep.subr.msk.bf16.mxu1 %vm103_vm0, %v2031_v11  ;;  %v567_v38 = vsel %vm103_vm0, %v2046_v33, 0  ;;  %v2048_v39 = vld [vmem:[%s2703_s1 + $0x50] ss:$0 sps:$4 sm:$0x11]   ;;  %v643_v40 = vsel %vm103_vm0, %v2047_v35, 0  ;;  %v2050_v42 = vld [vmem:[%s2704_s0 + $0x48] sm:$0xff]  }
   0xd   :  { %v2049_v41 = vld [vmem:[%s2703_s1 + $0x5c] ss:$0 sps:$4 sm:$0x11]   ;;  %v2052_v43 = vld [vmem:[%s2704_s0 + $0x54] sm:$0xff]   ;;  %v570_v44 = vsel %vm103_vm0, %v2048_v39, 0 }
   0xe   :  { %v646_v45 = vsel %vm103_vm0, %v2049_v41, 0  ;;  %v2051_v46 = vld [vmem:[%s2704_s0 + $0x50] ss:$0 sps:$4 sm:$0x11]  }
   0xf   :  { %v2053_v47 = vld [vmem:[%s2704_s0 + $0x5c] ss:$0 sps:$4 sm:$0x11]  }
  0x12   :  { %1882 = vmatmul.mubr.msk.bf16.vlgmr.msra.gmra.mrb[0].mxu0 %vm103_vm0, %v2028_v12  ;;  %1890 = vmatmul.mubr.msk.bf16.vlgmr.msra.gmra.mrb[0].mxu1 %vm103_vm0, %v2029_v13 }
  0x13   :  { %1894 = vmatpush3.bf16.xpose.msra.mxu0 %v263_v14  ;;  %1902 = vmatpush3.bf16.xpose.msra.mxu1 %v339_v15 }
  0x14   :  { %2010 = vmatprep.subr.msk.bf16.mxu0 %vm103_vm0, %v2032_v16  ;;  %2012 = vmatprep.subr.msk.bf16.mxu1 %vm103_vm0, %v2033_v17 }
  0x15   :  { %1897 = vmatprep.mubr.msk.bf16.mxu0 %vm103_vm0, %v2034_v18  ;;  %1905 = vmatprep.mubr.msk.bf16.mxu1 %vm103_vm0, %v2035_v19 }
  0x1b   :  { %1896 = vmatpush3.bf16.xpose.msra.mxu0 %v266_v20  ;;  %1904 = vmatpush3.bf16.xpose.msra.mxu1 %v342_v22 }
  0x1c   :  { %2013 = vmatprep.subr.msk.bf16.mxu0 %vm103_vm0, %v2038_v21  ;;  %2015 = vmatprep.subr.msk.bf16.mxu1 %vm103_vm0, %v2039_v23 }
  0x22   :  { %1898 = vmatmul.mubr.msk.bf16.vlgmr.msra.gmra.mrb[4].mxu0 %vm103_vm0, %v2036_v24  ;;  %1906 = vmatmul.mubr.msk.bf16.vlgmr.msra.gmra.mrb[4].mxu1 %vm103_vm0, %v2037_v25 }
  0x23   :  { %1910 = vmatpush3.bf16.xpose.msra.mxu0 %v415_v26  ;;  %1918 = vmatpush3.bf16.xpose.msra.mxu1 %v491_v28 }
  0x24   :  { %2014 = vmatprep.subr.msk.bf16.mxu0 %vm103_vm0, %v2040_v27  ;;  %2016 = vmatprep.subr.msk.bf16.mxu1 %vm103_vm0, %v2041_v29 }
  0x25   :  { %1913 = vmatprep.mubr.msk.bf16.mxu0 %vm103_vm0, %v2042_v30  ;;  %1921 = vmatprep.mubr.msk.bf16.mxu1 %vm103_vm0, %v2043_v31 }
  0x2b   :  { %1912 = vmatpush3.bf16.xpose.msra.mxu0 %v418_v32  ;;  %1920 = vmatpush3.bf16.xpose.msra.mxu1 %v494_v34 }
  0x2c   :  { %2017 = vmatprep.subr.msk.bf16.mxu0 %vm103_vm0, %v2046_v33  ;;  %2019 = vmatprep.subr.msk.bf16.mxu1 %vm103_vm0, %v2047_v35 }
  0x32   :  { %1914 = vmatmul.mubr.msk.bf16.vlgmr.msra.gmra.mrb[8].mxu0 %vm103_vm0, %v2044_v36  ;;  %1922 = vmatmul.mubr.msk.bf16.vlgmr.msra.gmra.mrb[8].mxu1 %vm103_vm0, %v2045_v37  ;;  %v2054_v36 = vld [vmem:[%s2705_s2] sm:$0xff]  }
  0x33   :  { %1926 = vmatpush3.bf16.xpose.msra.mxu0 %v567_v38  ;;  %1934 = vmatpush3.bf16.xpose.msra.mxu1 %v643_v40  ;;  %v2055_v40 = vld [vmem:[%s2705_s2 + $0xc] sm:$0xff]  }
  0x34   :  { %2018 = vmatprep.subr.msk.bf16.mxu0 %vm103_vm0, %v2048_v39  ;;  %2020 = vmatprep.subr.msk.bf16.mxu1 %vm103_vm0, %v2049_v41 }
  0x35   :  { %1929 = vmatprep.mubr.msk.bf16.mxu0 %vm103_vm0, %v2050_v42  ;;  %1937 = vmatprep.mubr.msk.bf16.mxu1 %vm103_vm0, %v2052_v43 }
  0x3b   :  { %1928 = vmatpush3.bf16.xpose.msra.mxu0 %v570_v44  ;;  %1936 = vmatpush3.bf16.xpose.msra.mxu1 %v646_v45  ;;  %v2166_v44 = vmov 0  }
  0x3c   :  { %1941 = vmatprep.subr.bf16.mxu0 %v2054_v36  ;;  %1949 = vmatprep.subr.bf16.mxu1 %v2055_v40  ;;  %v971_v45 = vsel %vm969_vm3, 65535, %v2166_v44 }
  0x42   :  { %1930 = vmatmul.mubr.msk.bf16.vlgmr.msra.gmra.mrb[12].mxu0 %vm103_vm0, %v2051_v46  ;;  %1938 = vmatmul.mubr.msk.bf16.vlgmr.msra.gmra.mrb[12].mxu1 %vm103_vm0, %v2053_v47  ;;  %v2056_v47 = vld [vmem:[%s2705_s2 + $0x8] ss:$0 sps:$4 sm:$0x11]  }
  0x43   :  { %1942 = vmatpush3.bf16.msra.mxu0 %v2054_v36  ;;  %1950 = vmatpush3.bf16.msra.mxu1 %v2055_v40 }
  0xe5   :  { %v1883_v48 = vpop.f32.mrb[0].mxu0  ;;  %v1891_v50 = vpop.f32.mrb[0].mxu1 }
  0xe6   :  { %v2331_v49 = vmul.f32 0.35355338, %v1883_v48  ;;  %v150_v51 = vpop.f32.mrb[1].mxu0  ;;  %v2333_v52 = vmul.f32 0.35355338, %v1891_v50  ;;  %v226_v55 = vpop.f32.mrb[1].mxu1 }
  0xe7   :  { %v2335_v53 = vmul.f32 0.35355338, %v150_v51  ;;  %v1884_v54 = vpop.f32.mrb[2].mxu0  ;;  %v2337_v57 = vmul.f32 0.35355338, %v226_v55  ;;  %v1892_v58 = vpop.f32.mrb[2].mxu1  ;;  %v973_v51 = vand.u32 %v2056_v47, %v971_v45 }
  0xe8   :  { %v153_v56 = vpop.f32.mrb[3].mxu0  ;;  %v728_v59 = vsel %vm727_vm1, %v2331_v49, -inf  ;;  %v737_v60 = vsel %vm727_vm1, %v2333_v52, -inf  ;;  %v229_v61 = vpop.f32.mrb[3].mxu1  ;;  %v2418_v55 = vld [vmem:[%s2705_s2 + $0x18] sm:$0xff]  }
  0xe9   :  { %729 = vmax.xlane.f32.xlu0 %v728_v59  ;;  %738 = vmax.xlane.f32.xlu1 %v737_v60  ;;  %v731_v62 = vsel %vm720_vm2, %v2337_v57, -inf  ;;  %v2345_v63 = vmul.f32 0.35355338, %v153_v56  ;;  %v721_v0 = vsel %vm720_vm2, %v2335_v53, -inf  ;;  %v2349_v1 = vmul.f32 0.35355338, %v229_v61 }
  0xea   :  { %v2057_v50 = vld [vmem:[%s2705_s2 + $0x14] ss:$0 sps:$4 sm:$0x11]   ;;  %1943 = vmatprep.subr.bf16.mxu0 %v973_v51 }
  0xeb   :  { %v724_v2 = vsel %vm720_vm2, %v2345_v63, -inf  ;;  %v734_v3 = vsel %vm720_vm2, %v2349_v1, -inf  ;;  %v1039_v54 = vand.u32 %v2057_v50, %v971_v45  ;;  %1944 = vmatpush3.bf16.msra.mxu0 %v973_v51 }
  0xec   :  { %1957 = vmatprep.subr.bf16.mxu0 %v2418_v55 }
  0xed   :  { %722 = vmax.xlane.f32.xlu0 %v721_v0  ;;  %732 = vmax.xlane.f32.xlu1 %v731_v62 }
  0xee   :  { %1951 = vmatprep.subr.bf16.mxu1 %v1039_v54 }
  0xef   :  { %1952 = vmatpush3.bf16.msra.mxu1 %v1039_v54 }
  0xf1   :  { %725 = vmax.xlane.f32.xlu0 %v724_v2  ;;  %735 = vmax.xlane.f32.xlu1 %v734_v3 }
  0xf5   :  { %v1899_v4 = vpop.f32.mrb[4].mxu0  ;;  %v1907_v6 = vpop.f32.mrb[4].mxu1 }
  0xf6   :  { %v2355_v5 = vmul.f32 0.35355338, %v1899_v4  ;;  %v302_v7 = vpop.f32.mrb[5].mxu0  ;;  %v2357_v8 = vmul.f32 0.35355338, %v1907_v6  ;;  %v378_v10 = vpop.f32.mrb[5].mxu1 }
  0xf7   :  { %v1900_v9 = vpop.f32.mrb[6].mxu0  ;;  %v2359_v11 = vmul.f32 0.35355338, %v302_v7  ;;  %v1908_v13 = vpop.f32.mrb[6].mxu1  ;;  %v2369_v19 = vmul.f32 0.35355338, %v378_v10 }
  0xf8   :  { %v305_v12 = vpop.f32.mrb[7].mxu0  ;;  %v746_v14 = vsel %vm727_vm1, %v2355_v5, -inf  ;;  %v755_v16 = vsel %vm727_vm1, %v2357_v8, -inf  ;;  %v381_v17 = vpop.f32.mrb[7].mxu1  ;;  %v2428_v4 = vld [vmem:[%s2705_s2 + $0x24] sm:$0xff]  }
  0xf9   :  { %v2363_v15 = vmul.f32 0.35355338, %v305_v12  ;;  %747 = vmax.xlane.f32.xlu0 %v746_v14  ;;  %756 = vmax.xlane.f32.xlu1 %v755_v16  ;;  %v740_v20 = vsel %vm720_vm2, %v2359_v11, -inf  ;;  %v2373_v21 = vmul.f32 0.35355338, %v381_v17  ;;  %v749_v22 = vsel %vm720_vm2, %v2369_v19, -inf }
  0xfa   :  { %v2059_v12 = vld [vmem:[%s2705_s2 + $0x20] ss:$0 sps:$4 sm:$0x11]   ;;  %1965 = vmatprep.subr.bf16.mxu1 %v2428_v4  ;;  %v2061_v16 = vld [vmem:[%s2705_s2 + $0x2c] ss:$0 sps:$4 sm:$0x11]  }
  0xfb   :  { %v743_v18 = vsel %vm720_vm2, %v2363_v15, -inf  ;;  %v752_v23 = vsel %vm720_vm2, %v2373_v21, -inf  ;;  %v2447_v17 = vand.u32 %v2059_v12, %v971_v45 }
  0xfd   :  { %741 = vmax.xlane.f32.xlu0 %v740_v20  ;;  %744 = vmax.xlane.f32.xlu1 %v743_v18  ;;  %v2451_v20 = vand.u32 %v2061_v16, %v971_v45 }
 0x101   :  { %750 = vmax.xlane.f32.xlu0 %v749_v22  ;;  %753 = vmax.xlane.f32.xlu1 %v752_v23 }
 0x105   :  { %v1915_v24 = vpop.f32.mrb[8].mxu0  ;;  %v1923_v26 = vpop.f32.mrb[8].mxu1 }
 0x106   :  { %v2379_v25 = vmul.f32 0.35355338, %v1915_v24  ;;  %v454_v27 = vpop.f32.mrb[9].mxu0  ;;  %v2381_v28 = vmul.f32 0.35355338, %v1923_v26  ;;  %v530_v31 = vpop.f32.mrb[9].mxu1 }
 0x107   :  { %v2383_v29 = vmul.f32 0.35355338, %v454_v27  ;;  %v1916_v30 = vpop.f32.mrb[10].mxu0  ;;  %v2385_v33 = vmul.f32 0.35355338, %v530_v31  ;;  %v1924_v34 = vpop.f32.mrb[10].mxu1 }
 0x108   :  { %v457_v32 = vpop.f32.mrb[11].mxu0  ;;  %v764_v35 = vsel %vm727_vm1, %v2379_v25, -inf  ;;  %v773_v38 = vsel %vm727_vm1, %v2381_v28, -inf  ;;  %v533_v39 = vpop.f32.mrb[11].mxu1 }
 0x109   :  { %v2392_v37 = vmul.f32 0.35355338, %v457_v32  ;;  %765 = vmax.xlane.f32.xlu0 %v764_v35  ;;  %774 = vmax.xlane.f32.xlu1 %v773_v38  ;;  %v2399_v41 = vmul.f32 0.35355338, %v533_v39  ;;  %v758_v43 = vsel %vm720_vm2, %v2383_v29, -inf  ;;  %v767_v46 = vsel %vm720_vm2, %v2385_v33, -inf }
 0x10a   :  { %v2063_v27 = vld [vmem:[%s2705_s2 + $0x38] ss:$0 sps:$4 sm:$0x11]   ;;  %v2065_v31 = vld [vmem:[%s2705_s2 + $0x44] ss:$0 sps:$4 sm:$0x11]  }
 0x10b   :  { %v761_v42 = vsel %vm720_vm2, %v2392_v37, -inf  ;;  %v770_v48 = vsel %vm720_vm2, %v2399_v41, -inf  ;;  %v2464_v30 = vand.u32 %v2063_v27, %v971_v45  ;;  %v2469_v32 = vand.u32 %v2065_v31, %v971_v45  ;;  %v2068_v34 = vld [vmem:[%s2705_s2 + $0x50] ss:$0 sps:$4 sm:$0x11]  }
 0x10c   :  { %v2069_v35 = vld [vmem:[%s2705_s2 + $0x5c] ss:$0 sps:$4 sm:$0x11]   ;;  %v2477_v36 = vand.u32 %v2068_v34, %v971_v45 }
 0x10d   :  { %759 = vmax.xlane.f32.xlu0 %v758_v43  ;;  %762 = vmax.xlane.f32.xlu1 %v761_v42  ;;  %v2479_v38 = vand.u32 %v2069_v35, %v971_v45 }
 0x111   :  { %768 = vmax.xlane.f32.xlu0 %v767_v46  ;;  %771 = vmax.xlane.f32.xlu1 %v770_v48 }
 0x115   :  { %v1931_v56 = vpop.f32.mrb[12].mxu0  ;;  %v1939_v59 = vpop.f32.mrb[12].mxu1 }
 0x116   :  { %v606_v58 = vpop.f32.mrb[13].mxu0  ;;  %v682_v62 = vpop.f32.mrb[13].mxu1  ;;  %v2449_v18 = vmul.f32 0.35355338, %v1931_v56  ;;  %v2453_v22 = vmul.f32 0.35355338, %v1939_v59 }
 0x117   :  { %v2421_v60 = vmul.f32 0.35355338, %v606_v58  ;;  %v1932_v61 = vpop.f32.mrb[14].mxu0  ;;  %v2423_v0 = vmul.f32 0.35355338, %v682_v62  ;;  %v1940_v3 = vpop.f32.mrb[14].mxu1 }
 0x118   :  { %v609_v2 = vpop.f32.mrb[15].mxu0  ;;  %v685_v7 = vpop.f32.mrb[15].mxu1  ;;  %v782_v24 = vsel %vm727_vm1, %v2449_v18, -inf  ;;  %v791_v26 = vsel %vm727_vm1, %v2453_v22, -inf }
 0x119   :  { %v2430_v6 = vmul.f32 0.35355338, %v609_v2  ;;  %v776_v9 = vsel %vm720_vm2, %v2421_v60, -inf  ;;  %v2434_v10 = vmul.f32 0.35355338, %v685_v7  ;;  %v785_v14 = vsel %vm720_vm2, %v2423_v0, -inf }
 0x11a   :  { %777 = vmax.xlane.f32.xlu0 %v776_v9 }
 0x11b   :  { %v779_v13 = vsel %vm720_vm2, %v2430_v6, -inf  ;;  %v788_v23 = vsel %vm720_vm2, %v2434_v10, -inf }
 0x11c   :  { %780 = vmax.xlane.f32.xlu1 %v779_v13 }
 0x11e   :  { %786 = vmax.xlane.f32.xlu0 %v785_v14 }
 0x120   :  { %789 = vmax.xlane.f32.xlu1 %v788_v23 }
 0x122   :  { %783 = vmax.xlane.f32.xlu0 %v782_v24 }
 0x124   :  { %792 = vmax.xlane.f32.xlu1 %v791_v26 }
 0x176   :  { %v730_v39 = vpop.xlane.xlu0 %729  ;;  %v739_v40 = vpop.xlane.xlu1 %738 }
 0x177   :  { %v796_v42 = vsub.f32 %v2331_v49, %v730_v39  ;;  %v799_v43 = vsub.f32 %v2333_v52, %v739_v40 }
 0x179   :  { %v822_v44 = vmul.f32 1.442695, %v796_v42  ;;  %v828_v46 = vmul.f32 1.442695, %v799_v43 }
 0x17a   :  { %v723_v47 = vpop.xlane.xlu0 %722  ;;  %v733_v48 = vpop.xlane.xlu1 %732 }
 0x17b   :  { %2070 = vpow2.f32 %v822_v44  ;;  %v794_v50 = vsub.f32 %v2335_v53, %v723_v47  ;;  %v797_v51 = vsub.f32 %v2337_v57, %v733_v48 }
 0x17c   :  { %2072 = vpow2.f32 %v828_v46 }
 0x17d   :  { %v818_v54 = vmul.f32 1.442695, %v794_v50  ;;  %v824_v56 = vmul.f32 1.442695, %v797_v51 }
 0x17e   :  { %v726_v45 = vpop.xlane.xlu0 %725  ;;  %v736_v58 = vpop.xlane.xlu1 %735 }
 0x17f   :  { %2074 = vpow2.f32 %v818_v54  ;;  %v795_v59 = vsub.f32 %v2345_v63, %v726_v45  ;;  %v798_v49 = vsub.f32 %v2349_v1, %v736_v58  ;;  %v2064_v54 = vld [vmem:[%s2705_s2 + $0x3c] sm:$0xff]  }
 0x180   :  { %2076 = vpow2.f32 %v824_v56 }
 0x181   :  { %v820_v52 = vmul.f32 1.442695, %v795_v59  ;;  %v826_v61 = vmul.f32 1.442695, %v798_v49 }
 0x183   :  { %2078 = vpow2.f32 %v820_v52 }
 0x184   :  { %2080 = vpow2.f32 %v826_v61 }
 0x185   :  { %v2071_v62 = vpop.eup %2070 }
 0x186   :  { %v2073_v2 = vpop.eup %2072  ;;  %v748_v53 = vpop.xlane.xlu0 %747  ;;  %v872_v3 = vsel %vm727_vm1, %v2071_v62, 0.0  ;;  %v939_v46 = vpack.c.bf16 %v2071_v62, %v2071_v62 }
 0x187   :  { %v757_v57 = vpop.xlane.xlu1 %756  ;;  %v802_v7 = vsub.f32 %v2355_v5, %v748_v53  ;;  %873 = vadd.xlane.f32.xlu0 %v872_v3  ;;  %v881_v9 = vsel %vm727_vm1, %v2073_v2, 0.0  ;;  %v941_v47 = vpack.c.bf16 %v2073_v2, %v2073_v2 }
 0x188   :  { %v805_v63 = vsub.f32 %v2357_v8, %v757_v57  ;;  %882 = vadd.xlane.f32.xlu1 %v881_v9 }
 0x189   :  { %v2075_v1 = vpop.eup %2074  ;;  %v834_v12 = vmul.f32 1.442695, %v802_v7 }
 0x18a   :  { %v840_v13 = vmul.f32 1.442695, %v805_v63  ;;  %v742_v14 = vpop.xlane.xlu0 %741  ;;  %v866_v16 = vsel %vm720_vm2, %v2075_v1, 0.0  ;;  %v2077_v23 = vpop.eup %2076 }
 0x18b   :  { %2082 = vpow2.f32 %v834_v12  ;;  %v800_v24 = vsub.f32 %v2359_v11, %v742_v14  ;;  %v745_v26 = vpop.xlane.xlu1 %744  ;;  %867 = vadd.xlane.f32.xlu0 %v866_v16  ;;  %v875_v39 = vsel %vm720_vm2, %v2077_v23, 0.0 }
 0x18c   :  { %2084 = vpow2.f32 %v840_v13  ;;  %v801_v5 = vsub.f32 %v2363_v15, %v745_v26 }
 0x18d   :  { %v2079_v27 = vpop.eup %2078  ;;  %v830_v31 = vmul.f32 1.442695, %v800_v24 }
 0x18e   :  { %v2081_v34 = vpop.eup %2080  ;;  %v832_v8 = vmul.f32 1.442695, %v801_v5  ;;  %v751_v35 = vpop.xlane.xlu0 %750  ;;  %v869_v40 = vsel %vm720_vm2, %v2079_v27, 0.0  ;;  %v938_v42 = vpack.c.bf16 %v2079_v27, %v2075_v1  ;;  %v2066_v5 = vld [vmem:[%s2705_s2 + $0x48] sm:$0xff]  }
 0x18f   :  { %2086 = vpow2.f32 %v830_v31  ;;  %v803_v43 = vsub.f32 %v2369_v19, %v751_v35  ;;  %v754_v44 = vpop.xlane.xlu1 %753  ;;  %876 = vadd.xlane.f32.xlu0 %v875_v39  ;;  %870 = vadd.xlane.f32.xlu1 %v869_v40  ;;  %v940_v11 = vpack.c.bf16 %v2081_v34, %v2077_v23  ;;  %v878_v19 = vsel %vm720_vm2, %v2081_v34, 0.0 }
 0x190   :  { %2088 = vpow2.f32 %v832_v8  ;;  %v804_v15 = vsub.f32 %v2373_v21, %v754_v44  ;;  %1945 = vmatprep.mubr.msk.bf16.mxu0 %vm720_vm2, %v938_v42  ;;  %v2062_v21 = vld [vmem:[%s2705_s2 + $0x30] sm:$0xff]  }
 0x191   :  { %v836_v48 = vmul.f32 1.442695, %v803_v43  ;;  %1953 = vmatprep.mubr.msk.bf16.mxu1 %vm720_vm2, %v940_v11  ;;  %1946 = vmatmul.mubr.msk.bf16.vlgmr.msra.gmra.mrb[16].mxu0 %vm720_vm2, %v939_v46 }
 0x192   :  { %v838_v50 = vmul.f32 1.442695, %v804_v15  ;;  %1954 = vmatmul.mubr.msk.bf16.vlgmr.msra.gmra.mrb[16].mxu1 %vm720_vm2, %v941_v47  ;;  %1958 = vmatpush3.bf16.msra.mxu0 %v2418_v55 }
 0x193   :  { %2090 = vpow2.f32 %v836_v48  ;;  %879 = vadd.xlane.f32.xlu1 %v878_v19  ;;  %1959 = vmatprep.subr.bf16.mxu0 %v2447_v17 }
 0x194   :  { %2092 = vpow2.f32 %v838_v50  ;;  %1966 = vmatpush3.bf16.msra.mxu1 %v2428_v4 }
 0x195   :  { %v2083_v51 = vpop.eup %2082  ;;  %1967 = vmatprep.subr.bf16.mxu1 %v2451_v20 }
 0x196   :  { %v2085_v56 = vpop.eup %2084  ;;  %v766_v55 = vpop.xlane.xlu0 %765  ;;  %v890_v45 = vsel %vm727_vm1, %v2083_v51, 0.0  ;;  %1960 = vmatpush3.bf16.msra.mxu0 %v2447_v17 }
 0x197   :  { %v775_v58 = vpop.xlane.xlu1 %774  ;;  %v808_v59 = vsub.f32 %v2379_v25, %v766_v55  ;;  %891 = vadd.xlane.f32.xlu0 %v890_v45  ;;  %v899_v49 = vsel %vm727_vm1, %v2085_v56, 0.0  ;;  %1973 = vmatprep.subr.bf16.mxu0 %v2062_v21  ;;  %v945_v26 = vpack.c.bf16 %v2085_v56, %v2085_v56 }
 0x198   :  { %v811_v4 = vsub.f32 %v2381_v28, %v775_v58  ;;  %900 = vadd.xlane.f32.xlu1 %v899_v49  ;;  %1968 = vmatpush3.bf16.msra.mxu1 %v2451_v20  ;;  %v943_v20 = vpack.c.bf16 %v2083_v51, %v2083_v51 }
 0x199   :  { %v2087_v52 = vpop.eup %2086  ;;  %v846_v61 = vmul.f32 1.442695, %v808_v59  ;;  %1981 = vmatprep.subr.bf16.mxu1 %v2064_v54 }
 0x19a   :  { %v2089_v62 = vpop.eup %2088  ;;  %v852_v2 = vmul.f32 1.442695, %v811_v4  ;;  %v760_v53 = vpop.xlane.xlu0 %759  ;;  %v884_v17 = vsel %vm720_vm2, %v2087_v52, 0.0 }
 0x19b   :  { %2094 = vpow2.f32 %v846_v61  ;;  %v806_v25 = vsub.f32 %v2383_v29, %v760_v53  ;;  %v763_v3 = vpop.xlane.xlu1 %762  ;;  %885 = vadd.xlane.f32.xlu0 %v884_v17  ;;  %v887_v57 = vsel %vm720_vm2, %v2089_v62, 0.0  ;;  %v942_v7 = vpack.c.bf16 %v2089_v62, %v2087_v52 }
 0x19c   :  { %2096 = vpow2.f32 %v852_v2  ;;  %v807_v28 = vsub.f32 %v2392_v37, %v763_v3  ;;  %888 = vadd.xlane.f32.xlu1 %v887_v57 }
 0x19d   :  { %v2091_v9 = vpop.eup %2090  ;;  %v842_v63 = vmul.f32 1.442695, %v806_v25  ;;  %1961 = vmatprep.mubr.msk.bf16.mxu0 %vm720_vm2, %v942_v7 }
 0x19e   :  { %v2093_v1 = vpop.eup %2092  ;;  %v844_v12 = vmul.f32 1.442695, %v807_v28  ;;  %1962 = vmatmul.mubr.msk.bf16.vlgmr.msra.gmra.mrb[20].mxu0 %vm720_vm2, %v943_v20  ;;  %v769_v13 = vpop.xlane.xlu0 %768  ;;  %v893_v29 = vsel %vm720_vm2, %v2091_v9, 0.0 }
 0x19f   :  { %2098 = vpow2.f32 %v842_v63  ;;  %v809_v14 = vsub.f32 %v2385_v33, %v769_v13  ;;  %v772_v16 = vpop.xlane.xlu1 %771  ;;  %894 = vadd.xlane.f32.xlu0 %v893_v29  ;;  %v896_v37 = vsel %vm720_vm2, %v2093_v1, 0.0  ;;  %v944_v23 = vpack.c.bf16 %v2093_v1, %v2091_v9  ;;  %1974 = vmatpush3.bf16.msra.mxu0 %v2062_v21 }
 0x1a0   :  { %2100 = vpow2.f32 %v844_v12  ;;  %v810_v24 = vsub.f32 %v2399_v41, %v772_v16  ;;  %897 = vadd.xlane.f32.xlu1 %v896_v37  ;;  %1975 = vmatprep.subr.bf16.mxu0 %v2464_v30  ;;  %v2067_v41 = vld [vmem:[%s2705_s2 + $0x54] sm:$0xff]  }
 0x1a1   :  { %v848_v27 = vmul.f32 1.442695, %v809_v14  ;;  %1969 = vmatprep.mubr.msk.bf16.mxu1 %vm720_vm2, %v944_v23 }
 0x1a2   :  { %v850_v33 = vmul.f32 1.442695, %v810_v24  ;;  %1970 = vmatmul.mubr.msk.bf16.vlgmr.msra.gmra.mrb[20].mxu1 %vm720_vm2, %v945_v26 }
 0x1a3   :  { %2102 = vpow2.f32 %v848_v27  ;;  %1976 = vmatpush3.bf16.msra.mxu0 %v2464_v30  ;;  %1982 = vmatpush3.bf16.msra.mxu1 %v2064_v54 }
 0x1a4   :  { %2104 = vpow2.f32 %v850_v33  ;;  %1983 = vmatprep.subr.bf16.mxu1 %v2469_v32  ;;  %1989 = vmatprep.subr.bf16.mxu0 %v2066_v5 }
 0x1a5   :  { %v2095_v31 = vpop.eup %2094 }
 0x1a6   :  { %v2097_v34 = vpop.eup %2096  ;;  %v908_v8 = vsel %vm727_vm1, %v2095_v31, 0.0 }
 0x1a7   :  { %909 = vadd.xlane.f32.xlu0 %v908_v8  ;;  %v778_v35 = vpop.xlane.xlu0 %777  ;;  %v917_v39 = vsel %vm727_vm1, %v2097_v34, 0.0  ;;  %1984 = vmatpush3.bf16.msra.mxu1 %v2469_v32  ;;  %v949_v49 = vpack.c.bf16 %v2097_v34, %v2097_v34 }
 0x1a8   :  { %v812_v30 = vsub.f32 %v2421_v60, %v778_v35  ;;  %918 = vadd.xlane.f32.xlu1 %v917_v39  ;;  %1997 = vmatprep.subr.bf16.mxu1 %v2067_v41  ;;  %v947_v60 = vpack.c.bf16 %v2095_v31, %v2095_v31 }
 0x1a9   :  { %v2099_v40 = vpop.eup %2098  ;;  %v781_v42 = vpop.xlane.xlu1 %780 }
 0x1aa   :  { %v2101_v43 = vpop.eup %2100  ;;  %v854_v44 = vmul.f32 1.442695, %v812_v30  ;;  %v813_v11 = vsub.f32 %v2430_v6, %v781_v42  ;;  %v902_v46 = vsel %vm720_vm2, %v2099_v40, 0.0  ;;  %v1643_v30 = vld [vmem:[%s2706_s3 + $0x8] sm:$0x1] }
 0x1ab   :  { %903 = vadd.xlane.f32.xlu0 %v902_v46  ;;  %v787_v15 = vpop.xlane.xlu0 %786  ;;  %v905_v47 = vsel %vm720_vm2, %v2101_v43, 0.0  ;;  %v946_v48 = vpack.c.bf16 %v2101_v43, %v2099_v40 }
 0x1ac   :  { %v856_v50 = vmul.f32 1.442695, %v813_v11  ;;  %v815_v32 = vsub.f32 %v2423_v0, %v787_v15  ;;  %906 = vadd.xlane.f32.xlu1 %v905_v47  ;;  %2106 = vpow2.f32 %v854_v44  ;;  %v1648_v15 = vld [vmem:[%s2706_s3 + $0x14] sm:$0x1] }
 0x1ad   :  { %v2103_v19 = vpop.eup %2102  ;;  %1977 = vmatprep.mubr.msk.bf16.mxu0 %vm720_vm2, %v946_v48  ;;  %v790_v21 = vpop.xlane.xlu1 %789 }
 0x1ae   :  { %v2105_v51 = vpop.eup %2104  ;;  %2108 = vpow2.f32 %v856_v50  ;;  %v860_v6 = vmul.f32 1.442695, %v815_v32  ;;  %1978 = vmatmul.mubr.msk.bf16.vlgmr.msra.gmra.mrb[24].mxu0 %vm720_vm2, %v947_v60  ;;  %v816_v54 = vsub.f32 %v2434_v10, %v790_v21  ;;  %v911_v56 = vsel %vm720_vm2, %v2103_v19, 0.0 }
 0x1af   :  { %912 = vadd.xlane.f32.xlu0 %v911_v56  ;;  %v784_v55 = vpop.xlane.xlu0 %783  ;;  %v914_v0 = vsel %vm720_vm2, %v2105_v51, 0.0  ;;  %v948_v45 = vpack.c.bf16 %v2105_v51, %v2103_v19  ;;  %1990 = vmatpush3.bf16.msra.mxu0 %v2066_v5 }
 0x1b0   :  { %v862_v58 = vmul.f32 1.442695, %v816_v54  ;;  %v814_v59 = vsub.f32 %v2449_v18, %v784_v55  ;;  %915 = vadd.xlane.f32.xlu1 %v914_v0  ;;  %1991 = vmatprep.subr.bf16.mxu0 %v2477_v36  ;;  %2110 = vpow2.f32 %v860_v6 }
 0x1b1   :  { %1985 = vmatprep.mubr.msk.bf16.mxu1 %vm720_vm2, %v948_v45  ;;  %v793_v4 = vpop.xlane.xlu1 %792 }
 0x1b2   :  { %2112 = vpow2.f32 %v862_v58  ;;  %v858_v10 = vmul.f32 1.442695, %v814_v59  ;;  %1986 = vmatmul.mubr.msk.bf16.vlgmr.msra.gmra.mrb[24].mxu1 %vm720_vm2, %v949_v49  ;;  %v817_v52 = vsub.f32 %v2453_v22, %v793_v4 }
 0x1b3   :  { %1998 = vmatpush3.bf16.msra.mxu1 %v2067_v41  ;;  %1992 = vmatpush3.bf16.msra.mxu0 %v2477_v36 }
 0x1b4   :  { %2114 = vpow2.f32 %v858_v10  ;;  %v864_v61 = vmul.f32 1.442695, %v817_v52  ;;  %1999 = vmatprep.subr.bf16.mxu1 %v2479_v38 }
 0x1b6   :  { %2116 = vpow2.f32 %v864_v61  ;;  %v2107_v18 = vpop.eup %2106 }
 0x1b7   :  { %2000 = vmatpush3.bf16.msra.mxu1 %v2479_v38  ;;  %v920_v28 = vsel %vm720_vm2, %v2107_v18, 0.0 }
 0x1b8   :  { %v2109_v62 = vpop.eup %2108 }
 0x1b9   :  { %v950_v2 = vpack.c.bf16 %v2109_v62, %v2107_v18  ;;  %v923_v20 = vsel %vm720_vm2, %v2109_v62, 0.0 }
 0x1ba   :  { %v2111_v53 = vpop.eup %2110 }
 0x1bb   :  { %1993 = vmatprep.mubr.msk.bf16.mxu0 %vm720_vm2, %v950_v2  ;;  %v929_v9 = vsel %vm720_vm2, %v2111_v53, 0.0 }
 0x1bc   :  { %v2113_v17 = vpop.eup %2112 }
 0x1bd   :  { %v952_v25 = vpack.c.bf16 %v2113_v17, %v2111_v53  ;;  %v932_v63 = vsel %vm720_vm2, %v2113_v17, 0.0  ;;  %v1653_v53 = vld [vmem:[%s2706_s3 + $0x20] sm:$0x1] }
 0x1be   :  { %v2115_v3 = vpop.eup %2114 }
 0x1bf   :  { %2001 = vmatprep.mubr.msk.bf16.mxu1 %vm720_vm2, %v952_v25  ;;  %v926_v22 = vsel %vm727_vm1, %v2115_v3, 0.0  ;;  %v951_v36 = vpack.c.bf16 %v2115_v3, %v2115_v3 }
 0x1c0   :  { %v2117_v57 = vpop.eup %2116  ;;  %927 = vadd.xlane.f32.xlu0 %v926_v22 }
 0x1c1   :  { %1994 = vmatmul.mubr.msk.bf16.vlgmr.msra.gmra.mrb[28].mxu0 %vm720_vm2, %v951_v36  ;;  %v935_v7 = vsel %vm727_vm1, %v2117_v57, 0.0  ;;  %v953_v38 = vpack.c.bf16 %v2117_v57, %v2117_v57 }
 0x1c2   :  { %936 = vadd.xlane.f32.xlu1 %v935_v7 }
 0x1c3   :  { %2002 = vmatmul.mubr.msk.bf16.vlgmr.msra.gmra.mrb[28].mxu1 %vm720_vm2, %v953_v38 }
 0x1c4   :  { %921 = vadd.xlane.f32.xlu0 %v920_v28 }
 0x1c6   :  { %924 = vadd.xlane.f32.xlu1 %v923_v20 }
 0x1c8   :  { %930 = vadd.xlane.f32.xlu0 %v929_v9 }
 0x1ca   :  { %933 = vadd.xlane.f32.xlu1 %v932_v63 }
 0x214   :  { %v874_v1 = vpop.xlane.xlu0 %873 }
 0x215   :  { %v883_v12 = vpop.xlane.xlu1 %882  ;;  %2118 = vrcp.f32 %v874_v1 }
 0x216   :  { %2120 = vrcp.f32 %v883_v12 }
 0x218   :  { %v868_v29 = vpop.xlane.xlu0 %867 }
 0x219   :  { %2122 = vrcp.f32 %v868_v29  ;;  %v1658_v29 = vld [vmem:[%s2706_s3 + $0x2c] sm:$0x1] }
 0x21c   :  { %v871_v13 = vpop.xlane.xlu1 %870  ;;  %v877_v16 = vpop.xlane.xlu0 %876 }
 0x21d   :  { %2124 = vrcp.f32 %v877_v16 }
 0x21e   :  { %2126 = vrcp.f32 %v871_v13 }
 0x21f   :  { %v2119_v24 = vpop.eup %2118 }
 0x220   :  { %v880_v14 = vpop.xlane.xlu1 %879  ;;  %v2121_v5 = vpop.eup %2120 }
 0x221   :  { %2128 = vrcp.f32 %v880_v14 }
 0x223   :  { %v2123_v41 = vpop.eup %2122 }
 0x224   :  { %v892_v37 = vpop.xlane.xlu0 %891 }
 0x225   :  { %v901_v23 = vpop.xlane.xlu1 %900  ;;  %2130 = vrcp.f32 %v892_v37 }
 0x227   :  { %v2125_v35 = vpop.eup %2124 }
 0x228   :  { %v886_v26 = vpop.xlane.xlu0 %885  ;;  %v2127_v11 = vpop.eup %2126 }
 0x229   :  { %v889_v27 = vpop.xlane.xlu1 %888  ;;  %2132 = vrcp.f32 %v886_v26 }
 0x22a   :  { %2134 = vrcp.f32 %v889_v27 }
 0x22b   :  { %v2129_v32 = vpop.eup %2128  ;;  %2136 = vrcp.f32 %v901_v23 }
 0x22c   :  { %v895_v6 = vpop.xlane.xlu0 %894 }
 0x22d   :  { %v898_v58 = vpop.xlane.xlu1 %897  ;;  %2138 = vrcp.f32 %v895_v6 }
 0x22e   :  { %2140 = vrcp.f32 %v898_v58 }
 0x22f   :  { %v2131_v10 = vpop.eup %2130 }
 0x233   :  { %v2133_v61 = vpop.eup %2132 }
 0x234   :  { %v910_v49 = vpop.xlane.xlu0 %909  ;;  %v2135_v3 = vpop.eup %2134 }
 0x235   :  { %v919_v4 = vpop.xlane.xlu1 %918  ;;  %v2137_v57 = vpop.eup %2136  ;;  %2142 = vrcp.f32 %v910_v49 }
 0x237   :  { %v2139_v9 = vpop.eup %2138 }
 0x238   :  { %v904_v2 = vpop.xlane.xlu0 %903  ;;  %v2141_v37 = vpop.eup %2140 }
 0x239   :  { %v907_v7 = vpop.xlane.xlu1 %906  ;;  %2144 = vrcp.f32 %v904_v2 }
 0x23a   :  { %2146 = vrcp.f32 %v907_v7 }
 0x23b   :  { %2148 = vrcp.f32 %v919_v4 }
 0x23c   :  { %v913_v26 = vpop.xlane.xlu0 %912 }
 0x23d   :  { %2150 = vrcp.f32 %v913_v26 }
 0x264   :  { %v1947_v33 = vpop.f32.mrb[16].mxu0 }
 0x265   :  { %v1511_v31 = vmul.f32 %v2119_v24, %v1947_v33  ;;  %v1955_v34 = vpop.f32.mrb[16].mxu1  ;;  %v1009_v8 = vpop.f32.mrb[17].mxu0 }
 0x266   :  { %v1514_v40 = vmul.f32 %v2121_v5, %v1955_v34  ;;  %v1509_v42 = vmul.f32 %v2123_v41, %v1009_v8  ;;  %v1075_v43 = vpop.f32.mrb[17].mxu1  ;;  %v1948_v44 = vpop.f32.mrb[18].mxu0 }
 0x267   :  { %v1791_v46 = vpack.c.bf16 %v1511_v31, %v1511_v31  ;;  %v1512_v47 = vmul.f32 %v2125_v35, %v1075_v43  ;;  %v1956_v48 = vpop.f32.mrb[18].mxu1  ;;  %v1012_v50 = vpop.f32.mrb[19].mxu0  ;;  %v1663_v44 = vld [vmem:[%s2706_s3 + $0x38] sm:$0x1] }
 0x268   :  { %v1794_v60 = vpack.c.bf16 %v1514_v40, %v1514_v40  ;;  %v1789_v19 = vpack.c.bf16 %v1509_v42, %v1509_v42  ;;  %v1510_v21 = vmul.f32 %v2127_v11, %v1012_v50  ;;  %v1078_v51 = vpop.f32.mrb[19].mxu1  ;;  %v916_v41 = vpop.xlane.xlu1 %915 }
 0x269   :  { %v1644_v54 = vsel %vm2571_vm6, %v1791_v46, %v1643_v30  ;;  %v1792_v56 = vpack.c.bf16 %v1512_v47, %v1512_v47  ;;  %v1513_v55 = vmul.f32 %v2129_v32, %v1078_v51  ;;  %2152 = vrcp.f32 %v916_v41  ;;  %v928_v34 = vpop.xlane.xlu0 %927  ;;  %v2143_v35 = vpop.eup %2142 }
 0x26a   :  { %1645 = vst [vmem:[%s2706_s3 + $0x8] sm:$0x1] %v1644_v54  ;;  %v1649_v0 = vsel %vm2571_vm6, %v1794_v60, %v1648_v15  ;;  %1638 = vst.msk [vmem:[%s2706_s3] sm:$0xf] %vm1637_vm7, %v1789_v19  ;;  %v1790_v45 = vpack.c.bf16 %v1510_v21, %v1510_v21  ;;  %v2145_v40 = vpop.eup %2144  ;;  %2154 = vrcp.f32 %v928_v34 }
 0x26b   :  { %1650 = vst [vmem:[%s2706_s3 + $0x14] sm:$0x1] %v1649_v0  ;;  %1646 = vst.msk [vmem:[%s2706_s3 + $0xc] sm:$0xf] %vm1637_vm7, %v1792_v56  ;;  %v1793_v59 = vpack.c.bf16 %v1513_v55, %v1513_v55  ;;  %v2147_v15 = vpop.eup %2146 }
 0x26c   :  { %1639 = vst.msk [vmem:[%s2706_s3 + $0x4] sm:$0xf] %vm1637_vm7, %v1790_v45  ;;  %v937_v8 = vpop.xlane.xlu1 %936  ;;  %v2149_v32 = vpop.eup %2148  ;;  %v1668_v45 = vld [vmem:[%s2706_s3 + $0x44] sm:$0x1] }
 0x26d   :  { %1647 = vst.msk [vmem:[%s2706_s3 + $0x10] sm:$0xf] %vm1637_vm7, %v1793_v59  ;;  %v922_v47 = vpop.xlane.xlu0 %921  ;;  %v2151_v51 = vpop.eup %2150  ;;  %2156 = vrcp.f32 %v937_v8 }
 0x26e   :  { %2158 = vrcp.f32 %v922_v47 }
 0x270   :  { %v925_v6 = vpop.xlane.xlu1 %924 }
 0x271   :  { %v1963_v52 = vpop.f32.mrb[20].mxu0  ;;  %2160 = vrcp.f32 %v925_v6 }
 0x272   :  { %v1517_v18 = vmul.f32 %v2131_v10, %v1963_v52  ;;  %v1141_v62 = vpop.f32.mrb[21].mxu0 }
 0x273   :  { %v1515_v17 = vmul.f32 %v2133_v61, %v1141_v62  ;;  %v1964_v25 = vpop.f32.mrb[22].mxu0  ;;  %v2153_v49 = vpop.eup %2152 }
 0x274   :  { %v1797_v22 = vpack.c.bf16 %v1517_v18, %v1517_v18  ;;  %v1144_v36 = vpop.f32.mrb[23].mxu0  ;;  %v931_v18 = vpop.xlane.xlu0 %930 }
 0x275   :  { %v1795_v38 = vpack.c.bf16 %v1515_v17, %v1515_v17  ;;  %v1516_v28 = vmul.f32 %v2135_v3, %v1144_v36  ;;  %v1971_v20 = vpop.f32.mrb[20].mxu1  ;;  %2162 = vrcp.f32 %v931_v18  ;;  %v2155_v17 = vpop.eup %2154 }
 0x276   :  { %v1654_v63 = vsel %vm2571_vm6, %v1797_v22, %v1653_v53  ;;  %v1520_v1 = vmul.f32 %v2137_v57, %v1971_v20  ;;  %v1207_v12 = vpop.f32.mrb[21].mxu1  ;;  %v934_v53 = vpop.xlane.xlu1 %933 }
 0x277   :  { %1655 = vst [vmem:[%s2706_s3 + $0x20] sm:$0x1] %v1654_v63  ;;  %1651 = vst.msk [vmem:[%s2706_s3 + $0x18] sm:$0xf] %vm1637_vm7, %v1795_v38  ;;  %v1796_v13 = vpack.c.bf16 %v1516_v28, %v1516_v28  ;;  %v1518_v14 = vmul.f32 %v2139_v9, %v1207_v12  ;;  %v1972_v16 = vpop.f32.mrb[22].mxu1  ;;  %2164 = vrcp.f32 %v934_v53  ;;  %v2157_v25 = vpop.eup %2156 }
 0x278   :  { %v1800_v23 = vpack.c.bf16 %v1520_v1, %v1520_v1  ;;  %v1210_v24 = vpop.f32.mrb[23].mxu1  ;;  %v2159_v22 = vpop.eup %2158  ;;  %v1673_v38 = vld [vmem:[%s2706_s3 + $0x50] sm:$0x1]  ;;  %v1678_v16 = vld [vmem:[%s2706_s3 + $0x5c] sm:$0x1] }
 0x279   :  { %1652 = vst.msk [vmem:[%s2706_s3 + $0x1c] sm:$0xf] %vm1637_vm7, %v1796_v13  ;;  %v1798_v5 = vpack.c.bf16 %v1518_v14, %v1518_v14  ;;  %v1519_v27 = vmul.f32 %v2141_v37, %v1210_v24 }
 0x27a   :  { %v1659_v33 = vsel %vm2571_vm6, %v1800_v23, %v1658_v29 }
 0x27b   :  { %1660 = vst [vmem:[%s2706_s3 + $0x2c] sm:$0x1] %v1659_v33  ;;  %1656 = vst.msk [vmem:[%s2706_s3 + $0x24] sm:$0xf] %vm1637_vm7, %v1798_v5  ;;  %v1799_v31 = vpack.c.bf16 %v1519_v27, %v1519_v27  ;;  %v2161_v7 = vpop.eup %2160 }
 0x27d   :  { %1657 = vst.msk [vmem:[%s2706_s3 + $0x28] sm:$0xf] %vm1637_vm7, %v1799_v31 }
 0x27f   :  { %v2163_v63 = vpop.eup %2162 }
 0x281   :  { %v1979_v30 = vpop.f32.mrb[24].mxu0  ;;  %v2165_v26 = vpop.eup %2164 }
 0x282   :  { %v1523_v42 = vmul.f32 %v2143_v35, %v1979_v30  ;;  %v1273_v43 = vpop.f32.mrb[25].mxu0 }
 0x283   :  { %v1521_v11 = vmul.f32 %v2145_v40, %v1273_v43  ;;  %v1980_v46 = vpop.f32.mrb[26].mxu0 }
 0x284   :  { %v1803_v48 = vpack.c.bf16 %v1523_v42, %v1523_v42  ;;  %v1276_v50 = vpop.f32.mrb[27].mxu0 }
 0x285   :  { %v1801_v60 = vpack.c.bf16 %v1521_v11, %v1521_v11  ;;  %v1522_v19 = vmul.f32 %v2147_v15, %v1276_v50  ;;  %v1987_v21 = vpop.f32.mrb[24].mxu1 }
 0x286   :  { %v1664_v54 = vsel %vm2571_vm6, %v1803_v48, %v1663_v44  ;;  %v1526_v56 = vmul.f32 %v2149_v32, %v1987_v21  ;;  %v1339_v55 = vpop.f32.mrb[25].mxu1 }
 0x287   :  { %1665 = vst [vmem:[%s2706_s3 + $0x38] sm:$0x1] %v1664_v54  ;;  %1661 = vst.msk [vmem:[%s2706_s3 + $0x30] sm:$0xf] %vm1637_vm7, %v1801_v60  ;;  %v1802_v0 = vpack.c.bf16 %v1522_v19, %v1522_v19  ;;  %v1524_v58 = vmul.f32 %v2151_v51, %v1339_v55  ;;  %v1988_v59 = vpop.f32.mrb[26].mxu1 }
 0x288   :  { %v1806_v4 = vpack.c.bf16 %v1526_v56, %v1526_v56  ;;  %v1342_v10 = vpop.f32.mrb[27].mxu1 }
 0x289   :  { %1662 = vst.msk [vmem:[%s2706_s3 + $0x34] sm:$0xf] %vm1637_vm7, %v1802_v0  ;;  %v1804_v52 = vpack.c.bf16 %v1524_v58, %v1524_v58  ;;  %v1525_v61 = vmul.f32 %v2153_v49, %v1342_v10 }
 0x28a   :  { %v1669_v62 = vsel %vm2571_vm6, %v1806_v4, %v1668_v45 }
 0x28b   :  { %1670 = vst [vmem:[%s2706_s3 + $0x44] sm:$0x1] %v1669_v62  ;;  %1666 = vst.msk [vmem:[%s2706_s3 + $0x3c] sm:$0xf] %vm1637_vm7, %v1804_v52  ;;  %v1805_v2 = vpack.c.bf16 %v1525_v61, %v1525_v61 }
 0x28d   :  { %1667 = vst.msk [vmem:[%s2706_s3 + $0x40] sm:$0xf] %vm1637_vm7, %v1805_v2 }
 0x294   :  { %v1995_v3 = vpop.f32.mrb[28].mxu0 }
 0x295   :  { %v1529_v36 = vmul.f32 %v2155_v17, %v1995_v3  ;;  %v1405_v57 = vpop.f32.mrb[29].mxu0 }
 0x296   :  { %v1527_v28 = vmul.f32 %v2159_v22, %v1405_v57  ;;  %v1996_v20 = vpop.f32.mrb[30].mxu0  ;;  %v2003_v9 = vpop.f32.mrb[28].mxu1 }
 0x297   :  { %v1809_v1 = vpack.c.bf16 %v1529_v36, %v1529_v36  ;;  %v1532_v12 = vmul.f32 %v2157_v25, %v2003_v9  ;;  %v1408_v13 = vpop.f32.mrb[31].mxu0  ;;  %v1471_v29 = vpop.f32.mrb[29].mxu1 }
 0x298   :  { %v1807_v14 = vpack.c.bf16 %v1527_v28, %v1527_v28  ;;  %v1528_v37 = vmul.f32 %v2161_v7, %v1408_v13  ;;  %v1530_v23 = vmul.f32 %v2163_v63, %v1471_v29  ;;  %v2004_v24 = vpop.f32.mrb[30].mxu1 }
 0x299   :  { %v1674_v5 = vsel %vm2571_vm6, %v1809_v1, %v1673_v38  ;;  %v1812_v27 = vpack.c.bf16 %v1532_v12, %v1532_v12  ;;  %v1474_v33 = vpop.f32.mrb[31].mxu1 }
 0x29a   :  { %1675 = vst [vmem:[%s2706_s3 + $0x50] sm:$0x1] %v1674_v5  ;;  %1671 = vst.msk [vmem:[%s2706_s3 + $0x48] sm:$0xf] %vm1637_vm7, %v1807_v14  ;;  %v1808_v41 = vpack.c.bf16 %v1528_v37, %v1528_v37  ;;  %v1810_v31 = vpack.c.bf16 %v1530_v23, %v1530_v23  ;;  %v1531_v34 = vmul.f32 %v2165_v26, %v1474_v33 }
 0x29b   :  { %v1679_v8 = vsel %vm2571_vm6, %v1812_v27, %v1678_v16 }
 0x29c   :  { %1680 = vst [vmem:[%s2706_s3 + $0x5c] sm:$0x1] %v1679_v8  ;;  %1672 = vst.msk [vmem:[%s2706_s3 + $0x4c] sm:$0xf] %vm1637_vm7, %v1808_v41  ;;  %v1811_v35 = vpack.c.bf16 %v1531_v34, %v1531_v34 }
 0x29d   :  { %1676 = vst.msk [vmem:[%s2706_s3 + $0x54] sm:$0xf] %vm1637_vm7, %v1810_v31 }
 0x29e   :  { %1677 = vst.msk [vmem:[%s2706_s3 + $0x58] sm:$0xf] %vm1637_vm7, %v1811_v35 }

// kernel: _vit_trunk.16
= control target key start
LH: loop header
LB: loop body
LE: loop exit
PB: predicated region body
PF: predicated region fallthrough
CT: control target
= control target key end

     0   :  { %vm40_vm0 = vcmask 261120   ;;  %vm53_vm1 = vcmask 254976   ;;  %v393_v39 = vmov 0.0   ;;  %vm394_vm2 = vmmov 0   ;;  %s494_s0 = inlined_call_operand.vmem [shape: bf16[34,32], index: 0, kind: input, shape index: {}]   ;;  %s495_s1 = inlined_call_operand.vmem [shape: bf16[32,128], index: 1, kind: input, shape index: {}]   ;;  %s496_s3 = inlined_call_operand.vmem [shape: f32[1,32], index: 3, kind: input, shape index: {}]   ;;  %s497_s4 = inlined_call_operand.vmem [shape: f32[1,32], index: 4, kind: input, shape index: {}]   ;;  %s498_s2 = inlined_call_operand.vmem [shape: f32[1,128], index: 2, kind: input, shape index: {}]   ;;  %s499_s5 = inlined_call_operand.vmem [shape: bf16[34,128], index: 5, kind: output, shape index: {}]  }
   0x1   :  { %v342_v0 = vld [vmem:[%s494_s0 + $0x8] sm:$0xff]   ;;  %v325_v1 = vld [vmem:[%s494_s0] sm:$0xff]   ;;  %v34_v5 = vld [vmem:[%s494_s0 + $0x10] sm:$0x1]  ;;  %365 = vmatprep.subr.bf16.mxu1 %v393_v39  ;;  %29 = vst [vmem:[#allocation2 + $0x20] sm:$0x3] %v393_v39  ;;  %349 = vmatprep.subr.bf16.mxu0 %v393_v39 }
   0x2   :  { %v330_v2 = vunpack.c.l.bf16 %v342_v0  ;;  %v331_v3 = vunpack.c.h.bf16 %v342_v0  ;;  %v326_v4 = vunpack.c.l.bf16 %v325_v1  ;;  %v327_v6 = vunpack.c.h.bf16 %v325_v1  ;;  %v371_v38 = vld [vmem:[%s495_s1] sm:$0xff]   ;;  %v372_v40 = vld [vmem:[%s495_s1 + $0x8] sm:$0xff]   ;;  %357 = vmatprep.mubr.msk.bf16.mxu1 %vm394_vm2, %v393_v39  ;;  %353 = vmatprep.mubr.msk.bf16.mxu0 %vm394_vm2, %v393_v39 }
   0x3   :  { %v39_v10 = vunpack.c.l.bf16 %v34_v5  ;;  %367 = vmatpush3.bf16.msra.mxu1 %v371_v38  ;;  %350 = vmatpush3.bf16.msra.mxu0 %v371_v38  ;;  %v306_v58 = vld [vmem:[%s496_s3] ss:$0 sm:$0xff] }
   0x4   :  { %v47_v7 = vsel %vm40_vm0, %v330_v2, 0.0  ;;  %v41_v8 = vsel %vm40_vm0, %v326_v4, 0.0  ;;  %v50_v9 = vsel %vm40_vm0, %v331_v3, 0.0  ;;  %v44_v11 = vsel %vm40_vm0, %v327_v6, 0.0  ;;  %366 = vmatprep.subr.bf16.mxu1 %v393_v39  ;;  %351 = vmatprep.subr.bf16.mxu0 %v393_v39  ;;  %v307_v0 = vld [vmem:[%s497_s4] ss:$0 sm:$0xff] }
   0x5   :  { %48 = vadd.xlane.f32.xlu0 %v47_v7  ;;  %42 = vadd.xlane.f32.xlu1 %v41_v8  ;;  %v54_v12 = vsel %vm53_vm1, %v39_v10, 0.0 }
   0x7   :  { %368 = vmatpush3.bf16.msra.mxu1 %v372_v40  ;;  %352 = vmatpush3.bf16.msra.mxu0 %v372_v40 }
   0x9   :  { %51 = vadd.xlane.f32.xlu0 %v50_v9  ;;  %45 = vadd.xlane.f32.xlu1 %v44_v11 }
   0xd   :  { %55 = vadd.xlane.f32.xlu0 %v54_v12 }
  0x92   :  { %v49_v13 = vpop.xlane.xlu0 %48  ;;  %v43_v14 = vpop.xlane.xlu1 %42 }
  0x93   :  { %v60_v15 = vmul.f32 0.03125, %v49_v13  ;;  %v58_v16 = vmul.f32 0.03125, %v43_v14 }
  0x95   :  { %v439_v17 = vsub.f32 %v330_v2, %v60_v15  ;;  %v441_v18 = vsub.f32 %v326_v4, %v58_v16 }
  0x96   :  { %v52_v19 = vpop.xlane.xlu0 %51  ;;  %v46_v20 = vpop.xlane.xlu1 %45 }
  0x97   :  { %v61_v21 = vmul.f32 0.03125, %v52_v19  ;;  %v70_v22 = vmul.f32 %v439_v17, %v439_v17  ;;  %v59_v23 = vmul.f32 0.03125, %v46_v20  ;;  %v68_v24 = vmul.f32 %v441_v18, %v441_v18 }
  0x99   :  { %v66_v25 = vsub.f32 %v331_v3, %v61_v21  ;;  %v79_v26 = vsel %vm40_vm0, %v70_v22, 0.0  ;;  %v448_v27 = vsub.f32 %v327_v6, %v59_v23  ;;  %v73_v31 = vsel %vm40_vm0, %v68_v24, 0.0 }
  0x9a   :  { %v56_v28 = vpop.xlane.xlu0 %55  ;;  %80 = vadd.xlane.f32.xlu1 %v79_v26 }
  0x9b   :  { %v62_v29 = vmul.f32 0.03125, %v56_v28  ;;  %v71_v30 = vmul.f32 %v66_v25, %v66_v25  ;;  %v69_v32 = vmul.f32 %v448_v27, %v448_v27  ;;  %v139_v28 = vld [vmem:[#allocation2 + $0x20] sm:$0x3] }
  0x9d   :  { %v453_v33 = vsub.f32 %v39_v10, %v62_v29  ;;  %v82_v34 = vsel %vm40_vm0, %v71_v30, 0.0  ;;  %v76_v36 = vsel %vm40_vm0, %v69_v32, 0.0 }
  0x9e   :  { %83 = vadd.xlane.f32.xlu0 %v82_v34  ;;  %74 = vadd.xlane.f32.xlu1 %v73_v31 }
  0x9f   :  { %v72_v35 = vmul.f32 %v453_v33, %v453_v33 }
  0xa1   :  { %v85_v37 = vsel %vm53_vm1, %v72_v35, 0.0 }
  0xa2   :  { %86 = vadd.xlane.f32.xlu1 %v85_v37  ;;  %77 = vadd.xlane.f32.xlu0 %v76_v36 }
 0x127   :  { %v81_v41 = vpop.xlane.xlu1 %80 }
 0x128   :  { %v90_v42 = vmul.f32 0.03125, %v81_v41 }
 0x12a   :  { %v95_v43 = vadd.f32 1e-06, %v90_v42 }
 0x12b   :  { %v84_v44 = vpop.xlane.xlu0 %83  ;;  %v75_v45 = vpop.xlane.xlu1 %74 }
 0x12c   :  { %373 = vrsqrt.f32 %v95_v43  ;;  %v91_v46 = vmul.f32 0.03125, %v84_v44  ;;  %v88_v47 = vmul.f32 0.03125, %v75_v45 }
 0x12e   :  { %v96_v48 = vadd.f32 1e-06, %v91_v46  ;;  %v93_v49 = vadd.f32 1e-06, %v88_v47 }
 0x12f   :  { %v78_v50 = vpop.xlane.xlu0 %77  ;;  %v87_v51 = vpop.xlane.xlu1 %86 }
 0x130   :  { %375 = vrsqrt.f32 %v96_v48  ;;  %v89_v52 = vmul.f32 0.03125, %v78_v50  ;;  %v92_v53 = vmul.f32 0.03125, %v87_v51 }
 0x131   :  { %377 = vrsqrt.f32 %v93_v49 }
 0x132   :  { %v94_v54 = vadd.f32 1e-06, %v89_v52  ;;  %v97_v55 = vadd.f32 1e-06, %v92_v53 }
 0x134   :  { %379 = vrsqrt.f32 %v94_v54 }
 0x135   :  { %381 = vrsqrt.f32 %v97_v55 }
 0x136   :  { %v374_v56 = vpop.eup %373 }
 0x137   :  { %v105_v57 = vmul.f32 %v374_v56, %v439_v17 }
 0x139   :  { %v117_v62 = vmul.f32 %v306_v58, %v105_v57 }
 0x13a   :  { %v376_v59 = vpop.eup %375 }
 0x13b   :  { %v378_v60 = vpop.eup %377  ;;  %v106_v61 = vmul.f32 %v376_v59, %v66_v25  ;;  %v129_v5 = vadd.f32 %v307_v0, %v117_v62 }
 0x13c   :  { %v103_v63 = vmul.f32 %v378_v60, %v441_v18  ;;  %v313_v18 = vld [vmem:[%s498_s2] ss:$0 sm:$0xff] }
 0x13d   :  { %v118_v1 = vmul.f32 %v306_v58, %v106_v61 }
 0x13e   :  { %v380_v2 = vpop.eup %379  ;;  %v115_v7 = vmul.f32 %v306_v58, %v103_v63 }
 0x13f   :  { %v382_v3 = vpop.eup %381  ;;  %v104_v4 = vmul.f32 %v380_v2, %v448_v27  ;;  %v130_v6 = vadd.f32 %v307_v0, %v118_v1 }
 0x140   :  { %v107_v8 = vmul.f32 %v382_v3, %v453_v33  ;;  %v127_v12 = vadd.f32 %v307_v0, %v115_v7 }
 0x141   :  { %v133_v9 = vpack.c.bf16 %v130_v6, %v129_v5  ;;  %v116_v10 = vmul.f32 %v306_v58, %v104_v4 }
 0x142   :  { %v119_v11 = vmul.f32 %v306_v58, %v107_v8 }
 0x143   :  { %358 = vmatmul.mubr.msk.bf16.vlgmr.msra.gmra.mrb[0].mxu1 %vm40_vm0, %v133_v9  ;;  %v128_v13 = vadd.f32 %v307_v0, %v116_v10 }
 0x144   :  { %361 = vmatprep.mubr.msk.bf16.mxu1 %vm394_vm2, %v393_v39  ;;  %v131_v15 = vadd.f32 %v307_v0, %v119_v11 }
 0x145   :  { %v132_v14 = vpack.c.bf16 %v128_v13, %v127_v12 }
 0x146   :  { %v134_v16 = vpack.c.bf16 %v131_v15, %v131_v15 }
 0x147   :  { %354 = vmatmul.mubr.msk.bf16.vlgmr.msra.gmra.mrb[0].mxu0 %vm40_vm0, %v132_v14 }
 0x14b   :  { %362 = vmatmul.mubr.msk.bf16.gmra.mrb[4].mxu1 %vm40_vm0, %v134_v16 }
 0x216   :  { %v207_v17 = vpop.f32.mrb[0].mxu1 }
 0x217   :  { %v359_v19 = vpop.f32.mrb[1].mxu1  ;;  %v248_v21 = vadd.f32 %v313_v18, %v207_v17 }
 0x218   :  { %v210_v20 = vpop.f32.mrb[2].mxu1 }
 0x219   :  { %v360_v22 = vpop.f32.mrb[3].mxu1  ;;  %v258_v24 = vmul.f32 0.70710677, %v248_v21  ;;  %v249_v25 = vadd.f32 %v313_v18, %v210_v20  ;;  %v253_v45 = vmul.f32 0.5, %v248_v21 }
 0x21a   :  { %v199_v23 = vpop.f32.mrb[0].mxu0 }
 0x21b   :  { %v355_v26 = vpop.f32.mrb[1].mxu0  ;;  %383 = verf.f32 %v258_v24  ;;  %v259_v29 = vmul.f32 0.70710677, %v249_v25  ;;  %v246_v30 = vadd.f32 %v313_v18, %v199_v23  ;;  %v254_v46 = vmul.f32 0.5, %v249_v25 }
 0x21c   :  { %v202_v27 = vpop.f32.mrb[2].mxu0 }
 0x21d   :  { %v356_v31 = vpop.f32.mrb[3].mxu0  ;;  %385 = verf.f32 %v259_v29  ;;  %v256_v33 = vmul.f32 0.70710677, %v246_v30  ;;  %v247_v36 = vadd.f32 %v313_v18, %v202_v27  ;;  %v251_v55 = vmul.f32 0.5, %v246_v30 }
 0x21e   :  { %v215_v32 = vpop.f32.mrb[4].mxu1 }
 0x21f   :  { %v225_v34 = vadd.f32 %v215_v32, %v139_v28  ;;  %v363_v35 = vpop.f32.mrb[5].mxu1  ;;  %387 = verf.f32 %v256_v33  ;;  %v257_v39 = vmul.f32 0.70710677, %v247_v36  ;;  %v252_v56 = vmul.f32 0.5, %v247_v36 }
 0x220   :  { %v218_v37 = vpop.f32.mrb[6].mxu1 }
 0x221   :  { %230 = vst [vmem:[#allocation2 + $0x20] sm:$0x3] %v225_v34  ;;  %v364_v38 = vpop.f32.mrb[7].mxu1  ;;  %389 = verf.f32 %v257_v39 }
 0x225   :  { %v384_v40 = vpop.eup %383 }
 0x226   :  { %v268_v41 = vadd.f32 1.0, %v384_v40 }
 0x227   :  { %v386_v43 = vpop.eup %385 }
 0x228   :  { %v238_v42 = vld [vmem:[#allocation2 + $0x20] sm:$0x3]  ;;  %v269_v47 = vadd.f32 1.0, %v386_v43  ;;  %v273_v50 = vmul.f32 %v268_v41, %v253_v45 }
 0x229   :  { %v250_v44 = vadd.f32 %v313_v18, %v238_v42  ;;  %v388_v48 = vpop.eup %387 }
 0x22a   :  { %v274_v51 = vmul.f32 %v269_v47, %v254_v46  ;;  %v266_v52 = vadd.f32 1.0, %v388_v48 }
 0x22b   :  { %v260_v49 = vmul.f32 0.70710677, %v250_v44  ;;  %v390_v53 = vpop.eup %389  ;;  %v255_v62 = vmul.f32 0.5, %v250_v44 }
 0x22c   :  { %v340_v54 = vpack.c.bf16 %v274_v51, %v273_v50  ;;  %v267_v57 = vadd.f32 1.0, %v390_v53  ;;  %v271_v58 = vmul.f32 %v266_v52, %v251_v55 }
 0x22d   :  { %391 = verf.f32 %v260_v49 }
 0x22e   :  { %343 = vst [vmem:[%s499_s5 + $0x8] sm:$0xff] %v340_v54   ;;  %v272_v59 = vmul.f32 %v267_v57, %v252_v56 }
 0x230   :  { %v335_v60 = vpack.c.bf16 %v272_v59, %v271_v58 }
 0x232   :  { %336 = vst [vmem:[%s499_s5] sm:$0xff] %v335_v60  }
 0x237   :  { %v392_v61 = vpop.eup %391 }
 0x238   :  { %v270_v63 = vadd.f32 1.0, %v392_v61 }
 0x23a   :  { %v275_v0 = vmul.f32 %v270_v63, %v255_v62 }
 0x23c   :  { %v323_v1 = vpack.c.bf16 %v275_v0, %v275_v0 }
 0x23e   :  { %301 = vst [vmem:[%s499_s5 + $0x10] sm:$0x1] %v323_v1 }

// kernel: _vit_trunk.17
= control target key start
LH: loop header
LB: loop body
LE: loop exit
PB: predicated region body
PF: predicated region fallthrough
CT: control target
= control target key end

     0   :  { %vm22_vm0 = vcmask 261120   ;;  %v353_v0 = vmov 0.0   ;;  %vm354_vm1 = vmmov 0   ;;  %vm27_vm2 = vcmask 254976   ;;  %s453_s1 = inlined_call_operand.vmem [shape: bf16[128,32], index: 1, kind: input, shape index: {}]   ;;  %s454_s0 = inlined_call_operand.vmem [shape: bf16[34,128], index: 0, kind: input, shape index: {}]   ;;  %s455_s3 = inlined_call_operand.vmem [shape: bf16[34,32], index: 3, kind: input, shape index: {}]   ;;  %s456_s2 = inlined_call_operand.vmem [shape: f32[1,32], index: 2, kind: input, shape index: {}]   ;;  %s457_s4 = inlined_call_operand.vmem [shape: bf16[34,32], index: 4, kind: output, shape index: {}]  }
   0x1   :  { %324 = vmatprep.subr.bf16.mxu1 %v353_v0  ;;  %v342_v1 = vld [vmem:[%s453_s1] sm:$0xff]   ;;  %296 = vmatprep.subr.bf16.mxu0 %v353_v0  ;;  %25 = vst.msk [vmem:[#allocation2 + $0x10] sm:$0xff] %vm22_vm0, %v353_v0  ;;  %23 = vst.msk [vmem:[#allocation2] sm:$0xff] %vm22_vm0, %v353_v0  ;;  %v343_v2 = vld [vmem:[%s453_s1 + $0x8] sm:$0xff]   ;;  %vm243_vm3 = vcmask 257024   ;;  %vm248_vm4 = vcmask 253952  }
   0x2   :  { %24 = vst.msk [vmem:[#allocation2 + $0x8] sm:$0xff] %vm22_vm0, %v353_v0  ;;  %26 = vst.msk [vmem:[#allocation2 + $0x18] sm:$0xff] %vm22_vm0, %v353_v0  ;;  %316 = vmatprep.mubr.msk.bf16.mxu1 %vm354_vm1, %v353_v0  ;;  %312 = vmatprep.mubr.msk.bf16.mxu0 %vm354_vm1, %v353_v0  ;;  %v344_v3 = vld [vmem:[%s453_s1 + $0x10] sm:$0xff]   ;;  %v345_v4 = vld [vmem:[%s453_s1 + $0x18] sm:$0xff]  }
   0x3   :  { %332 = vmatpush3.bf16.msra.mxu1 %v342_v1  ;;  %297 = vmatpush3.bf16.msra.mxu0 %v342_v1  ;;  %v346_v5 = vld [vmem:[%s453_s1 + $0x20] sm:$0xff]   ;;  %v347_v6 = vld [vmem:[%s453_s1 + $0x28] sm:$0xff]   ;;  %v348_v7 = vld [vmem:[%s453_s1 + $0x30] sm:$0xff]   ;;  %28 = vst.msk [vmem:[#allocation2 + $0x20] sm:$0x3] %vm27_vm2, %v353_v0 }
   0x4   :  { %325 = vmatprep.subr.bf16.mxu1 %v353_v0  ;;  %298 = vmatprep.subr.bf16.mxu0 %v353_v0  ;;  %v349_v8 = vld [vmem:[%s453_s1 + $0x38] sm:$0xff]   ;;  %v350_v9 = vld [vmem:[%s454_s0 + $0x8] sm:$0xff]   ;;  %v351_v10 = vld [vmem:[%s454_s0] sm:$0xff]  }
   0x5   :  { %v352_v11 = vld [vmem:[%s454_s0 + $0x10] ss:$0 sps:$4 sm:$0x11]   ;;  %v284_v28 = vld [vmem:[%s455_s3 + $0x8] sm:$0xff]   ;;  %v277_v29 = vld [vmem:[%s455_s3] sm:$0xff]  }
   0x6   :  { %v265_v31 = vld [vmem:[%s456_s2] ss:$0 sm:$0xff]  ;;  %v282_v33 = vunpack.c.l.bf16 %v284_v28  ;;  %v278_v34 = vunpack.c.l.bf16 %v277_v29  ;;  %v283_v41 = vunpack.c.h.bf16 %v284_v28  ;;  %v279_v43 = vunpack.c.h.bf16 %v277_v29  ;;  %v211_v51 = vld [vmem:[%s455_s3 + $0x10] sm:$0x1] }
   0x7   :  { %333 = vmatpush3.bf16.msra.mxu1 %v343_v2  ;;  %299 = vmatpush3.bf16.msra.mxu0 %v343_v2  ;;  %v216_v58 = vunpack.c.l.bf16 %v211_v51 }
   0x8   :  { %326 = vmatprep.subr.bf16.mxu1 %v353_v0  ;;  %300 = vmatprep.subr.bf16.mxu0 %v353_v0  ;;  %v36_v12 = vld [vmem:[#allocation2 + $0x10] sm:$0xff]  ;;  %v34_v13 = vld [vmem:[#allocation2] sm:$0xff] }
   0x9   :  { %v37_v15 = vld [vmem:[#allocation2 + $0x18] sm:$0xff]  ;;  %v35_v17 = vld [vmem:[#allocation2 + $0x8] sm:$0xff] }
   0xa   :  { %v38_v30 = vld [vmem:[#allocation2 + $0x20] sm:$0x3] }
   0xb   :  { %334 = vmatpush3.bf16.msra.mxu1 %v344_v3  ;;  %301 = vmatpush3.bf16.msra.mxu0 %v344_v3 }
   0xc   :  { %327 = vmatprep.subr.bf16.mxu1 %v353_v0  ;;  %302 = vmatprep.subr.bf16.mxu0 %v353_v0 }
   0xf   :  { %335 = vmatpush3.bf16.msra.mxu1 %v345_v4  ;;  %303 = vmatpush3.bf16.msra.mxu0 %v345_v4 }
  0x10   :  { %328 = vmatprep.subr.bf16.mxu1 %v353_v0  ;;  %304 = vmatprep.subr.bf16.mxu0 %v353_v0 }
  0x13   :  { %336 = vmatpush3.bf16.msra.mxu1 %v346_v5  ;;  %305 = vmatpush3.bf16.msra.mxu0 %v346_v5 }
  0x14   :  { %329 = vmatprep.subr.bf16.mxu1 %v353_v0  ;;  %306 = vmatprep.subr.bf16.mxu0 %v353_v0 }
  0x17   :  { %337 = vmatpush3.bf16.msra.mxu1 %v347_v6  ;;  %307 = vmatpush3.bf16.msra.mxu0 %v347_v6 }
  0x18   :  { %330 = vmatprep.subr.bf16.mxu1 %v353_v0  ;;  %308 = vmatprep.subr.bf16.mxu0 %v353_v0 }
  0x1b   :  { %338 = vmatpush3.bf16.msra.mxu1 %v348_v7  ;;  %309 = vmatpush3.bf16.msra.mxu0 %v348_v7 }
  0x1c   :  { %331 = vmatprep.subr.bf16.mxu1 %v353_v0  ;;  %310 = vmatprep.subr.bf16.mxu0 %v353_v0 }
  0x1f   :  { %339 = vmatpush3.bf16.msra.mxu1 %v349_v8  ;;  %311 = vmatpush3.bf16.msra.mxu0 %v349_v8 }
  0x22   :  { %317 = vmatmul.mubr.bf16.vlgmr.msra.gmra.mrb[0].mxu1 %v350_v9  ;;  %313 = vmatmul.mubr.bf16.vlgmr.msra.gmra.mrb[0].mxu0 %v351_v10 }
  0x23   :  { %320 = vmatprep.mubr.msk.bf16.mxu1 %vm354_vm1, %v353_v0 }
  0x2a   :  { %321 = vmatmul.mubr.bf16.gmra.mrb[4].mxu1 %v352_v11 }
  0xf5   :  { %v161_v14 = vpop.f32.mrb[0].mxu1  ;;  %v153_v16 = vpop.f32.mrb[0].mxu0 }
  0xf6   :  { %v177_v18 = vadd.f32 %v161_v14, %v36_v12  ;;  %v318_v19 = vpop.f32.mrb[1].mxu1  ;;  %v175_v20 = vadd.f32 %v153_v16, %v34_v13  ;;  %v314_v21 = vpop.f32.mrb[1].mxu0 }
  0xf7   :  { %v164_v22 = vpop.f32.mrb[2].mxu1  ;;  %v156_v23 = vpop.f32.mrb[2].mxu0 }
  0xf8   :  { %183 = vst.msk [vmem:[#allocation2 + $0x10] sm:$0xff] %vm22_vm0, %v177_v18  ;;  %v178_v24 = vadd.f32 %v164_v22, %v37_v15  ;;  %181 = vst.msk [vmem:[#allocation2] sm:$0xff] %vm22_vm0, %v175_v20  ;;  %v319_v25 = vpop.f32.mrb[3].mxu1  ;;  %v176_v26 = vadd.f32 %v156_v23, %v35_v17  ;;  %v315_v27 = vpop.f32.mrb[3].mxu0 }
  0xfa   :  { %184 = vst.msk [vmem:[#allocation2 + $0x18] sm:$0xff] %vm22_vm0, %v178_v24  ;;  %182 = vst.msk [vmem:[#allocation2 + $0x8] sm:$0xff] %vm22_vm0, %v176_v26 }
  0xfd   :  { %v169_v32 = vpop.f32.mrb[4].mxu1 }
  0xfe   :  { %v179_v35 = vadd.f32 %v169_v32, %v38_v30  ;;  %v322_v36 = vpop.f32.mrb[5].mxu1 }
  0xff   :  { %v192_v37 = vld [vmem:[#allocation2 + $0x10] sm:$0xff]  ;;  %v190_v38 = vld [vmem:[#allocation2] sm:$0xff]  ;;  %v172_v39 = vpop.f32.mrb[6].mxu1 }
 0x100   :  { %v204_v40 = vadd.f32 %v265_v31, %v192_v37  ;;  %v202_v42 = vadd.f32 %v265_v31, %v190_v38  ;;  %186 = vst.msk [vmem:[#allocation2 + $0x20] sm:$0x3] %vm27_vm2, %v179_v35  ;;  %v323_v44 = vpop.f32.mrb[7].mxu1 }
 0x101   :  { %v193_v45 = vld [vmem:[#allocation2 + $0x18] sm:$0xff]  ;;  %v191_v46 = vld [vmem:[#allocation2 + $0x8] sm:$0xff] }
 0x102   :  { %v219_v47 = vadd.f32 %v282_v33, %v204_v40  ;;  %v205_v48 = vadd.f32 %v265_v31, %v193_v45  ;;  %v217_v49 = vadd.f32 %v278_v34, %v202_v42  ;;  %v203_v50 = vadd.f32 %v265_v31, %v191_v46 }
 0x104   :  { %v273_v52 = vpack.c.bf16 %v219_v47, %v219_v47  ;;  %v220_v53 = vadd.f32 %v283_v41, %v205_v48  ;;  %v271_v54 = vpack.c.bf16 %v217_v49, %v217_v49  ;;  %v218_v55 = vadd.f32 %v279_v43, %v203_v50 }
 0x106   :  { %246 = vst.msk [vmem:[%s457_s4 + $0x8] sm:$0xf] %vm243_vm3, %v273_v52  ;;  %v274_v56 = vpack.c.bf16 %v220_v53, %v220_v53  ;;  %244 = vst.msk [vmem:[%s457_s4] sm:$0xf] %vm243_vm3, %v271_v54  ;;  %v272_v57 = vpack.c.bf16 %v218_v55, %v218_v55 }
 0x107   :  { %v194_v59 = vld [vmem:[#allocation2 + $0x20] sm:$0x3] }
 0x108   :  { %247 = vst.msk [vmem:[%s457_s4 + $0xc] sm:$0xf] %vm243_vm3, %v274_v56  ;;  %245 = vst.msk [vmem:[%s457_s4 + $0x4] sm:$0xf] %vm243_vm3, %v272_v57  ;;  %v206_v60 = vadd.f32 %v265_v31, %v194_v59 }
 0x10a   :  { %v221_v61 = vadd.f32 %v216_v58, %v206_v60 }
 0x10c   :  { %v275_v62 = vpack.c.bf16 %v221_v61, %v221_v61 }
 0x10e   :  { %249 = vst.msk [vmem:[%s457_s4 + $0x10] sm:$0x1] %vm248_vm4, %v275_v62 }

// kernel: _vit_trunk.23
= control target key start
LH: loop header
LB: loop body
LE: loop exit
PB: predicated region body
PF: predicated region fallthrough
CT: control target
= control target key end

     0   :  { %vm39_vm0 = vcmask 261120   ;;  %s394_s0 = inlined_call_operand.vmem [shape: bf16[32,32], index: 0, kind: input, shape index: {}]   ;;  %s395_s1 = inlined_call_operand.vmem [shape: bf16[32,16], index: 1, kind: input, shape index: {}]   ;;  %s396_s2 = inlined_call_operand.vmem [shape: f32[1,16], index: 2, kind: input, shape index: {}]   ;;  %s397_s3 = inlined_call_operand.vmem [shape: f32[1,32], index: 3, kind: input, shape index: {}]   ;;  %s398_s4 = inlined_call_operand.vmem [shape: f32[1,32], index: 4, kind: input, shape index: {}]   ;;  %s399_s5 = inlined_call_operand.hbm [shape: f32[32,16], index: 5, kind: output, shape index: {}]  }
   0x1   :  { %v247_v0 = vld [vmem:[%s394_s0] sm:$0xff]   ;;  %v254_v1 = vld [vmem:[%s394_s0 + $0x8] sm:$0xff]  }
   0x2   :  { %v248_v2 = vunpack.c.l.bf16 %v247_v0  ;;  %v252_v3 = vunpack.c.l.bf16 %v254_v1  ;;  %v249_v4 = vunpack.c.h.bf16 %v247_v0  ;;  %v253_v5 = vunpack.c.h.bf16 %v254_v1 }
   0x3   :  { %10 = vsyncpa [#allocation4], 0  ;;  %v271_v30 = vld [vmem:[%s395_s1] sm:$0xff]   ;;  %v272_v31 = vld [vmem:[%s395_s1 + $0x8] sm:$0xff]   ;;  %vm26_vm1 = vcmask 130048   ;;  %v305_v32 = vmov 0.0  }
   0x4   :  { %v40_v6 = vsel %vm39_vm0, %v248_v2, 0.0  ;;  %v46_v7 = vsel %vm39_vm0, %v252_v3, 0.0  ;;  %v43_v8 = vsel %vm39_vm0, %v249_v4, 0.0  ;;  %v49_v9 = vsel %vm39_vm0, %v253_v5, 0.0  ;;  %259 = vmatprep.subr.bf16.mxu0 %v271_v30  ;;  %29 = vst.msk [vmem:[#allocation2 + $0x10] sm:$0xff] %vm26_vm1, %v305_v32  ;;  %27 = vst.msk [vmem:[#allocation2] sm:$0xff] %vm26_vm1, %v305_v32 }
   0x5   :  { %41 = vadd.xlane.f32.xlu0 %v40_v6  ;;  %47 = vadd.xlane.f32.xlu1 %v46_v7  ;;  %28 = vst.msk [vmem:[#allocation2 + $0x8] sm:$0xff] %vm26_vm1, %v305_v32  ;;  %30 = vst.msk [vmem:[#allocation2 + $0x18] sm:$0xff] %vm26_vm1, %v305_v32  ;;  %v239_v47 = vld [vmem:[%s397_s3] ss:$0 sm:$0xff]  ;;  %s306_s28 = smov [#allocation3]  }
   0x6   :  { %260 = vmatpush3.bf16.msra.mxu0 %v271_v30  ;;  %v240_v53 = vld [vmem:[%s398_s4] ss:$0 sm:$0xff]  ;;  %s228_s29 = sshll.u32 %s306_s28, 4  ;;  %s229_s29 = int_to_ptr.vmem [resolvable:$true] %s228_s29 }
   0x7   :  { %261 = vmatprep.subr.bf16.mxu0 %v272_v31  ;;  %p286_p1 = scmp.lt.s32.totalorder %s229_s29, %s229_s29 }
   0x9   :  { %44 = vadd.xlane.f32.xlu0 %v43_v8  ;;  %50 = vadd.xlane.f32.xlu1 %v49_v9 }
   0xa   :  { %262 = vmatpush3.bf16.msra.mxu0 %v272_v31 }
   0xb   :  { %v119_v1 = vld [vmem:[#allocation2 + $0x10] sm:$0xff] }
   0xc   :  { %v118_v7 = vld [vmem:[#allocation2 + $0x8] sm:$0xff] }
  0x92   :  { %v42_v10 = vpop.xlane.xlu0 %41  ;;  %v48_v11 = vpop.xlane.xlu1 %47 }
  0x93   :  { %v53_v12 = vmul.f32 0.03125, %v42_v10  ;;  %v55_v13 = vmul.f32 0.03125, %v48_v11 }
  0x95   :  { %v57_v14 = vsub.f32 %v248_v2, %v53_v12  ;;  %v59_v15 = vsub.f32 %v252_v3, %v55_v13  ;;  %v117_v2 = vld [vmem:[#allocation2] sm:$0xff] }
  0x96   :  { %v45_v16 = vpop.xlane.xlu0 %44  ;;  %v51_v17 = vpop.xlane.xlu1 %50  ;;  %v245_v13 = vld [vmem:[%s396_s2] ss:$0 sm:$0xff]  ;;  %s281_s2 = scalar_lea.vmem %s229_s29, 512 }
  0x97   :  { %v54_v18 = vmul.f32 0.03125, %v45_v16  ;;  %v56_v19 = vmul.f32 0.03125, %v51_v17  ;;  %v61_v20 = vmul.f32 %v57_v14, %v57_v14  ;;  %v63_v21 = vmul.f32 %v59_v15, %v59_v15  ;;  %p282_p0 = scmp.ne.s32.totalorder %s229_s29, %s281_s2  ;;  %p287_p2 = scmp.lt.s32.totalorder %s281_s2, %s281_s2 }
  0x99   :  { %v58_v22 = vsub.f32 %v249_v4, %v54_v18  ;;  %v60_v23 = vsub.f32 %v253_v5, %v56_v19  ;;  %v65_v24 = vsel %vm39_vm0, %v61_v20, 0.0  ;;  %v71_v25 = vsel %vm39_vm0, %v63_v21, 0.0  ;;  %v120_v4 = vld [vmem:[#allocation2 + $0x18] sm:$0xff]  ;;  %p288_p3 = por %p287_p2, %p286_p1 }
  0x9a   :  { %66 = vadd.xlane.f32.xlu0 %v65_v24 }
  0x9b   :  { %v62_v26 = vmul.f32 %v58_v22, %v58_v22  ;;  %v64_v27 = vmul.f32 %v60_v23, %v60_v23  ;;  %p289_p4 = pnand %p288_p3, %p282_p0 }
  0x9d   :  { %v68_v28 = vsel %vm39_vm0, %v62_v26, 0.0  ;;  %v74_v29 = vsel %vm39_vm0, %v64_v27, 0.0 }
  0x9e   :  { %72 = vadd.xlane.f32.xlu0 %v71_v25  ;;  %69 = vadd.xlane.f32.xlu1 %v68_v28 }
  0xa2   :  { %75 = vadd.xlane.f32.xlu1 %v74_v29 }
 0x127   :  { %v67_v33 = vpop.xlane.xlu0 %66 }
 0x128   :  { %v77_v34 = vmul.f32 0.03125, %v67_v33 }
 0x12a   :  { %v81_v35 = vadd.f32 1e-06, %v77_v34 }
 0x12b   :  { %v70_v36 = vpop.xlane.xlu1 %69  ;;  %v73_v37 = vpop.xlane.xlu0 %72 }
 0x12c   :  { %273 = vrsqrt.f32 %v81_v35  ;;  %v78_v38 = vmul.f32 0.03125, %v70_v36  ;;  %v79_v39 = vmul.f32 0.03125, %v73_v37 }
 0x12e   :  { %v82_v40 = vadd.f32 1e-06, %v78_v38  ;;  %v83_v41 = vadd.f32 1e-06, %v79_v39 }
 0x12f   :  { %v76_v42 = vpop.xlane.xlu1 %75 }
 0x130   :  { %275 = vrsqrt.f32 %v82_v40  ;;  %v80_v43 = vmul.f32 0.03125, %v76_v42 }
 0x131   :  { %277 = vrsqrt.f32 %v83_v41 }
 0x132   :  { %v84_v44 = vadd.f32 1e-06, %v80_v43 }
 0x134   :  { %279 = vrsqrt.f32 %v84_v44 }
 0x136   :  { %v274_v45 = vpop.eup %273 }
 0x137   :  { %v89_v46 = vmul.f32 %v274_v45, %v57_v14 }
 0x139   :  { %v100_v51 = vmul.f32 %v239_v47, %v89_v46 }
 0x13a   :  { %v276_v48 = vpop.eup %275 }
 0x13b   :  { %v278_v49 = vpop.eup %277  ;;  %v90_v50 = vmul.f32 %v276_v48, %v58_v22  ;;  %v111_v57 = vadd.f32 %v240_v53, %v100_v51 }
 0x13c   :  { %v91_v52 = vmul.f32 %v278_v49, %v59_v15 }
 0x13d   :  { %v101_v54 = vmul.f32 %v239_v47, %v90_v50 }
 0x13e   :  { %v280_v55 = vpop.eup %279  ;;  %v102_v59 = vmul.f32 %v239_v47, %v91_v52 }
 0x13f   :  { %v92_v56 = vmul.f32 %v280_v55, %v60_v23  ;;  %v112_v58 = vadd.f32 %v240_v53, %v101_v54 }
 0x140   :  { %v113_v62 = vadd.f32 %v240_v53, %v102_v59 }
 0x141   :  { %v115_v60 = vpack.c.bf16 %v112_v58, %v111_v57  ;;  %v103_v61 = vmul.f32 %v239_v47, %v92_v56 }
 0x143   :  { %263 = vmatprep.mubr.msk.bf16.mxu0 %vm39_vm0, %v115_v60  ;;  %v114_v63 = vadd.f32 %v240_v53, %v103_v61 }
 0x145   :  { %v116_v0 = vpack.c.bf16 %v114_v63, %v113_v62 }
 0x147   :  { %264 = vmatmul.mubr.msk.bf16.vlgmr.msra.gmra.mrb[0].mxu0 %vm39_vm0, %v116_v0 }
 0x21a   :  { %v265_v3 = vpop.f32.mrb[0].mxu0 }
 0x21b   :  { %v194_v5 = vadd.f32 %v265_v3, %v119_v1  ;;  %v177_v6 = vpop.f32.mrb[1].mxu0 }
 0x21c   :  { %v192_v8 = vadd.f32 %v177_v6, %v117_v2  ;;  %v266_v9 = vpop.f32.mrb[2].mxu0 }
 0x21d   :  { %199 = vst.msk [vmem:[#allocation2 + $0x10] sm:$0xff] %vm26_vm1, %v194_v5  ;;  %v195_v10 = vadd.f32 %v266_v9, %v120_v4  ;;  %v180_v11 = vpop.f32.mrb[3].mxu0 }
 0x21e   :  { %197 = vst.msk [vmem:[#allocation2] sm:$0xff] %vm26_vm1, %v192_v8  ;;  %v193_v12 = vadd.f32 %v180_v11, %v118_v7 }
 0x21f   :  { %200 = vst.msk [vmem:[#allocation2 + $0x18] sm:$0xff] %vm26_vm1, %v195_v10 }
 0x220   :  { %198 = vst.msk [vmem:[#allocation2 + $0x8] sm:$0xff] %vm26_vm1, %v193_v12 }
 0x224   :  { %v206_v14 = vld [vmem:[#allocation2 + $0x10] sm:$0xff] }
 0x225   :  { %v204_v15 = vld [vmem:[#allocation2] sm:$0xff]  ;;  %v217_v16 = vadd.f32 %v245_v13, %v206_v14 }
 0x226   :  { %v207_v17 = vld [vmem:[#allocation2 + $0x18] sm:$0xff]  ;;  %v215_v18 = vadd.f32 %v245_v13, %v204_v15 }
 0x227   :  { %v205_v19 = vld [vmem:[#allocation2 + $0x8] sm:$0xff]  ;;  %v218_v20 = vadd.f32 %v245_v13, %v207_v17  ;;  %221 = vst.msk [vmem:[#allocation3 + $0x10] sm:$0xff] %vm26_vm1, %v217_v16 }
 0x228   :  { %v216_v21 = vadd.f32 %v245_v13, %v205_v19  ;;  %219 = vst.msk [vmem:[#allocation3] sm:$0xff] %vm26_vm1, %v215_v18 }
 0x229   :  { %222 = vst.msk [vmem:[#allocation3 + $0x18] sm:$0xff] %vm26_vm1, %v218_v20 }
 0x22a   :  { %220 = vst.msk [vmem:[#allocation3 + $0x8] sm:$0xff] %vm26_vm1, %v216_v21 }
 0x22b   :  { %292 = shalt.err (!%p289_p4)
}
 0x22c   :  { %s293_s7 = scalar_lea.hbm %s399_s5, 512 }
 0x22d   :  { %p294_p5 = scmp.ne.s32.totalorder %s399_s5, %s293_s7  ;;  %p297_p6 = scmp.lt.u32.totalorder %s293_s7, %s399_s5 }
 0x22f   :  { %p299_p7 = pnand %p297_p6, %p294_p5 }
 0x231   :  { %302 = shalt.err (!%p299_p7)
}
 0x232   :  { %s307_s12 = smov 128   ;;  %s308_s13 = smov 8  }
 0x233   :  { %234 = dma.vmem_to_hbm [thread:$0]  %s229_s29, 512, %s399_s5, [#allocation4], %s307_s12, %s307_s12, %s308_s13  }
 0x234   :  { %303 = dma.done.wait [#allocation4], 512  }
 0x235   :  { %304 = vsyncadd [#allocation4], 4294966784 }
 0x236   :  { %238 = vsyncpa [#allocation4], 1 }

</bundles_post_ra>
